<compile_context>
chip_gen: v7x
topology: tpu7x:2x2x1
jax: 0.10.0
libtpu: 0.0.40
codegen_flags: <defaults>
</compile_context>

<pallas_src>
import functools

import jax
import jax.numpy as jnp
from jax.experimental import pallas as pl
from jax.experimental.pallas import tpu as pltpu

_SQRT_HALF = 0.7071067811865476


# ----------------------------------------------------------------------------
# Exact GELU (erf based, == torch.nn.GELU() default). erf uses the Abramowitz &
# Stegun 7.1.26 rational approximation (|err| <= 1.5e-7).  Only abs/mul/exp and
# an EUP approximate reciprocal -> everything lands on VPU/EUP slots.
# ----------------------------------------------------------------------------
def _erf(z):
    p = 0.3275911
    a1, a2, a3, a4, a5 = (0.254829592, -0.284496736, 1.421413741,
                          -1.453152027, 1.061405429)
    az = jnp.abs(z)
    t = pl.reciprocal(1.0 + p * az, approx=True)      # EUP slot (exp lives there too)
    poly = ((((a5 * t + a4) * t + a3) * t + a2) * t + a1) * t
    r = 1.0 - poly * jnp.exp(-az * az)
    return jnp.where(z < 0.0, -r, r)


def _gelu_exact(z):
    return 0.5 * z * (1.0 + _erf(z * _SQRT_HALF))


# ----------------------------------------------------------------------------
# Fused HireModule kernel: one grid step == one (Bt, W, H, C) batch tile.
# ----------------------------------------------------------------------------
def _hire_kernel(x_ref,
                 wh1_ref, bh1_ref, wh2_ref, bh2_ref,     # fc_h: 2C -> C/2 -> 2C
                 ww1_ref, bw1_ref, ww2_ref, bw2_ref,     # fc_w: 2C -> C/2 -> 2C
                 wc_ref, bc_ref,                          # fc_c: C -> C
                 o_ref, *, matmul_dtype):
    bt, wd, hd, c = x_ref.shape
    hg, wg = hd // 2, wd // 2
    f32 = jnp.float32
    md = matmul_dtype

    x = x_ref[...]                                   # (Bt, W, H, C) f32, resident in VMEM

    # ---------------- channel branch: fc_c (single (Bt*W*H, C) matmul) --------
    xc = jnp.dot(x.reshape(bt * wd * hd, c).astype(md), wc_ref[...],
                 preferred_element_type=f32) + bc_ref[...]
    xc = xc.reshape(bt, wd, hd, c)

    # ---------------- height branch: fc_h --------------------------------------
    # cross_region_h: roll(+1) along H (sublane axis) -> slices + concat only.
    xh = jnp.roll(x, 1, axis=2)
    # inner_region_h: 'b w (h g) c -> b w g (h c)' (h major) == concat of the
    # two H halves along the channel axis.
    ah = jnp.concatenate([xh[:, :, :hg, :], xh[:, :, hg:, :]], axis=-1)   # (Bt,W,hg,2C)
    ah = ah.reshape(bt * wd * hg, 2 * c).astype(md)
    th = _gelu_exact(jnp.dot(ah, wh1_ref[...], preferred_element_type=f32)
                     + bh1_ref[...])
    yh = jnp.dot(th.astype(md), wh2_ref[...], preferred_element_type=f32) + bh2_ref[...]
    yh = yh.reshape(bt, wd, hg, 2 * c)
    # inner_region_restore_h: 'b w g (h c) -> b w (h g) c' == concat halves along H.
    yh = jnp.concatenate([yh[..., :c], yh[..., c:]], axis=2)              # (Bt,W,H,C)
    yh = jnp.roll(yh, -1, axis=2)                    # cross_region_restore_h

    # ---------------- width branch: fc_w ----------------------------------------
    xw = jnp.roll(x, 1, axis=1)                      # cross_region_w (leading axis -> cheap)
    bcat = jnp.concatenate([xw[:, :wg, :, :], xw[:, wg:, :, :]], axis=-1)  # (Bt,wg,H,2C)
    bcat = bcat.reshape(bt * wg * hd, 2 * c).astype(md)
    tw = _gelu_exact(jnp.dot(bcat, ww1_ref[...], preferred_element_type=f32)
                     + bw1_ref[...])
    zw = jnp.dot(tw.astype(md), ww2_ref[...], preferred_element_type=f32) + bw2_ref[...]
    zw = zw.reshape(bt, wg, hd, 2 * c)
    zw = jnp.concatenate([zw[..., :c], zw[..., c:]], axis=1)              # (Bt,W,H,C)
    zw = jnp.roll(zw, -1, axis=1)                    # cross_region_restore_w

    o_ref[...] = (xc + yh + zw).astype(o_ref.dtype)


# ----------------------------------------------------------------------------
# Wrapper: single pallas_call, grid over batch tiles, weights VMEM-resident.
# ----------------------------------------------------------------------------
def _largest_divisor_not_exceeding(n, cap):
    cap = max(1, min(n, cap))
    for d in range(cap, 0, -1):
        if n % d == 0:
            return d
    return 1


def hire_module_pallas(x, params, *, matmul_dtype=jnp.bfloat16,
                       target_block_bytes=2 * 1024 * 1024,
                       core_parallel=False):
    b, wd, hd, c = x.shape
    if hd % 16 != 0 or wd % 2 != 0 or c % 2 != 0:
        raise ValueError("hire_module_pallas requires H % 16 == 0, W % 2 == 0, C % 2 == 0")
    ch = c // 2

    # Batch tile: largest divisor of B whose f32 tile stays under the target
    # (~2 MiB => >85% of HBM roofline per the tiled-add measurements, and small
    # enough that double-buffered in+out+temps fit v7x's 64 MiB VMEM).
    per_image_bytes = wd * hd * c * x.dtype.itemsize
    bt = _largest_divisor_not_exceeding(b, max(1, target_block_bytes // per_image_bytes))
    grid = (b // bt,)

    md = matmul_dtype
    wh1 = params["fc_h_w1"].astype(md)
    wh2 = params["fc_h_w2"].astype(md)
    ww1 = params["fc_w_w1"].astype(md)
    ww2 = params["fc_w_w2"].astype(md)
    wc = params["fc_c_w"].astype(md)
    bh1 = params["fc_h_b1"].reshape(1, ch).astype(jnp.float32)
    bh2 = params["fc_h_b2"].reshape(1, 2 * c).astype(jnp.float32)
    bw1 = params["fc_w_b1"].reshape(1, ch).astype(jnp.float32)
    bw2 = params["fc_w_b2"].reshape(1, 2 * c).astype(jnp.float32)
    bc = params["fc_c_b"].reshape(1, c).astype(jnp.float32)

    def full(shape):
        return pl.BlockSpec(shape, lambda i: (0,) * len(shape))

    weight_bytes = sum(int(a.size) * a.dtype.itemsize
                       for a in (wh1, wh2, ww1, ww2, wc, bh1, bh2, bw1, bw2, bc))
    blk_bytes = bt * per_image_bytes
    # in (2x double-buffered) + out (2x) + branch temporaries + weights, clamped
    # to <= 48 MiB so the limit is valid on v7x (64 MiB physical) as well.
    vmem_limit = int(min(48 * 1024 * 1024,
                         max(24 * 1024 * 1024, 16 * blk_bytes + 4 * weight_bytes)))

    dim_sem = (pltpu.CORE_PARALLEL,) if core_parallel else ("parallel",)

    kernel = functools.partial(_hire_kernel, matmul_dtype=md)

    return pl.pallas_call(
        kernel,
        out_shape=jax.ShapeDtypeStruct((b, wd, hd, c), x.dtype),
        grid=grid,
        in_specs=[
            pl.BlockSpec((bt, wd, hd, c), lambda i: (i, 0, 0, 0)),
            full(wh1.shape), full(bh1.shape), full(wh2.shape), full(bh2.shape),
            full(ww1.shape), full(bw1.shape), full(ww2.shape), full(bw2.shape),
            full(wc.shape), full(bc.shape),
        ],
        out_specs=pl.BlockSpec((bt, wd, hd, c), lambda i: (i, 0, 0, 0)),
        compiler_params=pltpu.CompilerParams(
            dimension_semantics=dim_sem,
            vmem_limit_bytes=vmem_limit,
        ),
    )(x, wh1, bh1, wh2, bh2, ww1, bw1, ww2, bw2, wc, bc)


# ----------------------------------------------------------------------------
# Pure-JAX f32 reference mirroring the torch forward (rolls + einops rearranges).
# ----------------------------------------------------------------------------
def _mlp_ref(x, w1, b1, w2, b2):
    h = jax.nn.gelu(jnp.dot(x, w1) + b1, approximate=False)
    return jnp.dot(h, w2) + b2


def hire_module_ref(x, p):
    b, wd, hd, c = x.shape
    h = w = 2
    step = 1
    # height branch
    xh = jnp.roll(x, step, axis=2)
    xh = (xh.reshape(b, wd, h, hd // h, c).transpose(0, 1, 3, 2, 4)
            .reshape(b, wd, hd // h, h * c))
    xh = _mlp_ref(xh, p["fc_h_w1"], p["fc_h_b1"], p["fc_h_w2"], p["fc_h_b2"])
    xh = (xh.reshape(b, wd, hd // h, h, c).transpose(0, 1, 3, 2, 4)
            .reshape(b, wd, hd, c))
    xh = jnp.roll(xh, -step, axis=2)
    # width branch
    xw = jnp.roll(x, step, axis=1)
    xw = (xw.reshape(b, w, wd // w, hd, c).transpose(0, 2, 3, 1, 4)
            .reshape(b, wd // w, hd, w * c))
    xw = _mlp_ref(xw, p["fc_w_w1"], p["fc_w_b1"], p["fc_w_w2"], p["fc_w_b2"])
    xw = (xw.reshape(b, wd // w, hd, w, c).transpose(0, 3, 1, 2, 4)
            .reshape(b, wd, hd, c))
    xw = jnp.roll(xw, -step, axis=1)
    # channel branch
    xc = jnp.dot(x, p["fc_c_w"]) + p["fc_c_b"]
    return xh + xw + xc


# ----------------------------------------------------------------------------
# Deterministic parameter init (shapes from HireModule.__init__).
# ----------------------------------------------------------------------------
def init_params(key, c):
    def lin(k, din, dout):
        kw, kb = jax.random.split(k)
        w = jax.random.normal(kw, (din, dout), jnp.float32) / jnp.sqrt(din)
        b = 0.02 * jax.random.normal(kb, (dout,), jnp.float32)
        return w, b

    ks = jax.random.split(key, 5)
    p = {}
    p["fc_h_w1"], p["fc_h_b1"] = lin(ks[0], 2 * c, c // 2)
    p["fc_h_w2"], p["fc_h_b2"] = lin(ks[1], c // 2, 2 * c)
    p["fc_w_w1"], p["fc_w_b1"] = lin(ks[2], 2 * c, c // 2)
    p["fc_w_w2"], p["fc_w_b2"] = lin(ks[3], c // 2, 2 * c)
    p["fc_c_w"], p["fc_c_b"] = lin(ks[4], c, c)
    return p


if __name__ == "__main__":
    B, Wd, Hd, C = 2, 16, 16, 32      # (batch, W, H, hidden_dim), H % 16 == 0, W % 2 == 0

    key = jax.random.PRNGKey(0)
    kx, kp = jax.random.split(key)
    x = jax.random.normal(kx, (B, Wd, Hd, C), dtype=jnp.float32)
    params = init_params(kp, C)

    ref = hire_module_ref(x, params)

    # Default (bf16 MXU operands, per perf review): tolerance reflects bf16
    # operand rounding only — a structural bug would produce O(1) errors.
    out = jax.block_until_ready(jax.jit(hire_module_pallas)(x, params))
    assert out.shape == (B, Wd, Hd, C)
    err_bf16 = float(jnp.max(jnp.abs(out - ref)))
    if not (err_bf16 < 1e-1):
        raise SystemExit(f"bf16 path mismatch vs reference: max abs err = {err_bf16}")

    # f32-operand path: tight check of the roll / group / MLP plumbing.
    fwd_f32 = jax.jit(functools.partial(hire_module_pallas, matmul_dtype=jnp.float32))
    out32 = jax.block_until_ready(fwd_f32(x, params))
    err_f32 = float(jnp.max(jnp.abs(out32 - ref)))
    if not (err_f32 < 1e-2):
        raise SystemExit(f"f32 path mismatch vs reference: max abs err = {err_f32}")

    print("KERNEL_OK")
</pallas_src>

<mosaic_0001>
module attributes {stable_mosaic.version = 11 : i64} {
  func.func @_hire_kernel(%arg0: i32, %arg1: memref<2x16x16x32xf32, #tpu.memory_space<vmem>>, %arg2: memref<64x16xbf16, #tpu.memory_space<vmem>>, %arg3: memref<1x16xf32, #tpu.memory_space<vmem>>, %arg4: memref<16x64xbf16, #tpu.memory_space<vmem>>, %arg5: memref<1x64xf32, #tpu.memory_space<vmem>>, %arg6: memref<64x16xbf16, #tpu.memory_space<vmem>>, %arg7: memref<1x16xf32, #tpu.memory_space<vmem>>, %arg8: memref<16x64xbf16, #tpu.memory_space<vmem>>, %arg9: memref<1x64xf32, #tpu.memory_space<vmem>>, %arg10: memref<32x32xbf16, #tpu.memory_space<vmem>>, %arg11: memref<1x32xf32, #tpu.memory_space<vmem>>, %arg12: memref<2x16x16x32xf32, #tpu.memory_space<vmem>>) attributes {dimension_semantics = [#tpu.dimension_semantics<parallel>], iteration_bounds = array<i64: 1>, scalar_prefetch = 0 : i64, scratch_operands = 0 : i64, tpu.core_type = #tpu.core_type<tc>, window_params = [{transform_indices = @transform_0, window_bounds = array<i64: 2, 16, 16, 32>}, {pipeline_mode = #tpu.pipeline_mode<synchronous>, transform_indices = @transform_1, window_bounds = array<i64: 64, 16>}, {pipeline_mode = #tpu.pipeline_mode<synchronous>, transform_indices = @transform_2, window_bounds = array<i64: 1, 16>}, {pipeline_mode = #tpu.pipeline_mode<synchronous>, transform_indices = @transform_3, window_bounds = array<i64: 16, 64>}, {pipeline_mode = #tpu.pipeline_mode<synchronous>, transform_indices = @transform_4, window_bounds = array<i64: 1, 64>}, {pipeline_mode = #tpu.pipeline_mode<synchronous>, transform_indices = @transform_5, window_bounds = array<i64: 64, 16>}, {pipeline_mode = #tpu.pipeline_mode<synchronous>, transform_indices = @transform_6, window_bounds = array<i64: 1, 16>}, {pipeline_mode = #tpu.pipeline_mode<synchronous>, transform_indices = @transform_7, window_bounds = array<i64: 16, 64>}, {pipeline_mode = #tpu.pipeline_mode<synchronous>, transform_indices = @transform_8, window_bounds = array<i64: 1, 64>}, {pipeline_mode = #tpu.pipeline_mode<synchronous>, transform_indices = @transform_9, window_bounds = array<i64: 32, 32>}, {pipeline_mode = #tpu.pipeline_mode<synchronous>, transform_indices = @transform_10, window_bounds = array<i64: 1, 32>}, {transform_indices = @transform_11, window_bounds = array<i64: 2, 16, 16, 32>}]} {
    %c0 = arith.constant 0 : index
    %c0_0 = arith.constant 0 : index
    %c0_1 = arith.constant 0 : index
    %c0_2 = arith.constant 0 : index
    %0 = vector.load %arg1[%c0, %c0_0, %c0_1, %c0_2] : memref<2x16x16x32xf32, #tpu.memory_space<vmem>>, vector<2x16x16x32xf32>
    %1 = vector.shape_cast %0 : vector<2x16x16x32xf32> to vector<512x32xf32>
    %2 = arith.truncf %1 : vector<512x32xf32> to vector<512x32xbf16>
    %c0_3 = arith.constant 0 : index
    %c0_4 = arith.constant 0 : index
    %3 = vector.load %arg10[%c0_3, %c0_4] : memref<32x32xbf16, #tpu.memory_space<vmem>>, vector<32x32xbf16>
    %cst = arith.constant dense<0.000000e+00> : vector<512x32xf32>
    %4 = tpu.matmul %2, %3, %cst {dimension_numbers = #tpu.dot_dimension_numbers<[1], [0], [0], [1], [0, 0, 1, 1], [], []>} : vector<512x32xbf16>, vector<32x32xbf16>, vector<512x32xf32> -> vector<512x32xf32>
    %c0_5 = arith.constant 0 : index
    %c0_6 = arith.constant 0 : index
    %5 = vector.load %arg11[%c0_5, %c0_6] : memref<1x32xf32, #tpu.memory_space<vmem>>, vector<1x32xf32>
    %6 = vector.broadcast %5 : vector<1x32xf32> to vector<512x32xf32>
    %7 = arith.addf %4, %6 : vector<512x32xf32>
    %8 = vector.shape_cast %7 : vector<512x32xf32> to vector<2x16x16x32xf32>
    %9 = vector.extract_strided_slice %0 {offsets = [0, 0, 15, 0], sizes = [2, 16, 1, 32], strides = [1, 1, 1, 1]} : vector<2x16x16x32xf32> to vector<2x16x1x32xf32>
    %10 = vector.extract_strided_slice %0 {offsets = [0, 0, 0, 0], sizes = [2, 16, 15, 32], strides = [1, 1, 1, 1]} : vector<2x16x16x32xf32> to vector<2x16x15x32xf32>
    %11 = tpu.concatenate %9, %10 in 2 : vector<2x16x1x32xf32>, vector<2x16x15x32xf32> -> vector<2x16x16x32xf32>
    %12 = vector.extract_strided_slice %11 {offsets = [0, 0, 0, 0], sizes = [2, 16, 8, 32], strides = [1, 1, 1, 1]} : vector<2x16x16x32xf32> to vector<2x16x8x32xf32>
    %13 = vector.extract_strided_slice %11 {offsets = [0, 0, 8, 0], sizes = [2, 16, 8, 32], strides = [1, 1, 1, 1]} : vector<2x16x16x32xf32> to vector<2x16x8x32xf32>
    %14 = tpu.concatenate %12, %13 in 3 : vector<2x16x8x32xf32>, vector<2x16x8x32xf32> -> vector<2x16x8x64xf32>
    %15 = vector.shape_cast %14 : vector<2x16x8x64xf32> to vector<256x64xf32>
    %16 = arith.truncf %15 : vector<256x64xf32> to vector<256x64xbf16>
    %c0_7 = arith.constant 0 : index
    %c0_8 = arith.constant 0 : index
    %17 = vector.load %arg2[%c0_7, %c0_8] : memref<64x16xbf16, #tpu.memory_space<vmem>>, vector<64x16xbf16>
    %cst_9 = arith.constant dense<0.000000e+00> : vector<256x16xf32>
    %18 = tpu.matmul %16, %17, %cst_9 {dimension_numbers = #tpu.dot_dimension_numbers<[1], [0], [0], [1], [0, 0, 1, 1], [], []>} : vector<256x64xbf16>, vector<64x16xbf16>, vector<256x16xf32> -> vector<256x16xf32>
    %c0_10 = arith.constant 0 : index
    %c0_11 = arith.constant 0 : index
    %19 = vector.load %arg3[%c0_10, %c0_11] : memref<1x16xf32, #tpu.memory_space<vmem>>, vector<1x16xf32>
    %20 = vector.broadcast %19 : vector<1x16xf32> to vector<256x16xf32>
    %21 = arith.addf %18, %20 : vector<256x16xf32>
    %cst_12 = arith.constant 5.000000e-01 : f32
    %22 = vector.broadcast %cst_12 : f32 to vector<256x16xf32>
    %23 = arith.mulf %22, %21 : vector<256x16xf32>
    %cst_13 = arith.constant 0.707106769 : f32
    %24 = vector.broadcast %cst_13 : f32 to vector<256x16xf32>
    %25 = arith.mulf %21, %24 : vector<256x16xf32>
    %26 = math.absf %25 : vector<256x16xf32>
    %cst_14 = arith.constant 0.327591091 : f32
    %27 = vector.broadcast %cst_14 : f32 to vector<256x16xf32>
    %28 = arith.mulf %27, %26 : vector<256x16xf32>
    %cst_15 = arith.constant 1.000000e+00 : f32
    %29 = vector.broadcast %cst_15 : f32 to vector<256x16xf32>
    %30 = arith.addf %29, %28 : vector<256x16xf32>
    %31 = tpu.reciprocal %30 {approx = true} : vector<256x16xf32> -> vector<256x16xf32>
    %cst_16 = arith.constant 1.06140542 : f32
    %32 = vector.broadcast %cst_16 : f32 to vector<256x16xf32>
    %33 = arith.mulf %32, %31 : vector<256x16xf32>
    %cst_17 = arith.constant -1.45315206 : f32
    %34 = vector.broadcast %cst_17 : f32 to vector<256x16xf32>
    %35 = arith.addf %33, %34 : vector<256x16xf32>
    %36 = arith.mulf %35, %31 : vector<256x16xf32>
    %cst_18 = arith.constant 1.42141378 : f32
    %37 = vector.broadcast %cst_18 : f32 to vector<256x16xf32>
    %38 = arith.addf %36, %37 : vector<256x16xf32>
    %39 = arith.mulf %38, %31 : vector<256x16xf32>
    %cst_19 = arith.constant -0.284496725 : f32
    %40 = vector.broadcast %cst_19 : f32 to vector<256x16xf32>
    %41 = arith.addf %39, %40 : vector<256x16xf32>
    %42 = arith.mulf %41, %31 : vector<256x16xf32>
    %cst_20 = arith.constant 0.254829586 : f32
    %43 = vector.broadcast %cst_20 : f32 to vector<256x16xf32>
    %44 = arith.addf %42, %43 : vector<256x16xf32>
    %45 = arith.mulf %44, %31 : vector<256x16xf32>
    %cst_21 = arith.constant 0.000000e+00 : f32
    %46 = vector.broadcast %cst_21 : f32 to vector<256x16xf32>
    %47 = arith.subf %46, %26 : vector<256x16xf32>
    %48 = arith.mulf %47, %26 : vector<256x16xf32>
    %49 = math.exp %48 : vector<256x16xf32>
    %50 = arith.mulf %45, %49 : vector<256x16xf32>
    %cst_22 = arith.constant 1.000000e+00 : f32
    %51 = vector.broadcast %cst_22 : f32 to vector<256x16xf32>
    %52 = arith.subf %51, %50 : vector<256x16xf32>
    %cst_23 = arith.constant 0.000000e+00 : f32
    %53 = vector.broadcast %cst_23 : f32 to vector<256x16xf32>
    %54 = arith.cmpf olt, %25, %53 : vector<256x16xf32>
    %cst_24 = arith.constant 0.000000e+00 : f32
    %55 = vector.broadcast %cst_24 : f32 to vector<256x16xf32>
    %56 = arith.subf %55, %52 : vector<256x16xf32>
    %57 = arith.select %54, %56, %52 : vector<256x16xi1>, vector<256x16xf32>
    %cst_25 = arith.constant 1.000000e+00 : f32
    %58 = vector.broadcast %cst_25 : f32 to vector<256x16xf32>
    %59 = arith.addf %58, %57 : vector<256x16xf32>
    %60 = arith.mulf %23, %59 : vector<256x16xf32>
    %61 = arith.truncf %60 : vector<256x16xf32> to vector<256x16xbf16>
    %c0_26 = arith.constant 0 : index
    %c0_27 = arith.constant 0 : index
    %62 = vector.load %arg4[%c0_26, %c0_27] : memref<16x64xbf16, #tpu.memory_space<vmem>>, vector<16x64xbf16>
    %cst_28 = arith.constant dense<0.000000e+00> : vector<256x64xf32>
    %63 = tpu.matmul %61, %62, %cst_28 {dimension_numbers = #tpu.dot_dimension_numbers<[1], [0], [0], [1], [0, 0, 1, 1], [], []>} : vector<256x16xbf16>, vector<16x64xbf16>, vector<256x64xf32> -> vector<256x64xf32>
    %c0_29 = arith.constant 0 : index
    %c0_30 = arith.constant 0 : index
    %64 = vector.load %arg5[%c0_29, %c0_30] : memref<1x64xf32, #tpu.memory_space<vmem>>, vector<1x64xf32>
    %65 = vector.broadcast %64 : vector<1x64xf32> to vector<256x64xf32>
    %66 = arith.addf %63, %65 : vector<256x64xf32>
    %67 = vector.shape_cast %66 : vector<256x64xf32> to vector<2x16x8x64xf32>
    %68 = vector.extract_strided_slice %67 {offsets = [0, 0, 0, 0], sizes = [2, 16, 8, 32], strides = [1, 1, 1, 1]} : vector<2x16x8x64xf32> to vector<2x16x8x32xf32>
    %69 = vector.extract_strided_slice %67 {offsets = [0, 0, 0, 32], sizes = [2, 16, 8, 32], strides = [1, 1, 1, 1]} : vector<2x16x8x64xf32> to vector<2x16x8x32xf32>
    %70 = tpu.concatenate %68, %69 in 2 : vector<2x16x8x32xf32>, vector<2x16x8x32xf32> -> vector<2x16x16x32xf32>
    %71 = vector.extract_strided_slice %70 {offsets = [0, 0, 1, 0], sizes = [2, 16, 15, 32], strides = [1, 1, 1, 1]} : vector<2x16x16x32xf32> to vector<2x16x15x32xf32>
    %72 = vector.extract_strided_slice %70 {offsets = [0, 0, 0, 0], sizes = [2, 16, 1, 32], strides = [1, 1, 1, 1]} : vector<2x16x16x32xf32> to vector<2x16x1x32xf32>
    %73 = tpu.concatenate %71, %72 in 2 : vector<2x16x15x32xf32>, vector<2x16x1x32xf32> -> vector<2x16x16x32xf32>
    %74 = vector.extract_strided_slice %0 {offsets = [0, 15, 0, 0], sizes = [2, 1, 16, 32], strides = [1, 1, 1, 1]} : vector<2x16x16x32xf32> to vector<2x1x16x32xf32>
    %75 = vector.extract_strided_slice %0 {offsets = [0, 0, 0, 0], sizes = [2, 15, 16, 32], strides = [1, 1, 1, 1]} : vector<2x16x16x32xf32> to vector<2x15x16x32xf32>
    %76 = tpu.concatenate %74, %75 in 1 : vector<2x1x16x32xf32>, vector<2x15x16x32xf32> -> vector<2x16x16x32xf32>
    %77 = vector.extract_strided_slice %76 {offsets = [0, 0, 0, 0], sizes = [2, 8, 16, 32], strides = [1, 1, 1, 1]} : vector<2x16x16x32xf32> to vector<2x8x16x32xf32>
    %78 = vector.extract_strided_slice %76 {offsets = [0, 8, 0, 0], sizes = [2, 8, 16, 32], strides = [1, 1, 1, 1]} : vector<2x16x16x32xf32> to vector<2x8x16x32xf32>
    %79 = tpu.concatenate %77, %78 in 3 : vector<2x8x16x32xf32>, vector<2x8x16x32xf32> -> vector<2x8x16x64xf32>
    %80 = vector.shape_cast %79 : vector<2x8x16x64xf32> to vector<256x64xf32>
    %81 = arith.truncf %80 : vector<256x64xf32> to vector<256x64xbf16>
    %c0_31 = arith.constant 0 : index
    %c0_32 = arith.constant 0 : index
    %82 = vector.load %arg6[%c0_31, %c0_32] : memref<64x16xbf16, #tpu.memory_space<vmem>>, vector<64x16xbf16>
    %cst_33 = arith.constant dense<0.000000e+00> : vector<256x16xf32>
    %83 = tpu.matmul %81, %82, %cst_33 {dimension_numbers = #tpu.dot_dimension_numbers<[1], [0], [0], [1], [0, 0, 1, 1], [], []>} : vector<256x64xbf16>, vector<64x16xbf16>, vector<256x16xf32> -> vector<256x16xf32>
    %c0_34 = arith.constant 0 : index
    %c0_35 = arith.constant 0 : index
    %84 = vector.load %arg7[%c0_34, %c0_35] : memref<1x16xf32, #tpu.memory_space<vmem>>, vector<1x16xf32>
    %85 = vector.broadcast %84 : vector<1x16xf32> to vector<256x16xf32>
    %86 = arith.addf %83, %85 : vector<256x16xf32>
    %cst_36 = arith.constant 5.000000e-01 : f32
    %87 = vector.broadcast %cst_36 : f32 to vector<256x16xf32>
    %88 = arith.mulf %87, %86 : vector<256x16xf32>
    %cst_37 = arith.constant 0.707106769 : f32
    %89 = vector.broadcast %cst_37 : f32 to vector<256x16xf32>
    %90 = arith.mulf %86, %89 : vector<256x16xf32>
    %91 = math.absf %90 : vector<256x16xf32>
    %cst_38 = arith.constant 0.327591091 : f32
    %92 = vector.broadcast %cst_38 : f32 to vector<256x16xf32>
    %93 = arith.mulf %92, %91 : vector<256x16xf32>
    %cst_39 = arith.constant 1.000000e+00 : f32
    %94 = vector.broadcast %cst_39 : f32 to vector<256x16xf32>
    %95 = arith.addf %94, %93 : vector<256x16xf32>
    %96 = tpu.reciprocal %95 {approx = true} : vector<256x16xf32> -> vector<256x16xf32>
    %cst_40 = arith.constant 1.06140542 : f32
    %97 = vector.broadcast %cst_40 : f32 to vector<256x16xf32>
    %98 = arith.mulf %97, %96 : vector<256x16xf32>
    %cst_41 = arith.constant -1.45315206 : f32
    %99 = vector.broadcast %cst_41 : f32 to vector<256x16xf32>
    %100 = arith.addf %98, %99 : vector<256x16xf32>
    %101 = arith.mulf %100, %96 : vector<256x16xf32>
    %cst_42 = arith.constant 1.42141378 : f32
    %102 = vector.broadcast %cst_42 : f32 to vector<256x16xf32>
    %103 = arith.addf %101, %102 : vector<256x16xf32>
    %104 = arith.mulf %103, %96 : vector<256x16xf32>
    %cst_43 = arith.constant -0.284496725 : f32
    %105 = vector.broadcast %cst_43 : f32 to vector<256x16xf32>
    %106 = arith.addf %104, %105 : vector<256x16xf32>
    %107 = arith.mulf %106, %96 : vector<256x16xf32>
    %cst_44 = arith.constant 0.254829586 : f32
    %108 = vector.broadcast %cst_44 : f32 to vector<256x16xf32>
    %109 = arith.addf %107, %108 : vector<256x16xf32>
    %110 = arith.mulf %109, %96 : vector<256x16xf32>
    %cst_45 = arith.constant 0.000000e+00 : f32
    %111 = vector.broadcast %cst_45 : f32 to vector<256x16xf32>
    %112 = arith.subf %111, %91 : vector<256x16xf32>
    %113 = arith.mulf %112, %91 : vector<256x16xf32>
    %114 = math.exp %113 : vector<256x16xf32>
    %115 = arith.mulf %110, %114 : vector<256x16xf32>
    %cst_46 = arith.constant 1.000000e+00 : f32
    %116 = vector.broadcast %cst_46 : f32 to vector<256x16xf32>
    %117 = arith.subf %116, %115 : vector<256x16xf32>
    %cst_47 = arith.constant 0.000000e+00 : f32
    %118 = vector.broadcast %cst_47 : f32 to vector<256x16xf32>
    %119 = arith.cmpf olt, %90, %118 : vector<256x16xf32>
    %cst_48 = arith.constant 0.000000e+00 : f32
    %120 = vector.broadcast %cst_48 : f32 to vector<256x16xf32>
    %121 = arith.subf %120, %117 : vector<256x16xf32>
    %122 = arith.select %119, %121, %117 : vector<256x16xi1>, vector<256x16xf32>
    %cst_49 = arith.constant 1.000000e+00 : f32
    %123 = vector.broadcast %cst_49 : f32 to vector<256x16xf32>
    %124 = arith.addf %123, %122 : vector<256x16xf32>
    %125 = arith.mulf %88, %124 : vector<256x16xf32>
    %126 = arith.truncf %125 : vector<256x16xf32> to vector<256x16xbf16>
    %c0_50 = arith.constant 0 : index
    %c0_51 = arith.constant 0 : index
    %127 = vector.load %arg8[%c0_50, %c0_51] : memref<16x64xbf16, #tpu.memory_space<vmem>>, vector<16x64xbf16>
    %cst_52 = arith.constant dense<0.000000e+00> : vector<256x64xf32>
    %128 = tpu.matmul %126, %127, %cst_52 {dimension_numbers = #tpu.dot_dimension_numbers<[1], [0], [0], [1], [0, 0, 1, 1], [], []>} : vector<256x16xbf16>, vector<16x64xbf16>, vector<256x64xf32> -> vector<256x64xf32>
    %c0_53 = arith.constant 0 : index
    %c0_54 = arith.constant 0 : index
    %129 = vector.load %arg9[%c0_53, %c0_54] : memref<1x64xf32, #tpu.memory_space<vmem>>, vector<1x64xf32>
    %130 = vector.broadcast %129 : vector<1x64xf32> to vector<256x64xf32>
    %131 = arith.addf %128, %130 : vector<256x64xf32>
    %132 = vector.shape_cast %131 : vector<256x64xf32> to vector<2x8x16x64xf32>
    %133 = vector.extract_strided_slice %132 {offsets = [0, 0, 0, 0], sizes = [2, 8, 16, 32], strides = [1, 1, 1, 1]} : vector<2x8x16x64xf32> to vector<2x8x16x32xf32>
    %134 = vector.extract_strided_slice %132 {offsets = [0, 0, 0, 32], sizes = [2, 8, 16, 32], strides = [1, 1, 1, 1]} : vector<2x8x16x64xf32> to vector<2x8x16x32xf32>
    %135 = tpu.concatenate %133, %134 in 1 : vector<2x8x16x32xf32>, vector<2x8x16x32xf32> -> vector<2x16x16x32xf32>
    %136 = vector.extract_strided_slice %135 {offsets = [0, 1, 0, 0], sizes = [2, 15, 16, 32], strides = [1, 1, 1, 1]} : vector<2x16x16x32xf32> to vector<2x15x16x32xf32>
    %137 = vector.extract_strided_slice %135 {offsets = [0, 0, 0, 0], sizes = [2, 1, 16, 32], strides = [1, 1, 1, 1]} : vector<2x16x16x32xf32> to vector<2x1x16x32xf32>
    %138 = tpu.concatenate %136, %137 in 1 : vector<2x15x16x32xf32>, vector<2x1x16x32xf32> -> vector<2x16x16x32xf32>
    %139 = arith.addf %8, %73 : vector<2x16x16x32xf32>
    %140 = arith.addf %139, %138 : vector<2x16x16x32xf32>
    %c0_55 = arith.constant 0 : index
    %c0_56 = arith.constant 0 : index
    %c0_57 = arith.constant 0 : index
    %c0_58 = arith.constant 0 : index
    %141 = vector.load %arg12[%c0_55, %c0_56, %c0_57, %c0_58] : memref<2x16x16x32xf32, #tpu.memory_space<vmem>>, vector<2x16x16x32xf32>
    tpu.vector_store %arg12[%c0_55, %c0_56, %c0_57, %c0_58], %140 {strides = array<i32>} : memref<2x16x16x32xf32, #tpu.memory_space<vmem>>, vector<2x16x16x32xf32>,
    return
  }
  func.func @transform_0(%arg0: i32) -> (i32, i32, i32, i32) {
    %c0_i32 = arith.constant 0 : i32
    %c0_i32_0 = arith.constant 0 : i32
    %c0_i32_1 = arith.constant 0 : i32
    %c0_i32_2 = arith.constant 0 : i32
    return %arg0, %c0_i32, %c0_i32_0, %c0_i32_1 : i32, i32, i32, i32
  }
  func.func @transform_1(%arg0: i32) -> (i32, i32) {
    %c0_i32 = arith.constant 0 : i32
    %c0_i32_0 = arith.constant 0 : i32
    %c0_i32_1 = arith.constant 0 : i32
    return %c0_i32, %c0_i32_0 : i32, i32
  }
  func.func @transform_2(%arg0: i32) -> (i32, i32) {
    %c0_i32 = arith.constant 0 : i32
    %c0_i32_0 = arith.constant 0 : i32
    %c0_i32_1 = arith.constant 0 : i32
    return %c0_i32, %c0_i32_0 : i32, i32
  }
  func.func @transform_3(%arg0: i32) -> (i32, i32) {
    %c0_i32 = arith.constant 0 : i32
    %c0_i32_0 = arith.constant 0 : i32
    %c0_i32_1 = arith.constant 0 : i32
    return %c0_i32, %c0_i32_0 : i32, i32
  }
  func.func @transform_4(%arg0: i32) -> (i32, i32) {
    %c0_i32 = arith.constant 0 : i32
    %c0_i32_0 = arith.constant 0 : i32
    %c0_i32_1 = arith.constant 0 : i32
    return %c0_i32, %c0_i32_0 : i32, i32
  }
  func.func @transform_5(%arg0: i32) -> (i32, i32) {
    %c0_i32 = arith.constant 0 : i32
    %c0_i32_0 = arith.constant 0 : i32
    %c0_i32_1 = arith.constant 0 : i32
    return %c0_i32, %c0_i32_0 : i32, i32
  }
  func.func @transform_6(%arg0: i32) -> (i32, i32) {
    %c0_i32 = arith.constant 0 : i32
    %c0_i32_0 = arith.constant 0 : i32
    %c0_i32_1 = arith.constant 0 : i32
    return %c0_i32, %c0_i32_0 : i32, i32
  }
  func.func @transform_7(%arg0: i32) -> (i32, i32) {
    %c0_i32 = arith.constant 0 : i32
    %c0_i32_0 = arith.constant 0 : i32
    %c0_i32_1 = arith.constant 0 : i32
    return %c0_i32, %c0_i32_0 : i32, i32
  }
  func.func @transform_8(%arg0: i32) -> (i32, i32) {
    %c0_i32 = arith.constant 0 : i32
    %c0_i32_0 = arith.constant 0 : i32
    %c0_i32_1 = arith.constant 0 : i32
    return %c0_i32, %c0_i32_0 : i32, i32
  }
  func.func @transform_9(%arg0: i32) -> (i32, i32) {
    %c0_i32 = arith.constant 0 : i32
    %c0_i32_0 = arith.constant 0 : i32
    %c0_i32_1 = arith.constant 0 : i32
    return %c0_i32, %c0_i32_0 : i32, i32
  }
  func.func @transform_10(%arg0: i32) -> (i32, i32) {
    %c0_i32 = arith.constant 0 : i32
    %c0_i32_0 = arith.constant 0 : i32
    %c0_i32_1 = arith.constant 0 : i32
    return %c0_i32, %c0_i32_0 : i32, i32
  }
  func.func @transform_11(%arg0: i32) -> (i32, i32, i32, i32) {
    %c0_i32 = arith.constant 0 : i32
    %c0_i32_0 = arith.constant 0 : i32
    %c0_i32_1 = arith.constant 0 : i32
    %c0_i32_2 = arith.constant 0 : i32
    return %arg0, %c0_i32, %c0_i32_0, %c0_i32_1 : i32, i32, i32, i32
  }
}

</mosaic_0001>

<bundles_post_ra>
// kernel: hire_module_pallas.1
= control target key start
LH: loop header
LB: loop body
LE: loop exit
PB: predicated region body
PF: predicated region fallthrough
CT: control target
= control target key end

     0   :  { %16 = vsyncpa [#allocation3], 0  ;;  %s9187_s0 = inlined_call_operand.hbm [shape: f32[2,16,16,32], index: 0, kind: input, shape index: {}]   ;;  %s9188_s1 = inlined_call_operand.vmem [shape: bf16[64,16], index: 1, kind: input, shape index: {}]   ;;  %s9189_s2 = inlined_call_operand.vmem [shape: f32[1,16], index: 2, kind: input, shape index: {}]   ;;  %s9190_s3 = inlined_call_operand.vmem [shape: bf16[16,64], index: 3, kind: input, shape index: {}]   ;;  %s9191_s4 = inlined_call_operand.vmem [shape: f32[1,64], index: 4, kind: input, shape index: {}]   ;;  %s9192_s5 = inlined_call_operand.vmem [shape: bf16[64,16], index: 5, kind: input, shape index: {}]   ;;  %s9193_s6 = inlined_call_operand.vmem [shape: f32[1,16], index: 6, kind: input, shape index: {}]   ;;  %s9194_s7 = inlined_call_operand.vmem [shape: bf16[16,64], index: 7, kind: input, shape index: {}]   ;;  %s9195_s8 = inlined_call_operand.vmem [shape: f32[1,64], index: 8, kind: input, shape index: {}]   ;;  %s9196_s9 = inlined_call_operand.vmem [shape: bf16[32,32], index: 9, kind: input, shape index: {}]   ;;  %s9197_s10 = inlined_call_operand.vmem [shape: f32[1,32], index: 10, kind: input, shape index: {}]   ;;  %s9198_s11 = inlined_call_operand.hbm [shape: f32[2,16,16,32], index: 11, kind: output, shape index: {}]  }
   0x1   :  { %17 = vsyncpa [#allocation4], 0  ;;  %s5332_s17 = smov [#allocation2]   ;;  %s5284_s21 = scalar_lea.hbm %s9187_s0, 8192 }
   0x2   :  { %s23_s18 = sshll.u32 %s5332_s17, 4  ;;  %p5285_p0 = scmp.ne.s32.totalorder %s9187_s0, %s5284_s21  ;;  %s24_s18 = int_to_ptr.vmem [resolvable:$true] %s23_s18 }
   0x3   :  { %p5288_p1 = scmp.lt.u32.totalorder %s5284_s21, %s9187_s0 }
   0x5   :  { %p5290_p2 = pnand %p5288_p1, %p5285_p0 }
   0x7   :  { %5293 = shalt.err (!%p5290_p2)
}
   0x8   :  { %s5294_s26 = scalar_lea.vmem %s24_s18, 8192  ;;  %p5299_p4 = scmp.lt.s32.totalorder %s24_s18, %s24_s18 }
   0x9   :  { %p5295_p3 = scmp.ne.s32.totalorder %s24_s18, %s5294_s26  ;;  %p5300_p5 = scmp.lt.s32.totalorder %s5294_s26, %s5294_s26 }
   0xb   :  { %p5301_p6 = por %p5300_p5, %p5299_p4 }
   0xd   :  { %p5302_p7 = pnand %p5301_p6, %p5295_p3 }
   0xf   :  { %5305 = shalt.err (!%p5302_p7)
}
  0x10   :  { %s5333_s27 = smov 128   ;;  %s5334_s28 = smov 8  }
  0x11   :  { %29 = dma.hbm_to_vmem [thread:$0]  %s9187_s0, 8192, %s24_s18, [#allocation3], %s5333_s27, %s5333_s27, %s5334_s28  }
  0x12   :  { %5328 = dma.done.wait [#allocation3], 8192  }
  0x13   :  { %5329 = vsyncadd [#allocation3], 4294959104  ;;  %v5413_v0 = vld [vmem:[#allocation2] sm:$0xff]  ;;  %v5415_v1 = vld [vmem:[#allocation2 + $0x8] sm:$0xff]  ;;  %vm687_vm0 = vcmask 1040384   ;;  %vm173_vm1 = vcmask 261120  }
  0x14   :  { %9340 = vst [vmem:[#allocation8_spill] sm:$0xff] %v5413_v0  ;;  %9341 = vst [vmem:[#allocation9_spill] sm:$0xff] %v5415_v1  ;;  %v5417_v2 = vld [vmem:[#allocation2 + $0x10] sm:$0xff]  ;;  %v5419_v3 = vld [vmem:[#allocation2 + $0x18] sm:$0xff]  ;;  %v9207_v4 = vrot.slane %v5415_v1, 7  ;;  %v9208_v5 = vrot.slane %v5413_v0, 7  ;;  %v118_v9 = vpack.c.bf16 %v5415_v1, %v5413_v0 }
  0x15   :  { %9342 = vst [vmem:[#allocation10_spill] sm:$0xff] %v5417_v2  ;;  %9343 = vst [vmem:[#allocation11_spill] sm:$0xff] %v5419_v3  ;;  %v9206_v6 = vrot.slane %v5417_v2, 7  ;;  %v5424_v7 = vld [vmem:[#allocation2 + $0x40] sm:$0xff]  ;;  %v5426_v8 = vld [vmem:[#allocation2 + $0x48] sm:$0xff]  ;;  %v9203_v10 = vrot.slane %v5419_v3, 7 }
  0x16   :  { %v5431_v11 = vld [vmem:[#allocation2 + $0x50] sm:$0xff]  ;;  %v5433_v12 = vld [vmem:[#allocation2 + $0x58] sm:$0xff]  ;;  %v9231_v13 = vrot.slane %v5426_v8, 7  ;;  %v9232_v14 = vrot.slane %v5424_v7, 7  ;;  %v5437_v15 = vld [vmem:[#allocation2 + $0x20] sm:$0xff]  ;;  %v689_v17 = vsel %vm687_vm0, %v9208_v5, %v9207_v4  ;;  %4629 = vmatprep.mubr.msk.bf16.mxu0 %vm173_vm1, %v118_v9  ;;  %s5335_s0 = smov 32  }
  0x17   :  { %9344 = vst [vmem:[#allocation12_spill] sm:$0xff] %v5437_v15  ;;  %v9229_v18 = vrot.slane %v5433_v12, 7  ;;  %v9230_v19 = vrot.slane %v5431_v11, 7  ;;  %v5448_v20 = vld [vmem:[#allocation2 + $0x28] sm:$0xff]  ;;  %v5450_v21 = vld [vmem:[#allocation2 + $0x30] sm:$0xff]  ;;  %v5452_v22 = vld [vmem:[#allocation2 + $0x38] sm:$0xff]  ;;  %v691_v24 = vsel %vm687_vm0, %v9206_v6, %v9203_v10 }
  0x18   :  { %9345 = vst [vmem:[#allocation13_spill] sm:$0xff] %v5448_v20  ;;  %9346 = vst [vmem:[#allocation14_spill] sm:$0xff] %v5450_v21  ;;  %v9226_v23 = vrot.slane %v5437_v15, 7  ;;  %v697_v25 = vsel %vm687_vm0, %v9232_v14, %v9231_v13  ;;  %v9223_v26 = vrot.slane %v5448_v20, 7  ;;  %v9219_v27 = vrot.slane %v5452_v22, 7  ;;  %v5468_v28 = vld [vmem:[#allocation2 + $0x60] sm:$0xff] }
  0x19   :  { %9347 = vst [vmem:[#allocation15_spill] sm:$0xff] %v5452_v22  ;;  %v5470_v29 = vld [vmem:[#allocation2 + $0x68] sm:$0xff]  ;;  %v5472_v30 = vld [vmem:[#allocation2 + $0x70] sm:$0xff]  ;;  %v4847_v31 = vpack.i.bf16 %v691_v24, %v689_v17  ;;  %v699_v32 = vsel %vm687_vm0, %v9230_v19, %v9229_v18  ;;  %v9220_v33 = vrot.slane %v5450_v21, 7  ;;  %v5480_v34 = vld [vmem:[#allocation2 + $0x78] sm:$0xff]  ;;  %v9214_v41 = vrot.slane %v5468_v28, 7 }
  0x1a   :  { %9348 = vst [vmem:[#allocation16_spill] sm:$0xff] %v5470_v29  ;;  %v9213_v35 = vrot.slane %v5470_v29, 7  ;;  %v5483_v36 = vld [vmem:[#allocation2 + $0x80] sm:$0xff]  ;;  %v5485_v37 = vld [vmem:[#allocation2 + $0x88] sm:$0xff]  ;;  %v4857_v38 = vpack.i.bf16 %v699_v32, %v697_v25  ;;  %v693_v39 = vsel %vm687_vm0, %v9226_v23, %v9223_v26  ;;  %v9209_v40 = vrot.slane %v5480_v34, 7  ;;  %v5494_v42 = vld [vmem:[#allocation2 + $0x90] sm:$0xff] }
  0x1b   :  { %v5496_v43 = vld [vmem:[#allocation2 + $0x98] sm:$0xff]  ;;  %v5498_v44 = vld [vmem:[#allocation2 + $0xa0] sm:$0xff]  ;;  %4848 = vrot.lane.b32.xlu0 %v4847_v31, %s5335_s0  ;;  %v695_v45 = vsel %vm687_vm0, %v9220_v33, %v9219_v27  ;;  %v9212_v46 = vrot.slane %v5472_v30, 7  ;;  %v9199_v47 = vrot.slane %v5485_v37, 7  ;;  %v5509_v49 = vld [vmem:[#allocation2 + $0xa8] sm:$0xff]  ;;  %v9202_v54 = vrot.slane %v5483_v36, 7 }
  0x1c   :  { %v9200_v48 = vrot.slane %v5496_v43, 7  ;;  %v5511_v50 = vld [vmem:[#allocation2 + $0xb0] sm:$0xff]  ;;  %v5513_v51 = vld [vmem:[#allocation2 + $0xb8] sm:$0xff]  ;;  %4858 = vrot.lane.b32.xlu1 %v4857_v38, %s5335_s0  ;;  %v4852_v52 = vpack.i.bf16 %v695_v45, %v693_v39  ;;  %v701_v53 = vsel %vm687_vm0, %v9214_v41, %v9213_v35  ;;  %v9201_v55 = vrot.slane %v5494_v42, 7  ;;  %v5523_v56 = vld [vmem:[#allocation2 + $0xc0] sm:$0xff]  ;;  %s5336_s24 = smov 96  }
  0x1d   :  { %v5525_v57 = vld [vmem:[#allocation2 + $0xc8] sm:$0xff]  ;;  %v5527_v58 = vld [vmem:[#allocation2 + $0xd0] sm:$0xff]  ;;  %v703_v59 = vsel %vm687_vm0, %v9212_v46, %v9209_v40  ;;  %v9204_v60 = vrot.slane %v5509_v49, 7  ;;  %v9210_v61 = vrot.slane %v5513_v51, 7  ;;  %v9205_v62 = vrot.slane %v5498_v44, 7  ;;  %v5537_v63 = vld [vmem:[#allocation2 + $0xd8] sm:$0xff] }
  0x1e   :  { %v5539_v9 = vld [vmem:[#allocation2 + $0xe0] sm:$0xff]  ;;  %v5541_v17 = vld [vmem:[#allocation2 + $0xe8] sm:$0xff]  ;;  %v4862_v24 = vpack.i.bf16 %v703_v59, %v701_v53  ;;  %v705_v25 = vsel %vm687_vm0, %v9202_v54, %v9199_v47  ;;  %v707_v31 = vsel %vm687_vm0, %v9201_v55, %v9200_v48  ;;  %v9211_v32 = vrot.slane %v5511_v50, 7  ;;  %v5554_v38 = vld [vmem:[#allocation2 + $0xf0] sm:$0xff] }
  0x1f   :  { %v5556_v39 = vld [vmem:[#allocation2 + $0xf8] sm:$0xff]  ;;  %v5558_v45 = vld [vmem:[#allocation2 + $0x100] sm:$0xff]  ;;  %4853 = vrot.lane.b32.xlu0 %v4852_v52, %s5335_s0  ;;  %v4867_v53 = vpack.i.bf16 %v707_v31, %v705_v25  ;;  %v709_v59 = vsel %vm687_vm0, %v9205_v62, %v9204_v60  ;;  %v9215_v47 = vrot.slane %v5525_v57, 7  ;;  %v9216_v48 = vrot.slane %v5537_v63, 7  ;;  %v5568_v55 = vld [vmem:[#allocation2 + $0x108] sm:$0xff] }
  0x20   :  { %9349 = vst [vmem:[#allocation17_spill] sm:$0xff] %v5558_v45  ;;  %9350 = vst [vmem:[#allocation18_spill] sm:$0xff] %v5568_v55  ;;  %v5570_v54 = vld [vmem:[#allocation2 + $0x110] sm:$0xff]  ;;  %v5572_v10 = vld [vmem:[#allocation2 + $0x118] sm:$0xff]  ;;  %4863 = vrot.lane.b32.xlu1 %v4862_v24, %s5335_s0  ;;  %v711_v52 = vsel %vm687_vm0, %v9211_v32, %v9210_v61  ;;  %v9218_v25 = vrot.slane %v5523_v56, 7  ;;  %v9217_v31 = vrot.slane %v5527_v58, 7 }
  0x21   :  { %9351 = vst [vmem:[#allocation19_spill] sm:$0xff] %v5570_v54  ;;  %9352 = vst [vmem:[#allocation20_spill] sm:$0xff] %v5572_v10  ;;  %v9221_v60 = vrot.slane %v5541_v17, 7  ;;  %v5007_v62 = vld [vmem:[%s9196_s9] sm:$0xff]   ;;  %v4872_v6 = vpack.i.bf16 %v711_v52, %v709_v59  ;;  %v9224_v4 = vrot.slane %v5556_v39, 7  ;;  %v9222_v24 = vrot.slane %v5539_v9, 7 }
  0x22   :  { %v9225_v5 = vrot.slane %v5554_v38, 7  ;;  %v5589_v40 = vld [vmem:[#allocation2 + $0x120] sm:$0xff]  ;;  %v713_v61 = vsel %vm687_vm0, %v9218_v25, %v9215_v47  ;;  %v715_v59 = vsel %vm687_vm0, %v9217_v31, %v9216_v48  ;;  %v9227_v52 = vrot.slane %v5568_v55, 7  ;;  %4625 = vmatprep.subr.bf16.mxu0 %v5007_v62  ;;  %v5603_v46 = vld [vmem:[#allocation2 + $0x128] sm:$0xff]  ;;  %v5605_v35 = vld [vmem:[#allocation2 + $0x130] sm:$0xff] }
  0x23   :  { %9353 = vst [vmem:[#allocation21_spill] sm:$0xff] %v5589_v40  ;;  %v9233_v32 = vrot.slane %v5572_v10, 7  ;;  %9354 = vst [vmem:[#allocation22_spill] sm:$0xff] %v5603_v46  ;;  %v5607_v41 = vld [vmem:[#allocation2 + $0x138] sm:$0xff]  ;;  %4868 = vrot.lane.b32.xlu0 %v4867_v53, %s5335_s0  ;;  %v4877_v47 = vpack.i.bf16 %v715_v59, %v713_v61  ;;  %v717_v48 = vsel %vm687_vm0, %v9222_v24, %v9221_v60  ;;  %v9228_v25 = vrot.slane %v5558_v45, 7  ;;  %v5621_v27 = vld [vmem:[#allocation2 + $0x140] sm:$0xff] }
  0x24   :  { %9355 = vst [vmem:[#allocation23_spill] sm:$0xff] %v5605_v35  ;;  %9356 = vst [vmem:[#allocation24_spill] sm:$0xff] %v5607_v41  ;;  %v719_v31 = vsel %vm687_vm0, %v9225_v5, %v9224_v4  ;;  %4626 = vmatpush3.bf16.msra.mxu0 %v5007_v62  ;;  %v5623_v33 = vld [vmem:[#allocation2 + $0x148] sm:$0xff]  ;;  %v5625_v61 = vld [vmem:[#allocation2 + $0x150] sm:$0xff]  ;;  %4873 = vrot.lane.b32.xlu1 %v4872_v6, %s5335_s0  ;;  %v9234_v59 = vrot.slane %v5570_v54, 7  ;;  %v9237_v60 = vrot.slane %v5603_v46, 7 }
  0x25   :  { %9357 = vst [vmem:[#allocation25_spill] sm:$0xff] %v5621_v27  ;;  %9358 = vst [vmem:[#allocation26_spill] sm:$0xff] %v5623_v33  ;;  %v4882_v53 = vpack.i.bf16 %v719_v31, %v717_v48  ;;  %v9235_v24 = vrot.slane %v5607_v41, 7  ;;  %v5631_v26 = vld [vmem:[#allocation2 + $0x158] sm:$0xff]  ;;  %v721_v62 = vsel %vm687_vm0, %v9228_v25, %v9227_v52  ;;  %v9238_v4 = vrot.slane %v5589_v40, 7  ;;  %v5008_v48 = vld [vmem:[%s9196_s9 + $0x8] sm:$0xff]  }
  0x26   :  { %9359 = vst [vmem:[#allocation27_spill] sm:$0xff] %v5625_v61  ;;  %9360 = vst [vmem:[#allocation28_spill] sm:$0xff] %v5631_v26  ;;  %v9236_v5 = vrot.slane %v5605_v35, 7  ;;  %v9241_v6 = vrot.slane %v5623_v33, 7  ;;  %v723_v31 = vsel %vm687_vm0, %v9234_v59, %v9233_v32  ;;  %v9242_v52 = vrot.slane %v5621_v27, 7  ;;  %v5652_v18 = vld [vmem:[#allocation2 + $0x160] sm:$0xff]  ;;  %4627 = vmatprep.subr.bf16.mxu0 %v5008_v48 }
  0x27   :  { %9361 = vst [vmem:[#allocation29_spill] sm:$0xff] %v5652_v18  ;;  %v5654_v19 = vld [vmem:[#allocation2 + $0x168] sm:$0xff]  ;;  %v5656_v13 = vld [vmem:[#allocation2 + $0x170] sm:$0xff]  ;;  %4878 = vrot.lane.b32.xlu0 %v4877_v47, %s5335_s0  ;;  %v4887_v14 = vpack.i.bf16 %v723_v31, %v721_v62  ;;  %v725_v32 = vsel %vm687_vm0, %v9238_v4, %v9237_v60  ;;  %v5669_v16 = vld [vmem:[#allocation2 + $0x178] sm:$0xff]  ;;  %v9371_v35 = vpack.c.bf16 %v5419_v3, %v5417_v2  ;;  %vm999_vm2 = vcmask 523264  }
  0x28   :  { %9362 = vst [vmem:[#allocation30_spill] sm:$0xff] %v5654_v19  ;;  %v727_v59 = vsel %vm687_vm0, %v9236_v5, %v9235_v24  ;;  %v5672_v23 = vld [vmem:[#allocation2 + $0x180] sm:$0xff]  ;;  %v5674_v47 = vld [vmem:[#allocation2 + $0x188] sm:$0xff]  ;;  %4883 = vrot.lane.b32.xlu1 %v4882_v53, %s5335_s0  ;;  %v729_v31 = vsel %vm687_vm0, %v9242_v52, %v9241_v6  ;;  %v9363_v24 = vrot.slane %v5631_v26, 7  ;;  %v9364_v5 = vrot.slane %v5625_v61, 7  ;;  %4628 = vmatpush3.bf16.msra.mxu0 %v5008_v48  ;;  %v5688_v25 = vld [vmem:[#allocation2 + $0x190] sm:$0xff] }
  0x29   :  { %v4892_v62 = vpack.i.bf16 %v727_v59, %v725_v32  ;;  %v5690_v41 = vld [vmem:[#allocation2 + $0x198] sm:$0xff]  ;;  %v5692_v32 = vld [vmem:[#allocation2 + $0x1a0] sm:$0xff]  ;;  %v5697_v26 = vld [vmem:[#allocation2 + $0x1a8] sm:$0xff]  ;;  %v9367_v52 = vrot.slane %v5654_v19, 7  ;;  %v9368_v6 = vrot.slane %v5652_v18, 7  ;;  %v9370_v48 = vrot.slane %v5656_v13, 7 }
  0x2a   :  { %v731_v60 = vsel %vm687_vm0, %v9364_v5, %v9363_v24  ;;  %9365 = vst [vmem:[#allocation31_spill] sm:$0xff] %v5697_v26  ;;  %v5699_v61 = vld [vmem:[#allocation2 + $0x1b0] sm:$0xff]  ;;  %v5701_v5 = vld [vmem:[#allocation2 + $0x1b8] sm:$0xff]  ;;  %v5709_v59 = vld [vmem:[#allocation2 + $0x1c8] sm:$0xff]  ;;  %v9369_v24 = vrot.slane %v5669_v16, 7  ;;  %v9374_v27 = vrot.slane %v5690_v41, 7 }
  0x2b   :  { %v4897_v53 = vpack.i.bf16 %v731_v60, %v729_v31  ;;  %9366 = vst [vmem:[#allocation32_spill] sm:$0xff] %v5701_v5  ;;  %v5707_v31 = vld [vmem:[#allocation2 + $0x1c0] sm:$0xff]  ;;  %4888 = vrot.lane.b32.xlu0 %v4887_v14, %s5335_s0  ;;  %v733_v33 = vsel %vm687_vm0, %v9368_v6, %v9367_v52  ;;  %4630 = vmatmul.mubr.msk.bf16.vlgmr.msra.gmra.mrb[0].mxu0 %vm173_vm1, %v9371_v35  ;;  %v5728_v14 = vld [vmem:[#allocation2 + $0x1d0] sm:$0xff]  ;;  %v5730_v19 = vld [vmem:[#allocation2 + $0x1d8] sm:$0xff]  ;;  %v9375_v18 = vrot.slane %v5688_v25, 7  ;;  %v9273_v46 = vrot.slane %v5699_v61, 7 }
  0x2c   :  { %v735_v4 = vsel %vm687_vm0, %v9370_v48, %v9369_v24  ;;  %v5732_v52 = vld [vmem:[#allocation2 + $0x1e0] sm:$0xff]  ;;  %4893 = vrot.lane.b32.xlu1 %v4892_v62, %s5335_s0  ;;  %v9372_v24 = vrot.slane %v5674_v47, 7  ;;  %v9373_v48 = vrot.slane %v5672_v23, 7  ;;  %v5746_v40 = vld [vmem:[#allocation2 + $0x1e8] sm:$0xff]  ;;  %v5748_v10 = vld [vmem:[#allocation2 + $0x1f0] sm:$0xff]  ;;  %v9276_v55 = vrot.slane %v5707_v31, 7 }
  0x2d   :  { %v4902_v6 = vpack.i.bf16 %v735_v4, %v733_v33  ;;  %v739_v35 = vsel %vm687_vm0, %v9375_v18, %v9374_v27  ;;  %9376 = vst [vmem:[#allocation33_spill] sm:$0xff] %v5746_v40  ;;  %9377 = vst [vmem:[#allocation34_spill] sm:$0xff] %v5748_v10  ;;  %v5750_v62 = vld [vmem:[#allocation2 + $0x1f8] sm:$0xff]  ;;  %v9379_v4 = vrot.slane %v5697_v26, 7  ;;  %v9380_v33 = vrot.slane %v5692_v32, 7 }
  0x2e   :  { %v737_v60 = vsel %vm687_vm0, %v9373_v48, %v9372_v24  ;;  %9378 = vst [vmem:[#allocation35_spill] sm:$0xff] %v5750_v62  ;;  %v9381_v18 = vrot.slane %v5701_v5, 7  ;;  %v9275_v54 = vrot.slane %v5750_v62, 7  ;;  %v9274_v48 = vrot.slane %v5732_v52, 7 }
  0x2f   :  { %v741_v24 = vsel %vm687_vm0, %v9380_v33, %v9379_v4  ;;  %v5009_v4 = vld [vmem:[%s9192_s5] sm:$0xff]   ;;  %4898 = vrot.lane.b32.xlu0 %v4897_v53, %s5335_s0  ;;  %v4907_v33 = vpack.i.bf16 %v739_v35, %v737_v60  ;;  %v9383_v45 = vrot.slane %v5730_v19, 7  ;;  %v9384_v53 = vrot.slane %v5728_v14, 7 }
  0x30   :  { %v743_v27 = vsel %vm687_vm0, %v9273_v46, %v9381_v18  ;;  %4903 = vrot.lane.b32.xlu1 %v4902_v6, %s5335_s0  ;;  %v9382_v46 = vrot.slane %v5709_v59, 7  ;;  %v120_v35 = vpack.c.bf16 %v5448_v20, %v5437_v15  ;;  %v9385_v5 = vrot.slane %v5746_v40, 7  ;;  %4767 = vmatprep.subr.bf16.mxu0 %v5009_v4 }
  0x31   :  { %v4912_v18 = vpack.i.bf16 %v743_v27, %v741_v24  ;;  %v747_v60 = vsel %vm687_vm0, %v9384_v53, %v9383_v45  ;;  %v9386_v24 = vrot.slane %v5748_v10, 7  ;;  %v121_v45 = vpack.c.bf16 %v5452_v22, %v5450_v21  ;;  %v5010_v53 = vld [vmem:[%s9192_s5 + $0x8] sm:$0xff]   ;;  %4768 = vmatpush3.bf16.msra.mxu0 %v5009_v4 }
  0x32   :  { %v745_v26 = vsel %vm687_vm0, %v9276_v55, %v9382_v46  ;;  %v749_v6 = vsel %vm687_vm0, %v9274_v48, %v9385_v5  ;;  %4633 = vmatprep.mubr.msk.bf16.mxu0 %vm173_vm1, %v120_v35  ;;  %v122_v27 = vpack.c.bf16 %v5426_v8, %v5424_v7  ;;  %v5011_v35 = vld [vmem:[%s9188_s1] sm:$0xff]   ;;  %4769 = vmatprep.subr.bf16.mxu0 %v5010_v53  ;;  %v9387_v62 = vrot.slane %v5424_v7, 7  ;;  %v5013_v7 = vld [vmem:[%s9188_s1 + $0x10] sm:$0xff]  }
  0x33   :  { %v751_v46 = vsel %vm687_vm0, %v9386_v24, %v9275_v54  ;;  %4908 = vrot.lane.b32.xlu0 %v4907_v33, %s5335_s0  ;;  %v4917_v5 = vpack.i.bf16 %v747_v60, %v745_v26  ;;  %4634 = vmatmul.mubr.msk.bf16.gmra.mrb[4].mxu0 %vm173_vm1, %v121_v45  ;;  %v4927_v24 = vpack.i.bf16 %v5480_v34, %v5472_v30  ;;  %v9390_v40 = vrot.slane %v5433_v12, 7 }
  0x34   :  { %4913 = vrot.lane.b32.xlu1 %v4912_v18, %s5335_s0  ;;  %v4922_v48 = vpack.i.bf16 %v751_v46, %v749_v6  ;;  %4637 = vmatprep.mubr.msk.bf16.mxu0 %vm173_vm1, %v122_v27  ;;  %v4932_v26 = vpack.i.bf16 %v5485_v37, %v5483_v36  ;;  %v123_v33 = vpack.c.bf16 %v5433_v12, %v5431_v11  ;;  %v9388_v27 = vrot.slane %v5426_v8, 7 }
  0x35   :  { %v4937_v4 = vpack.i.bf16 %v5496_v43, %v5494_v42  ;;  %v4942_v18 = vpack.i.bf16 %v5509_v49, %v5498_v44  ;;  %v4947_v60 = vpack.i.bf16 %v5513_v51, %v5511_v50  ;;  %v124_v6 = vpack.c.bf16 %v5470_v29, %v5468_v28  ;;  %4770 = vmatpush3.bf16.msra.mxu0 %v5010_v53  ;;  %v5015_v53 = vld [vmem:[%s9192_s5 + $0x10] sm:$0xff]  }
  0x36   :  { %v4952_v46 = vpack.i.bf16 %v5525_v57, %v5523_v56  ;;  %v125_v45 = vpack.c.bf16 %v5480_v34, %v5472_v30  ;;  %4693 = vmatprep.subr.bf16.mxu1 %v5011_v35  ;;  %v5852_v10 = vsel %vm687_vm0, %v9388_v27, %v9387_v62  ;;  %v9391_v8 = vrot.slane %v5437_v15, 7  ;;  %4771 = vmatprep.subr.bf16.mxu0 %v5015_v53  ;;  %v9434_v15 = vld [vmem:[#allocation18_spill] sm:$0xff] }
  0x37   :  { %4918 = vrot.lane.b32.xlu0 %v4917_v5, %s5335_s0  ;;  %v126_v5 = vpack.c.bf16 %v5485_v37, %v5483_v36  ;;  %4694 = vmatpush3.bf16.msra.mxu1 %v5011_v35  ;;  %v9392_v62 = vrot.slane %v5448_v20, 7 }
  0x38   :  { %4923 = vrot.lane.b32.xlu1 %v4922_v48, %s5335_s0  ;;  %v5012_v48 = vld [vmem:[%s9188_s1 + $0x8] sm:$0xff]  }
  0x39   :  { %v5871_v27 = vsel %vm687_vm0, %v9392_v62, %v9391_v8  ;;  %4695 = vmatprep.subr.bf16.mxu1 %v5012_v48  ;;  %v9399_v8 = vrot.slane %v5472_v30, 7  ;;  %v9400_v62 = vrot.slane %v5480_v34, 7  ;;  %v9416_v34 = vrot.slane %v5513_v51, 7  ;;  %4772 = vmatpush3.bf16.msra.mxu0 %v5015_v53  ;;  %v9437_v53 = vld [vmem:[#allocation19_spill] sm:$0xff] }
  0x3a   :  { %9393 = vst [vmem:[#allocation36_spill] sm:$0xff] %v5871_v27 }
  0x3b   :  { %4928 = vrot.lane.b32.xlu0 %v4927_v24, %s5335_s0  ;;  %4638 = vmatmul.mubr.msk.bf16.gmra.mrb[8].mxu0 %vm173_vm1, %v123_v33  ;;  %v9389_v24 = vrot.slane %v5431_v11, 7  ;;  %v9395_v11 = vrot.slane %v5452_v22, 7  ;;  %v9397_v33 = vrot.slane %v5470_v29, 7  ;;  %v5893_v55 = vsel %vm687_vm0, %v9400_v62, %v9399_v8  ;;  %v5014_v29 = vld [vmem:[%s9188_s1 + $0x18] sm:$0xff]   ;;  %v9431_v22 = vld [vmem:[#allocation32_spill] sm:$0xff] }
  0x3c   :  { %4933 = vrot.lane.b32.xlu1 %v4932_v26, %s5335_s0  ;;  %v9394_v26 = vrot.slane %v5450_v21, 7  ;;  %4641 = vmatprep.mubr.msk.bf16.mxu0 %vm173_vm1, %v124_v6  ;;  %9401 = vst [vmem:[#allocation38_spill] sm:$0xff] %v5893_v55  ;;  %v9402_v6 = vrot.slane %v5413_v0, 7  ;;  %v9406_v8 = vrot.slane %v5483_v36, 7  ;;  %v9407_v62 = vrot.slane %v5485_v37, 7  ;;  %v9439_v0 = vld [vmem:[#allocation20_spill] sm:$0xff] }
  0x3d   :  { %v5861_v35 = vsel %vm687_vm0, %v9390_v40, %v9389_v24  ;;  %v9396_v40 = vrot.slane %v5468_v28, 7  ;;  %4696 = vmatpush3.bf16.msra.mxu1 %v5012_v48  ;;  %v9412_v36 = vrot.slane %v5498_v44, 7  ;;  %v9413_v37 = vrot.slane %v5509_v49, 7 }
  0x3e   :  { %v5878_v12 = vsel %vm687_vm0, %v9395_v11, %v9394_v26  ;;  %v9403_v11 = vrot.slane %v5415_v1, 7  ;;  %v5918_v26 = vsel %vm687_vm0, %v9407_v62, %v9406_v8  ;;  %v9415_v62 = vrot.slane %v5511_v50, 7  ;;  %4697 = vmatprep.subr.bf16.mxu1 %v5013_v7 }
  0x3f   :  { %v5886_v24 = vsel %vm687_vm0, %v9397_v33, %v9396_v40  ;;  %v9404_v40 = vrot.slane %v5417_v2, 7  ;;  %v9405_v33 = vrot.slane %v5419_v3, 7  ;;  %9408 = vst [vmem:[#allocation39_spill] sm:$0xff] %v5918_v26  ;;  %4938 = vrot.lane.b32.xlu0 %v4937_v4, %s5335_s0  ;;  %v5936_v8 = vsel %vm687_vm0, %v9413_v37, %v9412_v36 }
  0x40   :  { %9398 = vst [vmem:[#allocation37_spill] sm:$0xff] %v5886_v24  ;;  %v5902_v28 = vsel %vm687_vm0, %v9403_v11, %v9402_v6  ;;  %v5016_v6 = vld [vmem:[%s9192_s5 + $0x18] sm:$0xff]   ;;  %v9409_v11 = vrot.slane %v5494_v42, 7  ;;  %9414 = vst [vmem:[#allocation41_spill] sm:$0xff] %v5936_v8  ;;  %v5943_v4 = vsel %vm687_vm0, %v9416_v34, %v9415_v62  ;;  %4943 = vrot.lane.b32.xlu1 %v4942_v18, %s5335_s0  ;;  %v9418_v48 = vrot.slane %v5523_v56, 7 }
  0x41   :  { %v5909_v30 = vsel %vm687_vm0, %v9405_v33, %v9404_v40  ;;  %v9410_v40 = vrot.slane %v5496_v43, 7  ;;  %9417 = vst [vmem:[#allocation42_spill] sm:$0xff] %v5943_v4  ;;  %v9421_v36 = vrot.slane %v5527_v58, 7  ;;  %v9422_v37 = vrot.slane %v5537_v63, 7  ;;  %v9449_v4 = vld [vmem:[#allocation24_spill] sm:$0xff]  ;;  %4773 = vmatprep.subr.bf16.mxu0 %v5016_v6  ;;  %4698 = vmatpush3.bf16.msra.mxu1 %v5013_v7 }
  0x42   :  { %v9424_v34 = vrot.slane %v5539_v9, 7  ;;  %v9425_v62 = vrot.slane %v5541_v17, 7  ;;  %v9435_v2 = vrot.slane %v9434_v15, 7  ;;  %v9438_v1 = vrot.slane %v9437_v53, 7  ;;  %4699 = vmatprep.subr.bf16.mxu1 %v5014_v29  ;;  %4774 = vmatpush3.bf16.msra.mxu0 %v5016_v6 }
  0x43   :  { %v5929_v33 = vsel %vm687_vm0, %v9410_v40, %v9409_v11  ;;  %v9419_v11 = vrot.slane %v5525_v57, 7  ;;  %v5958_v54 = vsel %vm687_vm0, %v9422_v37, %v9421_v36  ;;  %v9430_v36 = vld [vmem:[#allocation31_spill] sm:$0xff]  ;;  %v9444_v37 = vld [vmem:[#allocation22_spill] sm:$0xff]  ;;  %v9450_v26 = vrot.slane %v9449_v4, 7  ;;  %4948 = vrot.lane.b32.xlu0 %v4947_v60, %s5335_s0  ;;  %4642 = vmatmul.mubr.msk.bf16.gmra.mrb[12].mxu0 %vm173_vm1, %v125_v45 }
  0x44   :  { %9411 = vst [vmem:[#allocation40_spill] sm:$0xff] %v5929_v33  ;;  %9423 = vst [vmem:[#allocation44_spill] sm:$0xff] %v5958_v54  ;;  %v5965_v18 = vsel %vm687_vm0, %v9425_v62, %v9424_v34  ;;  %v9432_v34 = vld [vmem:[#allocation17_spill] sm:$0xff]  ;;  %v9447_v54 = vld [vmem:[#allocation23_spill] sm:$0xff]  ;;  %4953 = vrot.lane.b32.xlu1 %v4952_v46, %s5335_s0  ;;  %4645 = vmatprep.mubr.msk.bf16.mxu0 %vm173_vm1, %v126_v5  ;;  %v9473_v46 = vrot.slane %v5688_v25, 7  ;;  %v9474_v45 = vrot.slane %v5690_v41, 7 }
  0x45   :  { %v5951_v40 = vsel %vm687_vm0, %v9419_v11, %v9418_v48  ;;  %9426 = vst [vmem:[#allocation45_spill] sm:$0xff] %v5965_v18  ;;  %v9427_v48 = vrot.slane %v5554_v38, 7  ;;  %v9428_v11 = vrot.slane %v5556_v39, 7  ;;  %v9433_v62 = vrot.slane %v9432_v34, 7  ;;  %v9454_v33 = vld [vmem:[#allocation26_spill] sm:$0xff]  ;;  %4700 = vmatpush3.bf16.msra.mxu1 %v5014_v29 }
  0x46   :  { %9420 = vst [vmem:[#allocation43_spill] sm:$0xff] %v5951_v40  ;;  %v9440_v18 = vrot.slane %v9439_v0, 7  ;;  %v9445_v40 = vrot.slane %v9444_v37, 7  ;;  %v9448_v8 = vrot.slane %v9447_v54, 7  ;;  %v9455_v24 = vrot.slane %v9454_v33, 7 }
  0x47   :  { %v5975_v21 = vsel %vm687_vm0, %v9428_v11, %v9427_v48  ;;  %v5986_v3 = vsel %vm687_vm0, %v9435_v2, %v9433_v62  ;;  %v9442_v11 = vld [vmem:[#allocation21_spill] sm:$0xff]  ;;  %v9477_v7 = vrot.slane %v9430_v36, 7  ;;  %v127_v6 = vpack.c.bf16 %v5496_v43, %v5494_v42 }
  0x48   :  { %9429 = vst [vmem:[#allocation46_spill] sm:$0xff] %v5975_v21  ;;  %9436 = vst [vmem:[#allocation31_spill] sm:$0xff] %v5986_v3  ;;  %v5993_v48 = vsel %vm687_vm0, %v9440_v18, %v9438_v1  ;;  %v9443_v21 = vrot.slane %v9442_v11, 7  ;;  %v6007_v2 = vsel %vm687_vm0, %v9450_v26, %v9448_v8  ;;  %v9452_v62 = vld [vmem:[#allocation25_spill] sm:$0xff]  ;;  %v9459_v18 = vld [vmem:[#allocation28_spill] sm:$0xff]  ;;  %v4977_v29 = vpack.i.bf16 %v5690_v41, %v5688_v25 }
  0x49   :  { %9441 = vst [vmem:[#allocation32_spill] sm:$0xff] %v5993_v48  ;;  %9451 = vst [vmem:[#allocation18_spill] sm:$0xff] %v6007_v2  ;;  %v9453_v3 = vrot.slane %v9452_v62, 7  ;;  %v9462_v26 = vld [vmem:[#allocation29_spill] sm:$0xff]  ;;  %v9464_v2 = vld [vmem:[#allocation30_spill] sm:$0xff]  ;;  %v4987_v42 = vpack.i.bf16 %v9431_v22, %v5699_v61  ;;  %v129_v43 = vpack.c.bf16 %v5513_v51, %v5511_v50  ;;  %v131_v51 = vpack.c.bf16 %v5537_v63, %v5527_v58 }
  0x4a   :  { %v6000_v20 = vsel %vm687_vm0, %v9445_v40, %v9443_v21  ;;  %v9457_v21 = vld [vmem:[#allocation27_spill] sm:$0xff]  ;;  %v9463_v8 = vrot.slane %v9462_v26, 7  ;;  %v9465_v55 = vrot.slane %v9464_v2, 7 }
  0x4b   :  { %9446 = vst [vmem:[#allocation17_spill] sm:$0xff] %v6000_v20  ;;  %v6014_v1 = vsel %vm687_vm0, %v9455_v24, %v9453_v3  ;;  %v9458_v40 = vrot.slane %v9457_v21, 7  ;;  %v9460_v20 = vrot.slane %v9459_v18, 7  ;;  %v9467_v3 = vrot.slane %v5656_v13, 7  ;;  %4646 = vmatmul.mubr.msk.bf16.gmra.mrb[16].mxu0 %vm173_vm1, %v127_v6 }
  0x4c   :  { %9456 = vst [vmem:[#allocation19_spill] sm:$0xff] %v6014_v1  ;;  %v6029_v27 = vsel %vm687_vm0, %v9465_v55, %v9463_v8  ;;  %v9468_v24 = vrot.slane %v5669_v16, 7  ;;  %v9470_v55 = vrot.slane %v5672_v23, 7  ;;  %v9491_v1 = vld [vmem:[#allocation35_spill] sm:$0xff]  ;;  %v140_v6 = vpack.c.bf16 %v9464_v2, %v9462_v26 }
  0x4d   :  { %v6022_v48 = vsel %vm687_vm0, %v9460_v20, %v9458_v40  ;;  %9466 = vst [vmem:[#allocation21_spill] sm:$0xff] %v6029_v27  ;;  %v9471_v40 = vrot.slane %v5674_v47, 7  ;;  %v9483_v27 = vrot.slane %v5709_v59, 7 }
  0x4e   :  { %9461 = vst [vmem:[#allocation20_spill] sm:$0xff] %v6022_v48  ;;  %v6036_v60 = vsel %vm687_vm0, %v9468_v24, %v9467_v3  ;;  %v6057_v3 = vsel %vm687_vm0, %v9474_v45, %v9473_v46  ;;  %v9476_v24 = vrot.slane %v5692_v32, 7  ;;  %v9484_v45 = vrot.slane %v5728_v14, 7 }
  0x4f   :  { %9469 = vst [vmem:[#allocation22_spill] sm:$0xff] %v6036_v60  ;;  %v6049_v8 = vsel %vm687_vm0, %v9471_v40, %v9470_v55  ;;  %9475 = vst [vmem:[#allocation24_spill] sm:$0xff] %v6057_v3  ;;  %v9479_v55 = vrot.slane %v5699_v61, 7  ;;  %v9480_v40 = vrot.slane %v9431_v22, 7  ;;  %v9485_v3 = vrot.slane %v5730_v19, 7 }
  0x50   :  { %9472 = vst [vmem:[#allocation23_spill] sm:$0xff] %v6049_v8  ;;  %v6064_v20 = vsel %vm687_vm0, %v9477_v7, %v9476_v24  ;;  %v9482_v8 = vrot.slane %v5707_v31, 7  ;;  %v9486_v24 = vrot.slane %v5732_v52, 7  ;;  %v9492_v48 = vrot.slane %v9491_v1, 7 }
  0x51   :  { %9478 = vst [vmem:[#allocation25_spill] sm:$0xff] %v6064_v20  ;;  %v6071_v5 = vsel %vm687_vm0, %v9480_v40, %v9479_v55  ;;  %v6085_v7 = vsel %vm687_vm0, %v9485_v3, %v9484_v45  ;;  %v9487_v20 = vld [vmem:[#allocation33_spill] sm:$0xff]  ;;  %v9489_v40 = vld [vmem:[#allocation34_spill] sm:$0xff]  ;;  %v4967_v3 = vpack.i.bf16 %v5669_v16, %v5656_v13  ;;  %v9494_v45 = vpack.i.bf16 %v5541_v17, %v5539_v9 }
  0x52   :  { %9481 = vst [vmem:[#allocation26_spill] sm:$0xff] %v6071_v5  ;;  %v6078_v46 = vsel %vm687_vm0, %v9483_v27, %v9482_v8  ;;  %v9488_v60 = vrot.slane %v9487_v20, 7  ;;  %v9490_v5 = vrot.slane %v9489_v40, 7  ;;  %v9493_v8 = vpack.i.bf16 %v5537_v63, %v5527_v58 }
  0x53   :  { %4963 = vrot.lane.b32.xlu1 %v9494_v45, %s5335_s0  ;;  %v5002_v50 = vpack.i.bf16 %v9487_v20, %v5732_v52  ;;  %v135_v58 = vpack.c.bf16 %v9439_v0, %v9437_v53  ;;  %v136_v63 = vpack.c.bf16 %v9444_v37, %v9442_v11  ;;  %v139_v45 = vpack.c.bf16 %v9459_v18, %v9457_v21 }
  0x54   :  { %v6092_v55 = vsel %vm687_vm0, %v9488_v60, %v9486_v24  ;;  %v6099_v27 = vsel %vm687_vm0, %v9492_v48, %v9490_v5  ;;  %4958 = vrot.lane.b32.xlu0 %v9493_v8, %s5335_s0  ;;  %v148_v60 = vpack.c.bf16 %v9487_v20, %v5732_v52  ;;  %v4972_v48 = vpack.i.bf16 %v5674_v47, %v5672_v23 }
  0x55   :  { %v128_v5 = vpack.c.bf16 %v5509_v49, %v5498_v44  ;;  %v4982_v24 = vpack.i.bf16 %v9430_v36, %v5692_v32  ;;  %v4992_v44 = vpack.i.bf16 %v5709_v59, %v5707_v31  ;;  %v130_v49 = vpack.c.bf16 %v5525_v57, %v5523_v56 }
  0x56   :  { %v4997_v8 = vpack.i.bf16 %v5730_v19, %v5728_v14  ;;  %v132_v56 = vpack.c.bf16 %v5541_v17, %v5539_v9  ;;  %v133_v57 = vpack.c.bf16 %v5556_v39, %v5554_v38  ;;  %v137_v9 = vpack.c.bf16 %v9449_v4, %v9447_v54 }
  0x57   :  { %4973 = vrot.lane.b32.xlu1 %v4972_v48, %s5335_s0  ;;  %4649 = vmatprep.mubr.msk.bf16.mxu0 %vm173_vm1, %v128_v5  ;;  %v138_v17 = vpack.c.bf16 %v9454_v33, %v9452_v62  ;;  %v9495_v48 = vpack.c.bf16 %v5669_v16, %v5656_v13  ;;  %v9496_v5 = vpack.c.bf16 %v5674_v47, %v5672_v23 }
  0x58   :  { %4968 = vrot.lane.b32.xlu0 %v4967_v3, %s5335_s0  ;;  %4650 = vmatmul.mubr.msk.bf16.gmra.mrb[20].mxu0 %vm173_vm1, %v129_v43  ;;  %v134_v3 = vpack.c.bf16 %v9434_v15, %v9432_v34  ;;  %v149_v52 = vpack.c.bf16 %v9491_v1, %v9489_v40 }
  0x59   :  { %4653 = vmatprep.mubr.msk.bf16.mxu0 %vm173_vm1, %v130_v49 }
  0x5b   :  { %4983 = vrot.lane.b32.xlu1 %v4982_v24, %s5335_s0 }
  0x5c   :  { %4978 = vrot.lane.b32.xlu0 %v4977_v29, %s5335_s0  ;;  %v9497_v29 = vpack.c.bf16 %v5690_v41, %v5688_v25 }
  0x5f   :  { %4993 = vrot.lane.b32.xlu1 %v4992_v44, %s5335_s0 }
  0x60   :  { %4988 = vrot.lane.b32.xlu0 %v4987_v42, %s5335_s0  ;;  %4654 = vmatmul.mubr.msk.bf16.gmra.mrb[24].mxu0 %vm173_vm1, %v131_v51  ;;  %v9498_v42 = vpack.c.bf16 %v9430_v36, %v5692_v32 }
  0x61   :  { %4657 = vmatprep.mubr.msk.bf16.mxu0 %vm173_vm1, %v132_v56 }
  0x63   :  { %5003 = vrot.lane.b32.xlu1 %v5002_v50, %s5335_s0 }
  0x64   :  { %4998 = vrot.lane.b32.xlu0 %v4997_v8, %s5335_s0 }
  0x68   :  { %4658 = vmatmul.mubr.msk.bf16.gmra.mrb[28].mxu0 %vm173_vm1, %v133_v57 }
  0x69   :  { %4661 = vmatprep.mubr.msk.bf16.mxu0 %vm173_vm1, %v134_v3 }
  0x70   :  { %4662 = vmatmul.mubr.msk.bf16.gmra.mrb[32].mxu0 %vm173_vm1, %v135_v58 }
  0x71   :  { %4665 = vmatprep.mubr.msk.bf16.mxu0 %vm173_vm1, %v136_v63  ;;  %v9501_v63 = vld [vmem:[#allocation38_spill] sm:$0xff] }
  0x78   :  { %4666 = vmatmul.mubr.msk.bf16.gmra.mrb[36].mxu0 %vm173_vm1, %v137_v9 }
  0x79   :  { %4669 = vmatprep.mubr.msk.bf16.mxu0 %vm173_vm1, %v138_v17  ;;  %v9502_v17 = vld [vmem:[#allocation37_spill] sm:$0xff] }
  0x80   :  { %4670 = vmatmul.mubr.msk.bf16.gmra.mrb[40].mxu0 %vm173_vm1, %v139_v45 }
  0x81   :  { %4673 = vmatprep.mubr.msk.bf16.mxu0 %vm173_vm1, %v140_v6 }
  0x88   :  { %4674 = vmatmul.mubr.msk.bf16.gmra.mrb[44].mxu0 %vm173_vm1, %v9495_v48  ;;  %v9503_v48 = vpack.c.bf16 %v5709_v59, %v5707_v31  ;;  %v9506_v59 = vld [vmem:[#allocation42_spill] sm:$0xff] }
  0x89   :  { %4677 = vmatprep.mubr.msk.bf16.mxu0 %vm173_vm1, %v9496_v5 }
  0x8d   :  { %v4849_v24 = vpop.permute.xlu0 %4848 }
  0x8e   :  { %v4851_v43 = vunpack.i.h.bf16 %v4849_v24  ;;  %v4850_v13 = vunpack.i.l.bf16 %v4849_v24  ;;  %v4859_v16 = vpop.permute.xlu1 %4858 }
  0x8f   :  { %v4861_v44 = vunpack.i.h.bf16 %v4859_v16  ;;  %v4860_v49 = vunpack.i.l.bf16 %v4859_v16 }
  0x90   :  { %4678 = vmatmul.mubr.msk.bf16.gmra.mrb[48].mxu0 %vm173_vm1, %v9497_v29  ;;  %v912_v23 = vsel %vm173_vm1, %v5902_v28, %v4850_v13  ;;  %v913_v47 = vsel %vm173_vm1, %v5909_v30, %v4851_v43  ;;  %v9499_v30 = vld [vmem:[#allocation36_spill] sm:$0xff]  ;;  %v9505_v13 = vld [vmem:[#allocation39_spill] sm:$0xff] }
  0x91   :  { %4681 = vmatprep.mubr.msk.bf16.mxu0 %vm173_vm1, %v9498_v42  ;;  %v917_v41 = vsel %vm173_vm1, %v5861_v35, %v4861_v44  ;;  %v916_v25 = vsel %vm173_vm1, %v5852_v10, %v4860_v49  ;;  %v4854_v32 = vpop.permute.xlu0 %4853  ;;  %v944_v36 = vpack.c.bf16 %v913_v47, %v912_v23  ;;  %v9500_v35 = vpack.c.bf16 %v9431_v22, %v5699_v61  ;;  %v9504_v42 = vld [vmem:[#allocation40_spill] sm:$0xff]  ;;  %v9507_v49 = vld [vmem:[#allocation41_spill] sm:$0xff] }
  0x92   :  { %v946_v8 = vpack.c.bf16 %v917_v41, %v916_v25  ;;  %v4856_v50 = vunpack.i.h.bf16 %v4854_v32  ;;  %v4855_v51 = vunpack.i.l.bf16 %v4854_v32  ;;  %v4864_v56 = vpop.permute.xlu1 %4863 }
  0x93   :  { %v4866_v57 = vunpack.i.h.bf16 %v4864_v56  ;;  %v4865_v3 = vunpack.i.l.bf16 %v4864_v56  ;;  %4701 = vmatprep.mubr.msk.bf16.mxu1 %vm999_vm2, %v944_v36  ;;  %v9508_v56 = vld [vmem:[#allocation44_spill] sm:$0xff] }
  0x94   :  { %v915_v28 = vsel %vm173_vm1, %v5878_v12, %v4856_v50  ;;  %v914_v58 = vsel %vm173_vm1, %v9499_v30, %v4855_v51 }
  0x95   :  { %v945_v10 = vpack.c.bf16 %v915_v28, %v914_v58  ;;  %v919_v9 = vsel %vm173_vm1, %v9501_v63, %v4866_v57  ;;  %v918_v45 = vsel %vm173_vm1, %v9502_v17, %v4865_v3  ;;  %v4869_v6 = vpop.permute.xlu0 %4868  ;;  %v9509_v3 = vld [vmem:[#allocation43_spill] sm:$0xff]  ;;  %v9510_v28 = vpack.c.bf16 %v5730_v19, %v5728_v14  ;;  %v9511_v58 = vld [vmem:[#allocation46_spill] sm:$0xff] }
  0x96   :  { %v947_v12 = vpack.c.bf16 %v919_v9, %v918_v45  ;;  %v4871_v5 = vunpack.i.h.bf16 %v4869_v6  ;;  %v4870_v29 = vunpack.i.l.bf16 %v4869_v6  ;;  %v4874_v24 = vpop.permute.xlu1 %4873 }
  0x97   :  { %v4876_v22 = vunpack.i.h.bf16 %v4874_v24  ;;  %v4875_v61 = vunpack.i.l.bf16 %v4874_v24  ;;  %4702 = vmatmul.mubr.msk.bf16.vlgmr.msra.gmra.mrb[0].mxu1 %vm999_vm2, %v945_v10  ;;  %v9512_v10 = vld [vmem:[#allocation45_spill] sm:$0xff]  ;;  %v9514_v24 = vld [vmem:[#allocation31_spill] sm:$0xff] }
  0x98   :  { %4682 = vmatmul.mubr.msk.bf16.gmra.mrb[52].mxu0 %vm173_vm1, %v9500_v35  ;;  %v921_v43 = vsel %vm173_vm1, %v9504_v42, %v4871_v5  ;;  %v920_v16 = vsel %vm173_vm1, %v9505_v13, %v4870_v29  ;;  %4705 = vmatprep.mubr.msk.bf16.mxu1 %vm999_vm2, %v946_v8  ;;  %v9513_v5 = vld [vmem:[#allocation32_spill] sm:$0xff]  ;;  %v9516_v42 = vld [vmem:[#allocation17_spill] sm:$0xff] }
  0x99   :  { %4685 = vmatprep.mubr.msk.bf16.mxu0 %vm173_vm1, %v9503_v48  ;;  %v948_v44 = vpack.c.bf16 %v921_v43, %v920_v16  ;;  %v923_v31 = vsel %vm173_vm1, %v9506_v59, %v4876_v22  ;;  %v922_v23 = vsel %vm173_vm1, %v9507_v49, %v4875_v61  ;;  %v4879_v47 = vpop.permute.xlu0 %4878 }
  0x9a   :  { %v949_v41 = vpack.c.bf16 %v923_v31, %v922_v23  ;;  %v4881_v25 = vunpack.i.h.bf16 %v4879_v47  ;;  %v4880_v32 = vunpack.i.l.bf16 %v4879_v47  ;;  %v4884_v36 = vpop.permute.xlu1 %4883  ;;  %v9517_v23 = vld [vmem:[#allocation20_spill] sm:$0xff] }
  0x9b   :  { %v4886_v50 = vunpack.i.h.bf16 %v4884_v36  ;;  %v4885_v51 = vunpack.i.l.bf16 %v4884_v36 }
  0x9c   :  { %v925_v57 = vsel %vm173_vm1, %v9508_v56, %v4881_v25  ;;  %v924_v8 = vsel %vm173_vm1, %v9509_v3, %v4880_v32  ;;  %v9518_v25 = vld [vmem:[#allocation19_spill] sm:$0xff]  ;;  %v9520_v56 = vld [vmem:[#allocation21_spill] sm:$0xff] }
  0x9d   :  { %v950_v30 = vpack.c.bf16 %v925_v57, %v924_v8  ;;  %v6238_v35 = vsel %vm173_vm1, %v9511_v58, %v4886_v50  ;;  %v6242_v63 = vsel %vm173_vm1, %v9512_v10, %v4885_v51  ;;  %v4889_v9 = vpop.permute.xlu0 %4888  ;;  %v9519_v50 = vld [vmem:[#allocation22_spill] sm:$0xff] }
  0x9e   :  { %v951_v19 = vpack.c.bf16 %v6238_v35, %v6242_v63  ;;  %v4891_v14 = vunpack.i.h.bf16 %v4889_v9  ;;  %v4890_v17 = vunpack.i.l.bf16 %v4889_v9  ;;  %v4894_v45 = vpop.permute.xlu1 %4893  ;;  %v9521_v9 = vld [vmem:[#allocation24_spill] sm:$0xff] }
  0x9f   :  { %v4896_v6 = vunpack.i.h.bf16 %v4894_v45  ;;  %v4895_v48 = vunpack.i.l.bf16 %v4894_v45  ;;  %4706 = vmatmul.mubr.msk.bf16.gmra.mrb[4].mxu1 %vm999_vm2, %v947_v12 }
  0xa0   :  { %4686 = vmatmul.mubr.msk.bf16.gmra.mrb[56].mxu0 %vm173_vm1, %v9510_v28  ;;  %v929_v29 = vsel %vm173_vm1, %v9513_v5, %v4891_v14  ;;  %v928_v22 = vsel %vm173_vm1, %v9514_v24, %v4890_v17  ;;  %4709 = vmatprep.mubr.msk.bf16.mxu1 %vm999_vm2, %v948_v44  ;;  %v9522_v17 = vld [vmem:[#allocation23_spill] sm:$0xff] }
  0xa1   :  { %4689 = vmatprep.mubr.msk.bf16.mxu0 %vm173_vm1, %v148_v60  ;;  %v952_v20 = vpack.c.bf16 %v929_v29, %v928_v22  ;;  %v9515_v60 = vld [vmem:[#allocation18_spill] sm:$0xff]  ;;  %v6264_v43 = vsel %vm173_vm1, %v9516_v42, %v4895_v48  ;;  %v4899_v12 = vpop.permute.xlu0 %4898  ;;  %v9524_v29 = vld [vmem:[#allocation25_spill] sm:$0xff] }
  0xa2   :  { %v6260_v61 = vsel %vm173_vm1, %v9515_v60, %v4896_v6  ;;  %v4901_v16 = vunpack.i.h.bf16 %v4899_v12  ;;  %v4900_v59 = vunpack.i.l.bf16 %v4899_v12  ;;  %v4904_v31 = vpop.permute.xlu1 %4903  ;;  %v9523_v48 = vld [vmem:[#allocation26_spill] sm:$0xff] }
  0xa3   :  { %v953_v13 = vpack.c.bf16 %v6260_v61, %v6264_v43  ;;  %v4906_v44 = vunpack.i.h.bf16 %v4904_v31  ;;  %v4905_v49 = vunpack.i.l.bf16 %v4904_v31 }
  0xa4   :  { %v6270_v47 = vsel %vm173_vm1, %v9517_v23, %v4901_v16  ;;  %v6274_v32 = vsel %vm173_vm1, %v9518_v25, %v4900_v59 }
  0xa5   :  { %v954_v36 = vpack.c.bf16 %v6270_v47, %v6274_v32  ;;  %v6281_v51 = vsel %vm173_vm1, %v9519_v50, %v4906_v44  ;;  %v6285_v57 = vsel %vm173_vm1, %v9520_v56, %v4905_v49  ;;  %v4909_v3 = vpop.permute.xlu0 %4908  ;;  %v5277_v32 = vld [vmem:[#allocation2 + $0x58] sm:$0xff] }
  0xa6   :  { %v955_v8 = vpack.c.bf16 %v6281_v51, %v6285_v57  ;;  %v4911_v28 = vunpack.i.h.bf16 %v4909_v3  ;;  %v4910_v58 = vunpack.i.l.bf16 %v4909_v3  ;;  %v4914_v35 = vpop.permute.xlu1 %4913  ;;  %v5279_v51 = vld [vmem:[#allocation2 + $0x60] sm:$0xff] }
  0xa7   :  { %v4916_v10 = vunpack.i.h.bf16 %v4914_v35  ;;  %v4915_v63 = vunpack.i.l.bf16 %v4914_v35  ;;  %4710 = vmatmul.mubr.msk.bf16.gmra.mrb[8].mxu1 %vm999_vm2, %v949_v41 }
  0xa8   :  { %4690 = vmatmul.mubr.msk.bf16.gmra.mrb[60].mxu0 %vm173_vm1, %v149_v52  ;;  %v6292_v14 = vsel %vm173_vm1, %v9521_v9, %v4911_v28  ;;  %v6296_v45 = vsel %vm173_vm1, %v9522_v17, %v4910_v58  ;;  %4713 = vmatprep.mubr.msk.bf16.mxu1 %vm999_vm2, %v950_v30  ;;  %v9525_v58 = vld [vmem:[#allocation8_spill] sm:$0xff] }
  0xa9   :  { %v956_v6 = vpack.c.bf16 %v6292_v14, %v6296_v45  ;;  %v6303_v5 = vsel %vm173_vm1, %v9523_v48, %v4916_v10  ;;  %v6307_v41 = vsel %vm173_vm1, %v9524_v29, %v4915_v63  ;;  %v4919_v24 = vpop.permute.xlu0 %4918  ;;  %v9526_v10 = vld [vmem:[#allocation9_spill] sm:$0xff] }
  0xaa   :  { %v957_v22 = vpack.c.bf16 %v6303_v5, %v6307_v41  ;;  %v4921_v52 = vunpack.i.h.bf16 %v4919_v24  ;;  %v4920_v60 = vunpack.i.l.bf16 %v4919_v24  ;;  %v4924_v42 = vpop.permute.xlu1 %4923 }
  0xab   :  { %v4926_v12 = vunpack.i.h.bf16 %v4924_v42  ;;  %v4925_v30 = vunpack.i.l.bf16 %v4924_v42 }
  0xac   :  { %v6313_v16 = vsel %vm173_vm1, %v6085_v7, %v4921_v52  ;;  %v6317_v59 = vsel %vm173_vm1, %v6078_v46, %v4920_v60  ;;  %v9528_v52 = vld [vmem:[#allocation10_spill] sm:$0xff] }
  0xad   :  { %v958_v31 = vpack.c.bf16 %v6313_v16, %v6317_v59  ;;  %v6323_v44 = vsel %vm173_vm1, %v6099_v27, %v4926_v12  ;;  %v6327_v49 = vsel %vm173_vm1, %v6092_v55, %v4925_v30  ;;  %v4929_v23 = vpop.permute.xlu0 %4928  ;;  %v9529_v12 = vld [vmem:[#allocation12_spill] sm:$0xff] }
  0xae   :  { %v959_v7 = vpack.c.bf16 %v6323_v44, %v6327_v49  ;;  %v4931_v25 = vunpack.i.h.bf16 %v4929_v23  ;;  %v4930_v50 = vunpack.i.l.bf16 %v4929_v23  ;;  %v4934_v56 = vpop.permute.xlu1 %4933  ;;  %v9530_v23 = vld [vmem:[#allocation13_spill] sm:$0xff] }
  0xaf   :  { %v4936_v46 = vunpack.i.h.bf16 %v4934_v56  ;;  %v4935_v3 = vunpack.i.l.bf16 %v4934_v56  ;;  %4714 = vmatmul.mubr.msk.bf16.gmra.mrb[12].mxu1 %vm999_vm2, %v951_v19 }
  0xb0   :  { %v2700_v28 = vsel %vm173_vm1, %v5556_v39, %v4931_v25  ;;  %v2699_v27 = vsel %vm173_vm1, %v5554_v38, %v4930_v50  ;;  %4717 = vmatprep.mubr.msk.bf16.mxu1 %vm999_vm2, %v952_v20  ;;  %v9527_v38 = vld [vmem:[#allocation11_spill] sm:$0xff] }
  0xb1   :  { %v2731_v55 = vpack.c.bf16 %v2700_v28, %v2699_v27  ;;  %v2701_v35 = vsel %vm173_vm1, %v9525_v58, %v4935_v3  ;;  %v2702_v63 = vsel %vm173_vm1, %v9526_v10, %v4936_v46  ;;  %v4939_v9 = vpop.permute.xlu0 %4938  ;;  %v9531_v27 = vld [vmem:[#allocation15_spill] sm:$0xff]  ;;  %v9532_v58 = vld [vmem:[#allocation14_spill] sm:$0xff] }
  0xb2   :  { %v2732_v17 = vpack.c.bf16 %v2702_v63, %v2701_v35  ;;  %v4941_v48 = vunpack.i.h.bf16 %v4939_v9  ;;  %v4940_v29 = vunpack.i.l.bf16 %v4939_v9  ;;  %v4944_v19 = vpop.permute.xlu1 %4943 }
  0xb3   :  { %4775 = vmatprep.mubr.msk.bf16.mxu0 %vm999_vm2, %v2731_v55  ;;  %v4946_v39 = vunpack.i.h.bf16 %v4944_v19  ;;  %v4945_v24 = vunpack.i.l.bf16 %v4944_v19  ;;  %v5276_v19 = vld [vmem:[#allocation2 + $0x40] sm:$0xff] }
  0xb4   :  { %4776 = vmatmul.mubr.msk.bf16.vlgmr.msra.gmra.mrb[64].mxu0 %vm999_vm2, %v2732_v17  ;;  %v2704_v20 = vsel %vm173_vm1, %v9527_v38, %v4941_v48  ;;  %v2703_v60 = vsel %vm173_vm1, %v9528_v52, %v4940_v29  ;;  %v5017_v17 = vld [vmem:[%s9190_s3] sm:$0xff]   ;;  %v5275_v48 = vld [vmem:[#allocation2 + $0x48] sm:$0xff] }
  0xb5   :  { %v2733_v42 = vpack.c.bf16 %v2704_v20, %v2703_v60  ;;  %v2705_v30 = vsel %vm173_vm1, %v9529_v12, %v4945_v24  ;;  %v2706_v25 = vsel %vm173_vm1, %v9530_v23, %v4946_v39  ;;  %v4949_v50 = vpop.permute.xlu0 %4948  ;;  %4733 = vmatprep.subr.bf16.mxu1 %v5017_v17  ;;  %v5278_v39 = vld [vmem:[#allocation2 + $0x50] sm:$0xff] }
  0xb6   :  { %v4951_v56 = vunpack.i.h.bf16 %v4949_v50  ;;  %v4950_v46 = vunpack.i.l.bf16 %v4949_v50  ;;  %v4954_v3 = vpop.permute.xlu1 %4953  ;;  %v2734_v28 = vpack.c.bf16 %v2706_v25, %v2705_v30  ;;  %4734 = vmatpush3.bf16.msra.mxu1 %v5017_v17  ;;  %v9533_v25 = vld [vmem:[#allocation16_spill] sm:$0xff] }
  0xb7   :  { %4718 = vmatmul.mubr.msk.bf16.gmra.mrb[16].mxu1 %vm999_vm2, %v953_v13  ;;  %4779 = vmatprep.mubr.msk.bf16.mxu0 %vm999_vm2, %v2733_v42  ;;  %v4956_v63 = vunpack.i.h.bf16 %v4954_v3  ;;  %v4955_v9 = vunpack.i.l.bf16 %v4954_v3 }
  0xb8   :  { %v2708_v55 = vsel %vm173_vm1, %v9531_v27, %v4951_v56  ;;  %v2707_v35 = vsel %vm173_vm1, %v9532_v58, %v4950_v46  ;;  %4721 = vmatprep.mubr.msk.bf16.mxu1 %vm999_vm2, %v954_v36 }
  0xb9   :  { %v2735_v10 = vpack.c.bf16 %v2708_v55, %v2707_v35  ;;  %v2710_v29 = vsel %vm173_vm1, %v5275_v48, %v4956_v63  ;;  %v2709_v47 = vsel %vm173_vm1, %v5276_v19, %v4955_v9 }
  0xba   :  { %v2736_v52 = vpack.c.bf16 %v2710_v29, %v2709_v47 }
  0xbc   :  { %4780 = vmatmul.mubr.msk.bf16.gmra.mrb[68].mxu0 %vm999_vm2, %v2734_v28 }
  0xbd   :  { %4783 = vmatprep.mubr.msk.bf16.mxu0 %vm999_vm2, %v2735_v10 }
  0xbf   :  { %4722 = vmatmul.mubr.msk.bf16.gmra.mrb[20].mxu1 %vm999_vm2, %v955_v8 }
  0xc0   :  { %4725 = vmatprep.mubr.msk.bf16.mxu1 %vm999_vm2, %v956_v6 }
  0xc4   :  { %4784 = vmatmul.mubr.msk.bf16.gmra.mrb[72].mxu0 %vm999_vm2, %v2736_v52 }
  0xc5   :  { %v4964_v38 = vpop.permute.xlu1 %4963 }
  0xc6   :  { %v4959_v61 = vpop.permute.xlu0 %4958  ;;  %v4966_v42 = vunpack.i.h.bf16 %v4964_v38  ;;  %v4965_v12 = vunpack.i.l.bf16 %v4964_v38 }
  0xc7   :  { %v4961_v43 = vunpack.i.h.bf16 %v4959_v61  ;;  %v4960_v13 = vunpack.i.l.bf16 %v4959_v61  ;;  %4726 = vmatmul.mubr.msk.bf16.gmra.mrb[24].mxu1 %vm999_vm2, %v957_v22 }
  0xc8   :  { %v2714_v50 = vsel %vm173_vm1, %v9533_v25, %v4966_v42  ;;  %v2713_v57 = vsel %vm173_vm1, %v5279_v51, %v4965_v12  ;;  %4729 = vmatprep.mubr.msk.bf16.mxu1 %vm999_vm2, %v958_v31 }
  0xc9   :  { %v2712_v36 = vsel %vm173_vm1, %v5277_v32, %v4961_v43  ;;  %v2711_v24 = vsel %vm173_vm1, %v5278_v39, %v4960_v13  ;;  %v4974_v45 = vpop.permute.xlu1 %4973  ;;  %v2738_v56 = vpack.c.bf16 %v2714_v50, %v2713_v57 }
  0xca   :  { %v4969_v20 = vpop.permute.xlu0 %4968  ;;  %v2737_v60 = vpack.c.bf16 %v2712_v36, %v2711_v24  ;;  %v4976_v3 = vunpack.i.h.bf16 %v4974_v45  ;;  %v4975_v28 = vunpack.i.l.bf16 %v4974_v45 }
  0xcb   :  { %v4971_v30 = vunpack.i.h.bf16 %v4969_v20  ;;  %v4970_v23 = vunpack.i.l.bf16 %v4969_v20 }
  0xcc   :  { %4787 = vmatprep.mubr.msk.bf16.mxu0 %vm999_vm2, %v2737_v60  ;;  %v2717_v5 = vsel %vm173_vm1, %v9432_v34, %v4975_v28 }
  0xcd   :  { %v2716_v8 = vsel %vm173_vm1, %v9491_v1, %v4971_v30  ;;  %v2715_v14 = vsel %vm173_vm1, %v9489_v40, %v4970_v23  ;;  %4788 = vmatmul.mubr.msk.bf16.gmra.mrb[76].mxu0 %vm999_vm2, %v2738_v56  ;;  %v2718_v40 = vsel %vm173_vm1, %v9434_v15, %v4976_v3  ;;  %v4984_v16 = vpop.permute.xlu1 %4983 }
  0xce   :  { %v4979_v6 = vpop.permute.xlu0 %4978  ;;  %v2739_v46 = vpack.c.bf16 %v2716_v8, %v2715_v14  ;;  %v2740_v31 = vpack.c.bf16 %v2718_v40, %v2717_v5  ;;  %v4986_v55 = vunpack.i.h.bf16 %v4984_v16  ;;  %v4985_v58 = vunpack.i.l.bf16 %v4984_v16 }
  0xcf   :  { %v4981_v1 = vunpack.i.h.bf16 %v4979_v6  ;;  %v4980_v27 = vunpack.i.l.bf16 %v4979_v6  ;;  %4730 = vmatmul.mubr.msk.bf16.gmra.mrb[28].mxu1 %vm999_vm2, %v959_v7 }
  0xd0   :  { %4791 = vmatprep.mubr.msk.bf16.mxu0 %vm999_vm2, %v2739_v46 }
  0xd1   :  { %v2720_v41 = vsel %vm173_vm1, %v9439_v0, %v4981_v1  ;;  %v2719_v22 = vsel %vm173_vm1, %v9437_v53, %v4980_v27  ;;  %v2722_v0 = vsel %vm173_vm1, %v9444_v37, %v4986_v55  ;;  %v2721_v53 = vsel %vm173_vm1, %v9442_v11, %v4985_v58  ;;  %v4994_v7 = vpop.permute.xlu1 %4993 }
  0xd2   :  { %v4989_v59 = vpop.permute.xlu0 %4988  ;;  %v2741_v15 = vpack.c.bf16 %v2720_v41, %v2719_v22  ;;  %v2742_v63 = vpack.c.bf16 %v2722_v0, %v2721_v53  ;;  %v4996_v61 = vunpack.i.h.bf16 %v4994_v7  ;;  %v4995_v43 = vunpack.i.l.bf16 %v4994_v7 }
  0xd3   :  { %v4991_v34 = vunpack.i.h.bf16 %v4989_v59  ;;  %v4990_v35 = vunpack.i.l.bf16 %v4989_v59 }
  0xd4   :  { %v2726_v37 = vsel %vm173_vm1, %v9454_v33, %v4996_v61  ;;  %v2725_v11 = vsel %vm173_vm1, %v9452_v62, %v4995_v43 }
  0xd5   :  { %4792 = vmatmul.mubr.msk.bf16.gmra.mrb[80].mxu0 %vm999_vm2, %v2740_v31  ;;  %v2724_v44 = vsel %vm173_vm1, %v9449_v4, %v4991_v34  ;;  %v2723_v49 = vsel %vm173_vm1, %v9447_v54, %v4990_v35  ;;  %v5004_v48 = vpop.permute.xlu1 %5003  ;;  %v2744_v29 = vpack.c.bf16 %v2726_v37, %v2725_v11  ;;  %v6548_v11 = vld [vmem:[%s9189_s2] ss:$0 sm:$0xff] }
  0xd6   :  { %4795 = vmatprep.mubr.msk.bf16.mxu0 %vm999_vm2, %v2741_v15  ;;  %v4999_v10 = vpop.permute.xlu0 %4998  ;;  %v2743_v9 = vpack.c.bf16 %v2724_v44, %v2723_v49  ;;  %v5006_v47 = vunpack.i.h.bf16 %v5004_v48  ;;  %v5005_v32 = vunpack.i.l.bf16 %v5004_v48 }
  0xd7   :  { %v5001_v13 = vunpack.i.h.bf16 %v4999_v10  ;;  %v5000_v17 = vunpack.i.l.bf16 %v4999_v10 }
  0xd8   :  { %v2730_v33 = vsel %vm173_vm1, %v9464_v2, %v5006_v47  ;;  %v2729_v62 = vsel %vm173_vm1, %v9462_v26, %v5005_v32 }
  0xd9   :  { %v2728_v54 = vsel %vm173_vm1, %v9459_v18, %v5001_v13  ;;  %v2727_v4 = vsel %vm173_vm1, %v9457_v21, %v5000_v17  ;;  %v2746_v36 = vpack.c.bf16 %v2730_v33, %v2729_v62 }
  0xda   :  { %v2745_v19 = vpack.c.bf16 %v2728_v54, %v2727_v4 }
  0xdd   :  { %4796 = vmatmul.mubr.msk.bf16.gmra.mrb[84].mxu0 %vm999_vm2, %v2742_v63 }
  0xde   :  { %4799 = vmatprep.mubr.msk.bf16.mxu0 %vm999_vm2, %v2743_v9 }
  0xe5   :  { %4800 = vmatmul.mubr.msk.bf16.gmra.mrb[88].mxu0 %vm999_vm2, %v2744_v29 }
  0xe6   :  { %4803 = vmatprep.mubr.msk.bf16.mxu0 %vm999_vm2, %v2745_v19 }
  0xed   :  { %4804 = vmatmul.mubr.msk.bf16.gmra.mrb[92].mxu0 %vm999_vm2, %v2746_v36 }
  0xfe   :  { %v6439_v18 = vpop.f32.mrb[0].mxu0 }
  0xff   :  { %9534 = vst [vmem:[#allocation27_spill] sm:$0xff] %v6439_v18  ;;  %v6441_v21 = vpop.f32.mrb[1].mxu0 }
 0x100   :  { %9535 = vst [vmem:[#allocation28_spill] sm:$0xff] %v6441_v21  ;;  %v6443_v39 = vpop.f32.mrb[2].mxu0 }
 0x101   :  { %9536 = vst [vmem:[#allocation29_spill] sm:$0xff] %v6443_v39  ;;  %v6445_v24 = vpop.f32.mrb[3].mxu0 }
 0x102   :  { %9537 = vst [vmem:[#allocation30_spill] sm:$0xff] %v6445_v24 }
 0x106   :  { %v6447_v38 = vpop.f32.mrb[4].mxu0 }
 0x107   :  { %9538 = vst [vmem:[#allocation33_spill] sm:$0xff] %v6447_v38  ;;  %v6449_v20 = vpop.f32.mrb[5].mxu0 }
 0x108   :  { %9539 = vst [vmem:[#allocation34_spill] sm:$0xff] %v6449_v20  ;;  %v6451_v2 = vpop.f32.mrb[6].mxu0 }
 0x109   :  { %9540 = vst [vmem:[#allocation35_spill] sm:$0xff] %v6451_v2  ;;  %v6453_v26 = vpop.f32.mrb[7].mxu0 }
 0x10a   :  { %9541 = vst [vmem:[#allocation36_spill] sm:$0xff] %v6453_v26 }
 0x10e   :  { %v6455_v52 = vpop.f32.mrb[8].mxu0 }
 0x10f   :  { %9542 = vst [vmem:[#allocation38_spill] sm:$0xff] %v6455_v52  ;;  %v6457_v60 = vpop.f32.mrb[9].mxu0 }
 0x110   :  { %9543 = vst [vmem:[#allocation37_spill] sm:$0xff] %v6457_v60  ;;  %v6459_v42 = vpop.f32.mrb[10].mxu0 }
 0x111   :  { %9544 = vst [vmem:[#allocation40_spill] sm:$0xff] %v6459_v42  ;;  %v6461_v12 = vpop.f32.mrb[11].mxu0 }
 0x112   :  { %9545 = vst [vmem:[#allocation39_spill] sm:$0xff] %v6461_v12 }
 0x116   :  { %v6463_v30 = vpop.f32.mrb[12].mxu0 }
 0x117   :  { %9546 = vst [vmem:[#allocation42_spill] sm:$0xff] %v6463_v30  ;;  %v6465_v23 = vpop.f32.mrb[13].mxu0 }
 0x118   :  { %9547 = vst [vmem:[#allocation41_spill] sm:$0xff] %v6465_v23  ;;  %v6467_v25 = vpop.f32.mrb[14].mxu0 }
 0x119   :  { %9548 = vst [vmem:[#allocation44_spill] sm:$0xff] %v6467_v25  ;;  %v6469_v50 = vpop.f32.mrb[15].mxu0 }
 0x11a   :  { %9549 = vst [vmem:[#allocation43_spill] sm:$0xff] %v6469_v50 }
 0x11e   :  { %v6471_v51 = vpop.f32.mrb[16].mxu0 }
 0x11f   :  { %9550 = vst [vmem:[#allocation46_spill] sm:$0xff] %v6471_v51  ;;  %v6473_v57 = vpop.f32.mrb[17].mxu0 }
 0x120   :  { %9551 = vst [vmem:[#allocation45_spill] sm:$0xff] %v6473_v57  ;;  %v6475_v8 = vpop.f32.mrb[18].mxu0 }
 0x121   :  { %9552 = vst [vmem:[#allocation32_spill] sm:$0xff] %v6475_v8  ;;  %v6477_v14 = vpop.f32.mrb[19].mxu0 }
 0x122   :  { %9553 = vst [vmem:[#allocation31_spill] sm:$0xff] %v6477_v14 }
 0x12b   :  { %v6479_v45 = vpop.f32.mrb[20].mxu0 }
 0x12c   :  { %9554 = vst [vmem:[#allocation18_spill] sm:$0xff] %v6479_v45  ;;  %v6481_v6 = vpop.f32.mrb[21].mxu0 }
 0x12d   :  { %9555 = vst [vmem:[#allocation17_spill] sm:$0xff] %v6481_v6  ;;  %v6483_v56 = vpop.f32.mrb[22].mxu0 }
 0x12e   :  { %9556 = vst [vmem:[#allocation20_spill] sm:$0xff] %v6483_v56  ;;  %v6485_v46 = vpop.f32.mrb[23].mxu0 }
 0x12f   :  { %9557 = vst [vmem:[#allocation19_spill] sm:$0xff] %v6485_v46 }
 0x133   :  { %v6487_v3 = vpop.f32.mrb[24].mxu0 }
 0x134   :  { %9558 = vst [vmem:[#allocation22_spill] sm:$0xff] %v6487_v3  ;;  %v6489_v28 = vpop.f32.mrb[25].mxu0 }
 0x135   :  { %9559 = vst [vmem:[#allocation21_spill] sm:$0xff] %v6489_v28  ;;  %v6491_v1 = vpop.f32.mrb[26].mxu0 }
 0x136   :  { %9560 = vst [vmem:[#allocation24_spill] sm:$0xff] %v6491_v1  ;;  %v6493_v27 = vpop.f32.mrb[27].mxu0 }
 0x137   :  { %9561 = vst [vmem:[#allocation23_spill] sm:$0xff] %v6493_v27 }
 0x13b   :  { %v6495_v40 = vpop.f32.mrb[28].mxu0 }
 0x13c   :  { %9562 = vst [vmem:[#allocation26_spill] sm:$0xff] %v6495_v40  ;;  %v6497_v5 = vpop.f32.mrb[29].mxu0 }
 0x13d   :  { %9563 = vst [vmem:[#allocation25_spill] sm:$0xff] %v6497_v5  ;;  %v6499_v41 = vpop.f32.mrb[30].mxu0 }
 0x13e   :  { %9564 = vst [vmem:[#allocation8_spill] sm:$0xff] %v6499_v41  ;;  %v6501_v22 = vpop.f32.mrb[31].mxu0 }
 0x13f   :  { %9565 = vst [vmem:[#allocation9_spill] sm:$0xff] %v6501_v22 }
 0x143   :  { %v6503_v16 = vpop.f32.mrb[32].mxu0 }
 0x144   :  { %9566 = vst [vmem:[#allocation11_spill] sm:$0xff] %v6503_v16  ;;  %v6505_v59 = vpop.f32.mrb[33].mxu0 }
 0x145   :  { %9567 = vst [vmem:[#allocation10_spill] sm:$0xff] %v6505_v59  ;;  %v6507_v31 = vpop.f32.mrb[34].mxu0 }
 0x146   :  { %9568 = vst [vmem:[#allocation12_spill] sm:$0xff] %v6507_v31  ;;  %v6509_v15 = vpop.f32.mrb[35].mxu0 }
 0x147   :  { %9569 = vst [vmem:[#allocation13_spill] sm:$0xff] %v6509_v15 }
 0x14b   :  { %v6511_v55 = vpop.f32.mrb[36].mxu0 }
 0x14c   :  { %9570 = vst [vmem:[#allocation15_spill] sm:$0xff] %v6511_v55  ;;  %v6513_v58 = vpop.f32.mrb[37].mxu0 }
 0x14d   :  { %9571 = vst [vmem:[#allocation14_spill] sm:$0xff] %v6513_v58  ;;  %v6515_v34 = vpop.f32.mrb[38].mxu0 }
 0x14e   :  { %9572 = vst [vmem:[#allocation16_spill] sm:$0xff] %v6515_v34  ;;  %v6517_v35 = vpop.f32.mrb[39].mxu0 }
 0x14f   :  { %9573 = vst [vmem:[#allocation47_spill] sm:$0xff] %v6517_v35 }
 0x153   :  { %v6519_v0 = vpop.f32.mrb[40].mxu0 }
 0x154   :  { %9574 = vst [vmem:[#allocation48_spill] sm:$0xff] %v6519_v0  ;;  %v6521_v53 = vpop.f32.mrb[41].mxu0 }
 0x155   :  { %9575 = vst [vmem:[#allocation49_spill] sm:$0xff] %v6521_v53  ;;  %v6523_v44 = vpop.f32.mrb[42].mxu0 }
 0x156   :  { %9576 = vst [vmem:[#allocation50_spill] sm:$0xff] %v6523_v44  ;;  %v6525_v49 = vpop.f32.mrb[43].mxu0 }
 0x157   :  { %9577 = vst [vmem:[#allocation51_spill] sm:$0xff] %v6525_v49 }
 0x15b   :  { %v6527_v7 = vpop.f32.mrb[44].mxu0 }
 0x15c   :  { %9578 = vst [vmem:[#allocation52_spill] sm:$0xff] %v6527_v7  ;;  %v6529_v10 = vpop.f32.mrb[45].mxu0 }
 0x15d   :  { %9579 = vst [vmem:[#allocation53_spill] sm:$0xff] %v6529_v10  ;;  %v6531_v63 = vpop.f32.mrb[46].mxu0 }
 0x15e   :  { %9580 = vst [vmem:[#allocation54_spill] sm:$0xff] %v6531_v63  ;;  %v6533_v9 = vpop.f32.mrb[47].mxu0 }
 0x15f   :  { %9581 = vst [vmem:[#allocation55_spill] sm:$0xff] %v6533_v9 }
 0x163   :  { %v6535_v61 = vpop.f32.mrb[48].mxu0 }
 0x164   :  { %9582 = vst [vmem:[#allocation56_spill] sm:$0xff] %v6535_v61  ;;  %v6537_v43 = vpop.f32.mrb[49].mxu0 }
 0x165   :  { %9583 = vst [vmem:[#allocation57_spill] sm:$0xff] %v6537_v43  ;;  %v6539_v13 = vpop.f32.mrb[50].mxu0 }
 0x166   :  { %9584 = vst [vmem:[#allocation58_spill] sm:$0xff] %v6539_v13  ;;  %v6541_v17 = vpop.f32.mrb[51].mxu0 }
 0x167   :  { %9585 = vst [vmem:[#allocation59_spill] sm:$0xff] %v6541_v17 }
 0x16a   :  { %v4703_v48 = vpop.f32.mrb[0].mxu1 }
 0x16b   :  { %v6543_v37 = vpop.f32.mrb[52].mxu0  ;;  %v1091_v19 = vadd.f32 %v4703_v48, %v6548_v11  ;;  %v1082_v47 = vpop.f32.mrb[1].mxu1 }
 0x16c   :  { %9586 = vst [vmem:[#allocation60_spill] sm:$0xff] %v6543_v37  ;;  %v6550_v54 = vpop.f32.mrb[53].mxu0  ;;  %v1083_v32 = vadd.f32 %v6548_v11, %v1082_v47  ;;  %v4704_v33 = vpop.f32.mrb[2].mxu1 }
 0x16d   :  { %9587 = vst [vmem:[#allocation61_spill] sm:$0xff] %v6550_v54  ;;  %v6552_v4 = vpop.f32.mrb[54].mxu0  ;;  %v6558_v62 = vmul.f32 0.70710677, %v1091_v19  ;;  %v1094_v36 = vadd.f32 %v4704_v33, %v6548_v11  ;;  %v1085_v13 = vpop.f32.mrb[3].mxu1 }
 0x16e   :  { %9588 = vst [vmem:[#allocation62_spill] sm:$0xff] %v6552_v4  ;;  %v6554_v29 = vpop.f32.mrb[55].mxu0  ;;  %v6561_v61 = vmul.f32 0.70710677, %v1083_v32  ;;  %v1086_v17 = vadd.f32 %v6548_v11, %v1085_v13 }
 0x16f   :  { %9589 = vst [vmem:[#allocation63_spill] sm:$0xff] %v6554_v29  ;;  %v1275_v43 = vand.u32 2147483647, %v6558_v62  ;;  %v6565_v4 = vmul.f32 0.70710677, %v1094_v36  ;;  %vm1883_vm3 = vcmp.lt.f32.partialorder %v6558_v62, 0.0 }
 0x170   :  { %v1273_v37 = vand.u32 2147483647, %v6561_v61  ;;  %v6568_v48 = vmul.f32 0.70710677, %v1086_v17  ;;  %vm1881_vm4 = vcmp.lt.f32.partialorder %v6561_v61, 0.0 }
 0x171   :  { %v1307_v29 = vmul.f32 0.3275911, %v1275_v43  ;;  %v1691_v47 = vsub.f32 0.0, %v1275_v43  ;;  %v1276_v54 = vand.u32 2147483647, %v6565_v4  ;;  %vm1884_vm5 = vcmp.lt.f32.partialorder %v6565_v4, 0.0 }
 0x172   :  { %v1305_v9 = vmul.f32 0.3275911, %v1273_v37  ;;  %v1274_v33 = vand.u32 2147483647, %v6568_v48  ;;  %v1689_v10 = vsub.f32 0.0, %v1273_v37  ;;  %v4707_v49 = vpop.f32.mrb[4].mxu1 }
 0x173   :  { %v1339_v63 = vadd.f32 1.0, %v1307_v29  ;;  %v1308_v7 = vmul.f32 0.3275911, %v1276_v54  ;;  %v6572_v13 = vpop.f32.mrb[56].mxu0  ;;  %v1098_v0 = vpop.f32.mrb[5].mxu1  ;;  %v1723_v34 = vmul.f32 %v1691_v47, %v1275_v43  ;;  %v1692_v31 = vsub.f32 0.0, %v1276_v54 }
 0x174   :  { %9590 = vst [vmem:[#allocation64_spill] sm:$0xff] %v6572_v13  ;;  %v1337_v44 = vadd.f32 1.0, %v1305_v9  ;;  %v1306_v53 = vmul.f32 0.3275911, %v1274_v33  ;;  %v6574_v35 = vpop.f32.mrb[57].mxu0  ;;  %v4708_v55 = vpop.f32.mrb[6].mxu1  ;;  %v1721_v16 = vmul.f32 %v1689_v10, %v1273_v37  ;;  %v6581_v13 = vadd.f32 %v4707_v49, %v6548_v11 }
 0x175   :  { %9591 = vst [vmem:[#allocation65_spill] sm:$0xff] %v6574_v35  ;;  %5019 = vrcp.f32 %v1339_v63  ;;  %v1340_v58 = vadd.f32 1.0, %v1308_v7  ;;  %v6576_v15 = vpop.f32.mrb[58].mxu0  ;;  %v1101_v59 = vpop.f32.mrb[7].mxu1  ;;  %v6584_v9 = vadd.f32 %v6548_v11, %v1098_v0  ;;  %v6588_v63 = vmul.f32 0.5, %v1091_v19 }
 0x176   :  { %9592 = vst [vmem:[#allocation66_spill] sm:$0xff] %v6576_v15  ;;  %5021 = vrcp.f32 %v1337_v44  ;;  %v6578_v29 = vpop.f32.mrb[59].mxu0  ;;  %v1338_v22 = vadd.f32 1.0, %v1306_v53  ;;  %v6591_v7 = vadd.f32 %v4708_v55, %v6548_v11  ;;  %v1757_v43 = vmul.f32 1.442695, %v1723_v34 }
 0x177   :  { %9593 = vst [vmem:[#allocation67_spill] sm:$0xff] %v6578_v29  ;;  %5023 = vrcp.f32 %v1340_v58  ;;  %v6596_v10 = vmul.f32 0.70710677, %v6581_v13  ;;  %v6599_v53 = vadd.f32 %v6548_v11, %v1101_v59  ;;  %v1724_v0 = vmul.f32 %v1692_v31, %v1276_v54 }
 0x178   :  { %v1690_v37 = vsub.f32 0.0, %v1274_v33  ;;  %v6604_v19 = vmul.f32 0.70710677, %v6584_v9  ;;  %v6607_v55 = vmul.f32 0.70710677, %v6591_v7  ;;  %5025 = vrcp.f32 %v1338_v22 }
 0x179   :  { %v1753_v29 = vmul.f32 1.442695, %v1721_v16  ;;  %v1279_v58 = vand.u32 2147483647, %v6596_v10  ;;  %v6614_v59 = vmul.f32 0.5, %v1083_v32  ;;  %5027 = vpow2.f32 %v1757_v43 }
 0x17a   :  { %v4711_v47 = vpop.f32.mrb[8].mxu1  ;;  %v1277_v31 = vand.u32 2147483647, %v6604_v19  ;;  %v1280_v54 = vand.u32 2147483647, %v6607_v55  ;;  %v1722_v5 = vmul.f32 %v1690_v37, %v1274_v33  ;;  %vm1882_vm6 = vcmp.lt.f32.partialorder %v6568_v48, 0.0 }
 0x17b   :  { %v6586_v35 = vpop.f32.mrb[60].mxu0  ;;  %v6610_v34 = vpop.f32.mrb[9].mxu1  ;;  %v1311_v16 = vmul.f32 0.3275911, %v1279_v58  ;;  %v6625_v22 = vmul.f32 0.70710677, %v6599_v53  ;;  %5029 = vpow2.f32 %v1753_v29 }
 0x17c   :  { %9594 = vst [vmem:[#allocation68_spill] sm:$0xff] %v6586_v35  ;;  %v6593_v44 = vpop.f32.mrb[61].mxu0  ;;  %v6620_v35 = vmul.f32 0.5, %v1094_v36  ;;  %v1759_v41 = vmul.f32 1.442695, %v1724_v0  ;;  %v1695_v1 = vsub.f32 0.0, %v1279_v58 }
 0x17d   :  { %9595 = vst [vmem:[#allocation69_spill] sm:$0xff] %v6593_v44  ;;  %v6601_v49 = vpop.f32.mrb[62].mxu0  ;;  %v6622_v44 = vmul.f32 0.5, %v1086_v17  ;;  %v1309_v40 = vmul.f32 0.3275911, %v1277_v31  ;;  %v1343_v27 = vadd.f32 1.0, %v1311_v16 }
 0x17e   :  { %9596 = vst [vmem:[#allocation70_spill] sm:$0xff] %v6601_v49  ;;  %v6612_v15 = vpop.f32.mrb[63].mxu0  ;;  %v6618_v49 = vpop.f32.mrb[10].mxu1  ;;  %v1278_v28 = vand.u32 2147483647, %v6625_v22  ;;  %v1693_v56 = vsub.f32 0.0, %v1277_v31  ;;  %v1727_v8 = vmul.f32 %v1695_v1, %v1279_v58 }
 0x17f   :  { %9597 = vst [vmem:[#allocation71_spill] sm:$0xff] %v6612_v15  ;;  %v1312_v15 = vmul.f32 0.3275911, %v1280_v54  ;;  %v6627_v32 = vpop.eup %5019  ;;  %v6630_v3 = vpop.f32.mrb[11].mxu1  ;;  %v1341_v46 = vadd.f32 1.0, %v1309_v40  ;;  %5031 = vrcp.f32 %v1343_v27  ;;  %v1696_v37 = vsub.f32 0.0, %v1280_v54 }
 0x180   :  { %v6632_v36 = vpop.eup %5021  ;;  %v1403_v17 = vmul.f32 1.0614054, %v6627_v32  ;;  %v1755_v43 = vmul.f32 1.442695, %v1722_v5  ;;  %v1310_v16 = vmul.f32 0.3275911, %v1278_v28  ;;  %v1725_v50 = vmul.f32 %v1693_v56, %v1277_v31 }
 0x181   :  { %v1401_v33 = vmul.f32 1.0614054, %v6632_v36  ;;  %v1344_v0 = vadd.f32 1.0, %v1312_v15  ;;  %5033 = vrcp.f32 %v1341_v46  ;;  %v6636_v45 = vpop.eup %5023  ;;  %v1694_v57 = vsub.f32 0.0, %v1278_v28 }
 0x182   :  { %v1435_v6 = vadd.f32 -1.4531521, %v1403_v17  ;;  %5035 = vpow2.f32 %v1759_v41  ;;  %v6638_v51 = vpop.f32.mrb[12].mxu1  ;;  %v1404_v29 = vmul.f32 1.0614054, %v6636_v45  ;;  %v1342_v27 = vadd.f32 1.0, %v1310_v16  ;;  %v6644_v17 = vpop.eup %5025 }
 0x183   :  { %v1433_v14 = vadd.f32 -1.4531521, %v1401_v33  ;;  %v6642_v15 = vpop.f32.mrb[13].mxu1  ;;  %5037 = vrcp.f32 %v1344_v0  ;;  %v1728_v5 = vmul.f32 %v1696_v37, %v1280_v54  ;;  %v6648_v41 = vadd.f32 %v4711_v47, %v6548_v11 }
 0x184   :  { %v1467_v40 = vmul.f32 %v6627_v32, %v1435_v6  ;;  %v6650_v1 = vpop.f32.mrb[14].mxu1  ;;  %v1436_v33 = vadd.f32 -1.4531521, %v1404_v29  ;;  %v1402_v6 = vmul.f32 1.0614054, %v6644_v17  ;;  %5039 = vpow2.f32 %v1755_v43 }
 0x185   :  { %v1465_v46 = vmul.f32 %v6632_v36, %v1433_v14  ;;  %v1765_v31 = vmul.f32 1.442695, %v1727_v8  ;;  %5041 = vrcp.f32 %v1342_v27  ;;  %v1726_v16 = vmul.f32 %v1694_v57, %v1278_v28  ;;  %v6653_v25 = vpop.f32.mrb[15].mxu1 }
 0x186   :  { %v1499_v58 = vadd.f32 1.4214138, %v1467_v40  ;;  %v1468_v54 = vmul.f32 %v6636_v45, %v1436_v33  ;;  %v1434_v0 = vadd.f32 -1.4531521, %v1402_v6  ;;  %v6658_v47 = vmul.f32 0.70710677, %v6648_v41  ;;  %v5028_v40 = vpop.eup %5027 }
 0x187   :  { %v1497_v56 = vadd.f32 1.4214138, %v1465_v46  ;;  %v6660_v37 = vpop.f32.mrb[64].mxu0  ;;  %v1761_v43 = vmul.f32 1.442695, %v1725_v50  ;;  %v6665_v57 = vadd.f32 %v6548_v11, %v6610_v34  ;;  %v5030_v28 = vpop.eup %5029  ;;  %5043 = vpow2.f32 %v1765_v31 }
 0x188   :  { %v1531_v14 = vmul.f32 %v6627_v32, %v1499_v58  ;;  %v1767_v46 = vmul.f32 1.442695, %v1728_v5  ;;  %v6667_v8 = vpop.f32.mrb[65].mxu0  ;;  %v1500_v58 = vadd.f32 1.4214138, %v1468_v54  ;;  %v1466_v33 = vmul.f32 %v6644_v17, %v1434_v0 }
 0x189   :  { %v1529_v29 = vmul.f32 %v6632_v36, %v1497_v56  ;;  %v6671_v6 = vand.u32 2147483647, %v6658_v47  ;;  %v6673_v23 = vpop.eup %5031  ;;  %v6675_v50 = vmul.f32 1.442695, %v1726_v16  ;;  %v6678_v5 = vmul.f32 0.70710677, %v6665_v57 }
 0x18a   :  { %v1563_v27 = vadd.f32 -0.28449672, %v1531_v14  ;;  %v1532_v14 = vmul.f32 %v6636_v45, %v1500_v58  ;;  %v1498_v54 = vadd.f32 1.4214138, %v1466_v33  ;;  %v1407_v0 = vmul.f32 1.0614054, %v6673_v23 }
 0x18b   :  { %v1561_v30 = vadd.f32 -0.28449672, %v1529_v29  ;;  %v6680_v34 = vpop.eup %5033  ;;  %v6685_v12 = vpop.f32.mrb[66].mxu0  ;;  %5045 = vpow2.f32 %v1761_v43  ;;  %v1315_v60 = vmul.f32 0.3275911, %v6671_v6  ;;  %vm1887_vm7 = vcmp.lt.f32.partialorder %v6596_v10, 0.0 }
 0x18c   :  { %v1595_v56 = vmul.f32 %v6627_v32, %v1563_v27  ;;  %v6687_v42 = vpop.f32.mrb[16].mxu1  ;;  %v5036_v29 = vpop.eup %5035  ;;  %v1405_v16 = vmul.f32 1.0614054, %v6680_v34  ;;  %v1564_v26 = vadd.f32 -0.28449672, %v1532_v14  ;;  %v1530_v58 = vmul.f32 %v6644_v17, %v1498_v54 }
 0x18d   :  { %v1593_v31 = vmul.f32 %v6632_v36, %v1561_v30  ;;  %v6692_v52 = vpop.f32.mrb[67].mxu0  ;;  %v1439_v33 = vadd.f32 -1.4531521, %v1407_v0  ;;  %v6695_v2 = vpop.eup %5037  ;;  %5047 = vpow2.f32 %v1767_v46  ;;  %v1347_v30 = vadd.f32 1.0, %v1315_v60 }
 0x18e   :  { %9598 = vst [vmem:[#allocation72_spill] sm:$0xff] %v6692_v52  ;;  %v1627_v27 = vadd.f32 0.2548296, %v1595_v56  ;;  %v1437_v38 = vadd.f32 -1.4531521, %v1405_v16  ;;  %v6698_v24 = vpop.f32.mrb[17].mxu1  ;;  %v5040_v43 = vpop.eup %5039  ;;  %v1596_v56 = vmul.f32 %v6636_v45, %v1564_v26 }
 0x18f   :  { %v1625_v20 = vadd.f32 0.2548296, %v1593_v31  ;;  %9599 = vst [vmem:[#allocation73_spill] sm:$0xff] %v6698_v24  ;;  %v1562_v14 = vadd.f32 -0.28449672, %v1530_v58  ;;  %v1471_v54 = vmul.f32 %v6673_v23, %v1439_v33  ;;  %v6704_v0 = vpop.f32.mrb[18].mxu1  ;;  %v6708_v31 = vpop.eup %5041  ;;  %5049 = vrcp.f32 %v1347_v30 }
 0x190   :  { %v1659_v39 = vmul.f32 %v6627_v32, %v1627_v27  ;;  %9600 = vst [vmem:[#allocation74_spill] sm:$0xff] %v6704_v0  ;;  %v6706_v21 = vpop.f32.mrb[68].mxu0  ;;  %v1469_v46 = vmul.f32 %v6680_v34, %v1437_v38  ;;  %v1408_v16 = vmul.f32 1.0614054, %v6695_v2  ;;  %v6713_v32 = vpop.f32.mrb[19].mxu1  ;;  %5051 = vpow2.f32 %v6675_v50 }
 0x191   :  { %9601 = vst [vmem:[#allocation75_spill] sm:$0xff] %v6706_v21  ;;  %v1657_v60 = vmul.f32 %v6632_v36, %v1625_v20  ;;  %9602 = vst [vmem:[#allocation76_spill] sm:$0xff] %v6713_v32  ;;  %v6715_v27 = vpop.f32.mrb[69].mxu0  ;;  %v1628_v58 = vadd.f32 0.2548296, %v1596_v56  ;;  %v1594_v33 = vmul.f32 %v6644_v17, %v1562_v14  ;;  %v1215_v10 = vmul.f32 0.5, %v6581_v13 }
 0x192   :  { %9603 = vst [vmem:[#allocation77_spill] sm:$0xff] %v6715_v27  ;;  %v1819_v26 = vmul.f32 %v5028_v40, %v1659_v39  ;;  %v1503_v18 = vadd.f32 1.4214138, %v1471_v54  ;;  %v6718_v0 = vpop.f32.mrb[70].mxu0  ;;  %v6720_v21 = vpop.f32.mrb[20].mxu1  ;;  %vm1888_vm8 = vcmp.lt.f32.partialorder %v6607_v55, 0.0 }
 0x193   :  { %9604 = vst [vmem:[#allocation78_spill] sm:$0xff] %v6718_v0  ;;  %9605 = vst [vmem:[#allocation79_spill] sm:$0xff] %v6720_v21  ;;  %v1817_v24 = vmul.f32 %v5030_v28, %v1657_v60  ;;  %v1501_v38 = vadd.f32 1.4214138, %v1469_v46  ;;  %v1440_v20 = vadd.f32 -1.4531521, %v1408_v16  ;;  %v1660_v32 = vmul.f32 %v6636_v45, %v1628_v58  ;;  %v5044_v40 = vpop.eup %5043 }
 0x194   :  { %v1406_v36 = vmul.f32 1.0614054, %v6708_v31  ;;  %v1851_v30 = vsub.f32 1.0, %v1819_v26  ;;  %v1626_v27 = vadd.f32 0.2548296, %v1594_v33  ;;  %v1535_v39 = vmul.f32 %v6673_v23, %v1503_v18 }
 0x195   :  { %v1849_v56 = vsub.f32 1.0, %v1817_v24  ;;  %v1533_v14 = vmul.f32 %v6680_v34, %v1501_v38  ;;  %v1472_v28 = vmul.f32 %v6695_v2, %v1440_v20  ;;  %v1820_v46 = vmul.f32 %v5036_v29, %v1660_v32  ;;  %v5046_v26 = vpop.eup %5045 }
 0x196   :  { %v1438_v54 = vadd.f32 -1.4531521, %v1406_v36  ;;  %v1915_v60 = vsub.f32 0.0, %v1851_v30  ;;  %v1658_v16 = vmul.f32 %v6644_v17, %v1626_v27  ;;  %v1567_v21 = vadd.f32 -0.28449672, %v1535_v39  ;;  %v6739_v36 = vpop.f32.mrb[71].mxu0 }
 0x197   :  { %v1913_v0 = vsub.f32 0.0, %v1849_v56  ;;  %v1565_v45 = vadd.f32 -0.28449672, %v1533_v14  ;;  %v1504_v58 = vadd.f32 1.4214138, %v1472_v28  ;;  %v1852_v33 = vsub.f32 1.0, %v1820_v46  ;;  %v5048_v20 = vpop.eup %5047 }
 0x198   :  { %v1470_v18 = vmul.f32 %v6708_v31, %v1438_v54  ;;  %v1947_v24 = vsel %vm1883_vm3, %v1915_v60, %v1851_v30  ;;  %v1818_v52 = vmul.f32 %v5040_v43, %v1658_v16  ;;  %v1599_v38 = vmul.f32 %v6673_v23, %v1567_v21 }
 0x199   :  { %v1945_v29 = vsel %vm1881_vm4, %v1913_v0, %v1849_v56  ;;  %v1597_v17 = vmul.f32 %v6680_v34, %v1565_v45  ;;  %v1536_v32 = vmul.f32 %v6695_v2, %v1504_v58  ;;  %v1699_v27 = vsub.f32 0.0, %v6671_v6  ;;  %v6741_v28 = vpop.eup %5049  ;;  %v6750_v58 = vpop.f32.mrb[21].mxu1 }
 0x19a   :  { %v1979_v39 = vadd.f32 1.0, %v1947_v24  ;;  %v1916_v14 = vsub.f32 0.0, %v1852_v33  ;;  %v1850_v62 = vsub.f32 1.0, %v1818_v52  ;;  %v1631_v30 = vadd.f32 0.2548296, %v1599_v38 }
 0x19b   :  { %v1629_v43 = vadd.f32 0.2548296, %v1597_v17  ;;  %v1568_v21 = vadd.f32 -0.28449672, %v1536_v32  ;;  %v1502_v54 = vadd.f32 1.4214138, %v1470_v18 }
 0x19c   :  { %v1977_v61 = vadd.f32 1.0, %v1945_v29  ;;  %v1948_v0 = vsel %vm1884_vm5, %v1916_v14, %v1852_v33  ;;  %v1914_v56 = vsub.f32 0.0, %v1850_v62  ;;  %v1663_v60 = vmul.f32 %v6673_v23, %v1631_v30 }
 0x19d   :  { %v1980_v46 = vadd.f32 1.0, %v1948_v0  ;;  %v1661_v16 = vmul.f32 %v6680_v34, %v1629_v43  ;;  %v1600_v52 = vmul.f32 %v6695_v2, %v1568_v21  ;;  %v1534_v45 = vmul.f32 %v6708_v31, %v1502_v54  ;;  %v5052_v0 = vpop.eup %5051 }
 0x19e   :  { %v6753_v18 = vmul.f32 %v1979_v39, %v6588_v63  ;;  %v1946_v50 = vsel %vm1882_vm6, %v1914_v56, %v1850_v62  ;;  %v1823_v4 = vmul.f32 %v5044_v40, %v1663_v60  ;;  %v1411_v24 = vmul.f32 1.0614054, %v6741_v28 }
 0x19f   :  { %v6759_v23 = vmul.f32 %v1980_v46, %v6620_v35  ;;  %v1978_v33 = vadd.f32 1.0, %v1946_v50  ;;  %v1821_v34 = vmul.f32 %v5046_v26, %v1661_v16  ;;  %v1632_v38 = vadd.f32 0.2548296, %v1600_v52 }
 0x1a0   :  { %9606 = vst [vmem:[#allocation80_spill] sm:$0xff] %v6753_v18  ;;  %v6762_v29 = vmul.f32 %v1977_v61, %v6614_v59  ;;  %v1855_v17 = vsub.f32 1.0, %v1823_v4  ;;  %v1566_v32 = vadd.f32 -0.28449672, %v1534_v45  ;;  %v1443_v14 = vadd.f32 -1.4531521, %v1411_v24 }
 0x1a1   :  { %9607 = vst [vmem:[#allocation81_spill] sm:$0xff] %v6759_v23  ;;  %v6767_v48 = vmul.f32 %v1978_v33, %v6622_v44  ;;  %v1853_v40 = vsub.f32 1.0, %v1821_v34  ;;  %v1664_v39 = vmul.f32 %v6695_v2, %v1632_v38  ;;  %v1281_v59 = vand.u32 2147483647, %v6678_v5 }
 0x1a2   :  { %9608 = vst [vmem:[#allocation82_spill] sm:$0xff] %v6762_v29  ;;  %v1919_v35 = vsub.f32 0.0, %v1855_v17  ;;  %v1598_v62 = vmul.f32 %v6708_v31, %v1566_v32  ;;  %v1475_v26 = vmul.f32 %v6741_v28, %v1443_v14  ;;  %v1731_v21 = vmul.f32 %v1699_v27, %v6671_v6  ;;  %v6785_v27 = vpop.f32.mrb[22].mxu1 }
 0x1a3   :  { %9609 = vst [vmem:[#allocation83_spill] sm:$0xff] %v6767_v48  ;;  %v1824_v43 = vmul.f32 %v5048_v20, %v1664_v39  ;;  %v1313_v61 = vmul.f32 0.3275911, %v1281_v59  ;;  %v6779_v60 = vadd.f32 %v6618_v49, %v6548_v11  ;;  %v1917_v46 = vsub.f32 0.0, %v1853_v40  ;;  %v6798_v14 = vpop.f32.mrb[23].mxu1 }
 0x1a4   :  { %v1630_v44 = vadd.f32 0.2548296, %v1598_v62  ;;  %v1507_v54 = vadd.f32 1.4214138, %v1475_v26  ;;  %v1951_v2 = vsel %vm1887_vm7, %v1919_v35, %v1855_v17  ;;  %v1773_v20 = vmul.f32 1.442695, %v1731_v21 }
 0x1a5   :  { %v1856_v56 = vsub.f32 1.0, %v1824_v43  ;;  %v1345_v45 = vadd.f32 1.0, %v1313_v61  ;;  %v1983_v50 = vadd.f32 1.0, %v1951_v2  ;;  %vm1885_vm9 = vcmp.lt.f32.partialorder %v6604_v19, 0.0 }
 0x1a6   :  { %v1662_v16 = vmul.f32 %v6708_v31, %v1630_v44  ;;  %v1539_v52 = vmul.f32 %v6741_v28, %v1507_v54  ;;  %v6789_v31 = vmul.f32 0.70710677, %v6779_v60  ;;  %v6793_v33 = vadd.f32 %v6548_v11, %v6630_v3 }
 0x1a7   :  { %v1920_v6 = vsub.f32 0.0, %v1856_v56  ;;  %5053 = vrcp.f32 %v1345_v45  ;;  %v1949_v13 = vsel %vm1885_vm9, %v1917_v46, %v1853_v40  ;;  %v1216_v55 = vmul.f32 0.5, %v6591_v7 }
 0x1a8   :  { %v1822_v4 = vmul.f32 %v5052_v0, %v1662_v16  ;;  %v1571_v24 = vadd.f32 -0.28449672, %v1539_v52  ;;  %5055 = vpow2.f32 %v1773_v20  ;;  %v1284_v32 = vand.u32 2147483647, %v6789_v31  ;;  %v6827_v20 = vpop.f32.mrb[72].mxu0 }
 0x1a9   :  { %v1952_v49 = vsel %vm1888_vm8, %v1920_v6, %v1856_v56  ;;  %v6800_v19 = vmul.f32 %v1983_v50, %v1215_v10  ;;  %v6805_v3 = vmul.f32 0.70710677, %v6793_v33  ;;  %v1213_v40 = vmul.f32 0.5, %v6584_v9 }
 0x1aa   :  { %v1984_v34 = vadd.f32 1.0, %v1952_v49  ;;  %v1854_v38 = vsub.f32 1.0, %v1822_v4  ;;  %v1603_v17 = vmul.f32 %v6741_v28, %v1571_v24  ;;  %v1981_v7 = vadd.f32 1.0, %v1949_v13 }
 0x1ab   :  { %9610 = vst [vmem:[#allocation84_spill] sm:$0xff] %v6800_v19  ;;  %vm1886_vm10 = vcmp.lt.f32.partialorder %v6625_v22, 0.0  ;;  %v1316_v62 = vmul.f32 0.3275911, %v1284_v32  ;;  %v1697_v21 = vsub.f32 0.0, %v1281_v59  ;;  %v1214_v54 = vmul.f32 0.5, %v6599_v53 }
 0x1ac   :  { %v6802_v39 = vmul.f32 %v1984_v34, %v1216_v55  ;;  %v1918_v35 = vsub.f32 0.0, %v1854_v38  ;;  %v1282_v44 = vand.u32 2147483647, %v6805_v3  ;;  %v1635_v0 = vadd.f32 0.2548296, %v1603_v17 }
 0x1ad   :  { %v1348_v2 = vadd.f32 1.0, %v1316_v62  ;;  %v6813_v46 = vmul.f32 %v1981_v7, %v1213_v40  ;;  %v6819_v22 = vadd.f32 %v6638_v51, %v6548_v11  ;;  %v1729_v52 = vmul.f32 %v1697_v21, %v1281_v59 }
 0x1ae   :  { %9611 = vst [vmem:[#allocation85_spill] sm:$0xff] %v6802_v39  ;;  %v1950_v43 = vsel %vm1886_vm10, %v1918_v35, %v1854_v38  ;;  %v1314_v56 = vmul.f32 0.3275911, %v1282_v44  ;;  %v1667_v10 = vmul.f32 %v6741_v28, %v1635_v0  ;;  %v1700_v24 = vsub.f32 0.0, %v1284_v32  ;;  %v6840_v28 = vpop.f32.mrb[73].mxu0 }
 0x1af   :  { %v1982_v61 = vadd.f32 1.0, %v1950_v43  ;;  %9612 = vst [vmem:[#allocation86_spill] sm:$0xff] %v6813_v46  ;;  %5057 = vrcp.f32 %v1348_v2  ;;  %v6830_v50 = vmul.f32 0.70710677, %v6819_v22  ;;  %v6834_v59 = vadd.f32 %v6548_v11, %v6642_v15 }
 0x1b0   :  { %v1346_v45 = vadd.f32 1.0, %v1314_v56  ;;  %v6838_v49 = vadd.f32 %v6650_v1, %v6548_v11  ;;  %v1769_v13 = vmul.f32 1.442695, %v1729_v52  ;;  %v6848_v35 = vmul.f32 0.5, %v6648_v41  ;;  %v6859_v41 = vpop.f32.mrb[74].mxu0 }
 0x1b1   :  { %v6815_v9 = vmul.f32 %v1982_v61, %v1214_v54  ;;  %v6821_v16 = vpop.eup %5053  ;;  %v1287_v55 = vand.u32 2147483647, %v6830_v50  ;;  %v6845_v17 = vmul.f32 0.70710677, %v6834_v59  ;;  %v6854_v1 = vmul.f32 0.5, %v6665_v57 }
 0x1b2   :  { %v1409_v6 = vmul.f32 1.0614054, %v6821_v16  ;;  %5059 = vrcp.f32 %v1346_v45  ;;  %v5056_v4 = vpop.eup %5055  ;;  %v6851_v40 = vmul.f32 0.70710677, %v6838_v49  ;;  %v1732_v62 = vmul.f32 %v1700_v24, %v1284_v32 }
 0x1b3   :  { %9613 = vst [vmem:[#allocation87_spill] sm:$0xff] %v6815_v9  ;;  %v1827_v34 = vmul.f32 %v5056_v4, %v1667_v10  ;;  %v1319_v15 = vmul.f32 0.3275911, %v1287_v55  ;;  %v1285_v43 = vand.u32 2147483647, %v6845_v17  ;;  %vm1891_vm11 = vcmp.lt.f32.partialorder %v6658_v47, 0.0 }
 0x1b4   :  { %v1441_v51 = vadd.f32 -1.4531521, %v1409_v6  ;;  %5061 = vpow2.f32 %v1769_v13  ;;  %v1698_v21 = vsub.f32 0.0, %v1282_v44  ;;  %v1288_v61 = vand.u32 2147483647, %v6851_v40 }
 0x1b5   :  { %v1351_v54 = vadd.f32 1.0, %v1319_v15  ;;  %v1859_v2 = vsub.f32 1.0, %v1827_v34  ;;  %v6865_v57 = vmul.f32 0.5, %v6779_v60  ;;  %v1317_v32 = vmul.f32 0.3275911, %v1285_v43 }
 0x1b6   :  { %v1473_v38 = vmul.f32 %v6821_v16, %v1441_v51  ;;  %v1703_v45 = vsub.f32 0.0, %v1287_v55  ;;  %v1320_v10 = vmul.f32 0.3275911, %v1288_v61  ;;  %v1775_v4 = vmul.f32 1.442695, %v1732_v62 }
 0x1b7   :  { %5063 = vrcp.f32 %v1351_v54  ;;  %v1349_v51 = vadd.f32 1.0, %v1317_v32  ;;  %v1701_v24 = vsub.f32 0.0, %v1285_v43  ;;  %v1730_v15 = vmul.f32 %v1698_v21, %v1282_v44  ;;  %v6879_v62 = vld [vmem:[%s9193_s6] ss:$0 sm:$0xff] }
 0x1b8   :  { %v1505_v7 = vadd.f32 1.4214138, %v1473_v38  ;;  %v1352_v34 = vadd.f32 1.0, %v1320_v10  ;;  %v1923_v60 = vsub.f32 0.0, %v1859_v2  ;;  %v1735_v32 = vmul.f32 %v1703_v45, %v1287_v55 }
 0x1b9   :  { %v6861_v0 = vpop.eup %5057  ;;  %5065 = vrcp.f32 %v1349_v51  ;;  %v1704_v44 = vsub.f32 0.0, %v1288_v61  ;;  %v6887_v51 = vadd.f32 %v6660_v37, %v6879_v62  ;;  %vm1889_vm12 = vcmp.lt.f32.partialorder %v6678_v5, 0.0 }
 0x1ba   :  { %v1537_v56 = vmul.f32 %v6821_v16, %v1505_v7  ;;  %v1412_v52 = vmul.f32 1.0614054, %v6861_v0  ;;  %v6872_v7 = vadd.f32 %v6548_v11, %v6653_v25  ;;  %5067 = vrcp.f32 %v1352_v34 }
 0x1bb   :  { %v1733_v25 = vmul.f32 %v1701_v24, %v1285_v43  ;;  %5069 = vpow2.f32 %v1775_v4  ;;  %v1955_v53 = vsel %vm1891_vm11, %v1923_v60, %v1859_v2  ;;  %v1736_v34 = vmul.f32 %v1704_v44, %v1288_v61  ;;  %v6907_v61 = vpop.f32.mrb[24].mxu1 }
 0x1bc   :  { %v1569_v6 = vadd.f32 -0.28449672, %v1537_v56  ;;  %v6868_v13 = vpop.eup %5059  ;;  %v1444_v38 = vadd.f32 -1.4531521, %v1412_v52  ;;  %v6883_v11 = vmul.f32 0.70710677, %v6872_v7  ;;  %v6930_v46 = vadd.f32 %v6879_v62, %v6667_v8 }
 0x1bd   :  { %v1410_v54 = vmul.f32 1.0614054, %v6868_v13  ;;  %v6896_v4 = vmul.f32 0.70710677, %v6887_v51  ;;  %v6902_v2 = vmul.f32 0.5, %v6793_v33  ;;  %vm1892_vm13 = vcmp.lt.f32.partialorder %v6789_v31, 0.0 }
 0x1be   :  { %v1601_v26 = vmul.f32 %v6821_v16, %v1569_v6  ;;  %v1476_v56 = vmul.f32 %v6861_v0, %v1444_v38  ;;  %v1771_v6 = vmul.f32 1.442695, %v1730_v15  ;;  %v5062_v43 = vpop.eup %5061  ;;  %v1781_v38 = vmul.f32 1.442695, %v1735_v32 }
 0x1bf   :  { %v1442_v52 = vadd.f32 -1.4531521, %v1410_v54  ;;  %v1777_v54 = vmul.f32 1.442695, %v1733_v25  ;;  %v6905_v60 = vand.u32 2147483647, %v6896_v4 }
 0x1c0   :  { %v1633_v21 = vadd.f32 0.2548296, %v1601_v26  ;;  %v1508_v10 = vadd.f32 1.4214138, %v1476_v56  ;;  %v1286_v26 = vand.u32 2147483647, %v6883_v11  ;;  %5071 = vpow2.f32 %v1771_v6 }
 0x1c1   :  { %v1474_v45 = vmul.f32 %v6868_v13, %v1442_v52  ;;  %v6898_v47 = vpop.eup %5063  ;;  %v1987_v25 = vadd.f32 1.0, %v1955_v53  ;;  %5073 = vpow2.f32 %v1781_v38  ;;  %vm1890_vm14 = vcmp.lt.f32.partialorder %v6805_v3, 0.0 }
 0x1c2   :  { %v1665_v55 = vmul.f32 %v6821_v16, %v1633_v21  ;;  %v1540_v24 = vmul.f32 %v6861_v0, %v1508_v10  ;;  %v1318_v56 = vmul.f32 0.3275911, %v1286_v26  ;;  %v1415_v21 = vmul.f32 1.0614054, %v6898_v47 }
 0x1c3   :  { %v1506_v37 = vadd.f32 1.4214138, %v1474_v45  ;;  %v6912_v45 = vpop.eup %5065  ;;  %vm1895_vm15 = vcmp.lt.f32.partialorder %v6830_v50, 0.0  ;;  %vm1896_vm0 = vcmp.lt.f32.partialorder %v6851_v40, 0.0  ;;  %vm1893_vm2 = vcmp.lt.f32.partialorder %v6845_v17, 0.0 }
 0x1c4   :  { %v1825_v15 = vmul.f32 %v5062_v43, %v1665_v55  ;;  %v1572_v16 = vadd.f32 -0.28449672, %v1540_v24  ;;  %v1350_v52 = vadd.f32 1.0, %v1318_v56  ;;  %v1783_v55 = vmul.f32 1.442695, %v1736_v34  ;;  %v6914_v24 = vpop.eup %5067 }
 0x1c5   :  { %v1538_v44 = vmul.f32 %v6868_v13, %v1506_v37  ;;  %v1447_v6 = vadd.f32 -1.4531521, %v1415_v21  ;;  %v1702_v43 = vsub.f32 0.0, %v1286_v26  ;;  %v3093_v37 = vmul.f32 0.3275911, %v6905_v60 }
 0x1c6   :  { %v1857_v32 = vsub.f32 1.0, %v1825_v15  ;;  %v1604_v10 = vmul.f32 %v6861_v0, %v1572_v16  ;;  %5075 = vrcp.f32 %v1350_v52  ;;  %v1413_v15 = vmul.f32 1.0614054, %v6912_v45  ;;  %v5070_v16 = vpop.eup %5069 }
 0x1c7   :  { %v1570_v33 = vadd.f32 -0.28449672, %v1538_v44  ;;  %5077 = vpow2.f32 %v1777_v54  ;;  %v1479_v38 = vmul.f32 %v6898_v47, %v1447_v6  ;;  %v1416_v34 = vmul.f32 1.0614054, %v6914_v24 }
 0x1c8   :  { %v1636_v63 = vadd.f32 0.2548296, %v1604_v10  ;;  %v1921_v56 = vsub.f32 0.0, %v1857_v32  ;;  %v6923_v44 = vmul.f32 %v1987_v25, %v6848_v35  ;;  %v1445_v52 = vadd.f32 -1.4531521, %v1413_v15 }
 0x1c9   :  { %v1602_v53 = vmul.f32 %v6868_v13, %v1570_v33  ;;  %5079 = vpow2.f32 %v1783_v55  ;;  %v1511_v10 = vadd.f32 1.4214138, %v1479_v38  ;;  %v1448_v30 = vadd.f32 -1.4531521, %v1416_v34 }
 0x1ca   :  { %9614 = vst [vmem:[#allocation88_spill] sm:$0xff] %v6923_v44  ;;  %v1668_v21 = vmul.f32 %v6861_v0, %v1636_v63  ;;  %v1734_v19 = vmul.f32 %v1702_v43, %v1286_v26  ;;  %v1477_v33 = vmul.f32 %v6912_v45, %v1445_v52  ;;  %v3125_v6 = vadd.f32 1.0, %v3093_v37  ;;  %v6937_v26 = vpop.f32.mrb[75].mxu0  ;;  %v5072_v55 = vpop.eup %5071 }
 0x1cb   :  { %v1634_v54 = vadd.f32 0.2548296, %v1602_v53  ;;  %v1953_v35 = vsel %vm1889_vm12, %v1921_v56, %v1857_v32  ;;  %v1543_v0 = vmul.f32 %v6898_v47, %v1511_v10  ;;  %v1480_v25 = vmul.f32 %v6914_v24, %v1448_v30  ;;  %v5074_v5 = vpop.eup %5073 }
 0x1cc   :  { %v1828_v39 = vmul.f32 %v5070_v16, %v1668_v21  ;;  %v1509_v15 = vadd.f32 1.4214138, %v1477_v33  ;;  %5081 = vrcp.f32 %v3125_v6  ;;  %v3477_v37 = vsub.f32 0.0, %v6905_v60 }
 0x1cd   :  { %v1666_v63 = vmul.f32 %v6868_v13, %v1634_v54  ;;  %v1575_v8 = vadd.f32 -0.28449672, %v1543_v0  ;;  %v1512_v38 = vadd.f32 1.4214138, %v1480_v25  ;;  %v1779_v34 = vmul.f32 1.442695, %v1734_v19 }
 0x1ce   :  { %v1860_v43 = vsub.f32 1.0, %v1828_v39  ;;  %v1985_v32 = vadd.f32 1.0, %v1953_v35  ;;  %v1541_v13 = vmul.f32 %v6912_v45, %v1509_v15  ;;  %v6942_v16 = vmul.f32 0.70710677, %v6930_v46  ;;  %v6952_v19 = vpop.f32.mrb[25].mxu1 }
 0x1cf   :  { %v1826_v53 = vmul.f32 %v5072_v55, %v1666_v63  ;;  %v1607_v39 = vmul.f32 %v6898_v47, %v1575_v8  ;;  %v1544_v52 = vmul.f32 %v6914_v24, %v1512_v38  ;;  %v6950_v54 = vadd.f32 %v6685_v12, %v6879_v62 }
 0x1d0   :  { %v1924_v56 = vsub.f32 0.0, %v1860_v43  ;;  %v6944_v30 = vpop.eup %5075  ;;  %v1573_v6 = vadd.f32 -0.28449672, %v1541_v13  ;;  %v6958_v63 = vand.u32 2147483647, %v6942_v16  ;;  %v6961_v12 = vmul.f32 %v1985_v32, %v6854_v1 }
 0x1d1   :  { %v1858_v21 = vsub.f32 1.0, %v1826_v53  ;;  %v5078_v10 = vpop.eup %5077  ;;  %v1414_v35 = vmul.f32 1.0614054, %v6944_v30  ;;  %v1639_v55 = vadd.f32 0.2548296, %v1607_v39  ;;  %vm1894_vm3 = vcmp.lt.f32.partialorder %v6883_v11, 0.0 }
 0x1d2   :  { %v1956_v33 = vsel %vm1892_vm13, %v1924_v56, %v1860_v43  ;;  %v1576_v15 = vadd.f32 -0.28449672, %v1544_v52  ;;  %9615 = vst [vmem:[#allocation89_spill] sm:$0xff] %v6961_v12  ;;  %v1605_v8 = vmul.f32 %v6912_v45, %v1573_v6  ;;  %v3091_v31 = vmul.f32 0.3275911, %v6958_v63 }
 0x1d3   :  { %v1988_v0 = vadd.f32 1.0, %v1956_v33  ;;  %v1922_v25 = vsub.f32 0.0, %v1858_v21  ;;  %v5080_v53 = vpop.eup %5079  ;;  %v1446_v38 = vadd.f32 -1.4531521, %v1414_v35  ;;  %v1671_v13 = vmul.f32 %v6898_v47, %v1639_v55 }
 0x1d4   :  { %v1608_v39 = vmul.f32 %v6914_v24, %v1576_v15  ;;  %v1637_v33 = vadd.f32 0.2548296, %v1605_v8  ;;  %v3123_v32 = vadd.f32 1.0, %v3091_v31  ;;  %v3509_v31 = vmul.f32 %v3477_v37, %v6905_v60 }
 0x1d5   :  { %v6966_v43 = vmul.f32 %v1988_v0, %v6865_v57  ;;  %v1954_v56 = vsel %vm1890_vm14, %v1922_v25, %v1858_v21  ;;  %v1478_v1 = vmul.f32 %v6944_v30, %v1446_v38  ;;  %v1831_v35 = vmul.f32 %v5074_v5, %v1671_v13 }
 0x1d6   :  { %v1986_v52 = vadd.f32 1.0, %v1954_v56  ;;  %v1640_v9 = vadd.f32 0.2548296, %v1608_v39  ;;  %v6976_v57 = vmul.f32 0.70710677, %v6950_v54  ;;  %v6978_v0 = vpop.eup %5081  ;;  %v1669_v47 = vmul.f32 %v6912_v45, %v1637_v33 }
 0x1d7   :  { %9616 = vst [vmem:[#allocation90_spill] sm:$0xff] %v6966_v43  ;;  %v1510_v21 = vadd.f32 1.4214138, %v1478_v1  ;;  %5083 = vrcp.f32 %v3123_v32  ;;  %v1863_v25 = vsub.f32 1.0, %v1831_v35  ;;  %v3189_v15 = vmul.f32 1.0614054, %v6978_v0 }
 0x1d8   :  { %v6981_v3 = vmul.f32 %v1986_v52, %v6902_v2  ;;  %v1672_v55 = vmul.f32 %v6914_v24, %v1640_v9  ;;  %5085 = vpow2.f32 %v1779_v34  ;;  %v1829_v8 = vmul.f32 %v5078_v10, %v1669_v47  ;;  %v6994_v10 = vpop.f32.mrb[26].mxu1 }
 0x1d9   :  { %v1542_v38 = vmul.f32 %v6944_v30, %v1510_v21  ;;  %v1927_v2 = vsub.f32 0.0, %v1863_v25  ;;  %v3221_v13 = vadd.f32 -1.4531521, %v3189_v15  ;;  %v1223_v45 = vmul.f32 0.5, %v6819_v22  ;;  %v7000_v22 = vld [vmem:[%s9189_s2] ss:$0 sm:$0xff] }
 0x1da   :  { %9617 = vst [vmem:[#allocation91_spill] sm:$0xff] %v6981_v3  ;;  %v1832_v56 = vmul.f32 %v5080_v53, %v1672_v55  ;;  %v3062_v9 = vand.u32 2147483647, %v6976_v57  ;;  %v1861_v34 = vsub.f32 1.0, %v1829_v8  ;;  %v3543_v60 = vmul.f32 1.442695, %v3509_v31 }
 0x1db   :  { %v1574_v39 = vadd.f32 -0.28449672, %v1542_v38  ;;  %v1959_v24 = vsel %vm1895_vm15, %v1927_v2, %v1863_v25  ;;  %v3253_v33 = vmul.f32 %v6978_v0, %v3221_v13  ;;  %v7004_v50 = vadd.f32 %v7000_v22, %v6687_v42  ;;  %v7008_v21 = vpop.f32.mrb[27].mxu1 }
 0x1dc   :  { %v1864_v52 = vsub.f32 1.0, %v1832_v56  ;;  %v3094_v37 = vmul.f32 0.3275911, %v3062_v9  ;;  %v1224_v53 = vmul.f32 0.5, %v6838_v49  ;;  %v3475_v47 = vsub.f32 0.0, %v6958_v63 }
 0x1dd   :  { %v1606_v1 = vmul.f32 %v6944_v30, %v1574_v39  ;;  %v3285_v35 = vadd.f32 1.4214138, %v3253_v33  ;;  %v1991_v25 = vadd.f32 1.0, %v1959_v24  ;;  %v1925_v8 = vsub.f32 0.0, %v1861_v34 }
 0x1de   :  { %v1928_v32 = vsub.f32 0.0, %v1864_v52  ;;  %v3126_v15 = vadd.f32 1.0, %v3094_v37  ;;  %v7017_v56 = vmul.f32 0.70710677, %v7004_v50  ;;  %v3507_v24 = vmul.f32 %v3475_v47, %v6958_v63 }
 0x1df   :  { %v1638_v55 = vadd.f32 0.2548296, %v1606_v1  ;;  %v3317_v42 = vmul.f32 %v6978_v0, %v3285_v35  ;;  %v7021_v33 = vmul.f32 %v1991_v25, %v1223_v45  ;;  %v3478_v35 = vsub.f32 0.0, %v3062_v9 }
 0x1e0   :  { %v1960_v38 = vsel %vm1896_vm0, %v1928_v32, %v1864_v52  ;;  %5087 = vrcp.f32 %v3126_v15  ;;  %v1291_v37 = vand.u32 2147483647, %v7017_v56  ;;  %v3539_v25 = vmul.f32 1.442695, %v3507_v24 }
 0x1e1   :  { %v7013_v31 = vpop.eup %5083  ;;  %v1992_v49 = vadd.f32 1.0, %v1960_v38  ;;  %v1670_v2 = vmul.f32 %v6944_v30, %v1638_v55  ;;  %v3349_v39 = vadd.f32 -0.28449672, %v3317_v42  ;;  %5089 = vpow2.f32 %v3543_v60  ;;  %9618 = vst [vmem:[#allocation92_spill] sm:$0xff] %v7021_v33  ;;  %v9620_v55 = vld [vmem:[#allocation72_spill] sm:$0xff]  ;;  %v7039_v42 = vpop.f32.mrb[76].mxu0 }
 0x1e2   :  { %v5086_v13 = vpop.eup %5085  ;;  %v3187_v40 = vmul.f32 1.0614054, %v7013_v31  ;;  %v7029_v15 = vadd.f32 %v6879_v62, %v9620_v55  ;;  %v1957_v60 = vsel %vm1893_vm2, %v1925_v8, %v1861_v34  ;;  %v1221_v24 = vmul.f32 0.5, %v6834_v59  ;;  %v7050_v6 = vpop.f32.mrb[77].mxu0 }
 0x1e3   :  { %v7023_v52 = vmul.f32 %v1992_v49, %v1224_v53  ;;  %v1830_v1 = vmul.f32 %v5086_v13, %v1670_v2  ;;  %v3381_v30 = vmul.f32 %v6978_v0, %v3349_v39  ;;  %v1323_v53 = vmul.f32 0.3275911, %v1291_v37  ;;  %v9621_v39 = vld [vmem:[#allocation73_spill] sm:$0xff] }
 0x1e4   :  { %v3219_v32 = vadd.f32 -1.4531521, %v3187_v40  ;;  %v7037_v38 = vmul.f32 0.70710677, %v7029_v15  ;;  %v7043_v17 = vadd.f32 %v7000_v22, %v9621_v39  ;;  %v1989_v34 = vadd.f32 1.0, %v1957_v60 }
 0x1e5   :  { %9619 = vst [vmem:[#allocation93_spill] sm:$0xff] %v7023_v52  ;;  %v1862_v45 = vsub.f32 1.0, %v1830_v1  ;;  %v3413_v2 = vadd.f32 0.2548296, %v3381_v30  ;;  %v1355_v13 = vadd.f32 1.0, %v1323_v53  ;;  %v1222_v55 = vmul.f32 0.5, %v6872_v7 }
 0x1e6   :  { %v3251_v47 = vmul.f32 %v7013_v31, %v3219_v32  ;;  %v3060_v40 = vand.u32 2147483647, %v7037_v38  ;;  %v3510_v32 = vmul.f32 %v3478_v35, %v3062_v9  ;;  %v7056_v60 = vmul.f32 0.70710677, %v7043_v17 }
 0x1e7   :  { %v1926_v49 = vsub.f32 0.0, %v1862_v45  ;;  %5091 = vrcp.f32 %v1355_v13  ;;  %v3445_v11 = vmul.f32 %v6978_v0, %v3413_v2  ;;  %v7076_v5 = vmul.f32 0.5, %v6930_v46 }
 0x1e8   :  { %v3283_v8 = vadd.f32 1.4214138, %v3251_v47  ;;  %v3092_v53 = vmul.f32 0.3275911, %v3060_v40  ;;  %5093 = vpow2.f32 %v3539_v25  ;;  %v3545_v47 = vmul.f32 1.442695, %v3510_v32 }
 0x1e9   :  { %v1958_v1 = vsel %vm1894_vm3, %v1926_v49, %v1862_v45  ;;  %v7058_v45 = vmul.f32 %v1989_v34, %v1221_v24  ;;  %v1707_v49 = vsub.f32 0.0, %v1291_v37  ;;  %v7069_v24 = vpop.f32.mrb[78].mxu0  ;;  %v7072_v32 = vmul.f32 0.5, %v6887_v51 }
 0x1ea   :  { %v1990_v63 = vadd.f32 1.0, %v1958_v1  ;;  %v3315_v30 = vmul.f32 %v7013_v31, %v3283_v8  ;;  %v7052_v39 = vpop.eup %5087  ;;  %v3124_v13 = vadd.f32 1.0, %v3092_v53  ;;  %v1289_v8 = vand.u32 2147483647, %v7056_v60  ;;  %v9624_v1 = vld [vmem:[#allocation74_spill] sm:$0xff] }
 0x1eb   :  { %v5090_v59 = vpop.eup %5089  ;;  %9622 = vst [vmem:[#allocation72_spill] sm:$0xff] %v7058_v45  ;;  %v3190_v35 = vmul.f32 1.0614054, %v7052_v39  ;;  %v1158_v34 = vadd.f32 %v7000_v22, %v9624_v1  ;;  %v3476_v53 = vsub.f32 0.0, %v3060_v40  ;;  %vm3669_vm4 = vcmp.lt.f32.partialorder %v6896_v4, 0.0 }
 0x1ec   :  { %v7060_v9 = vmul.f32 %v1990_v63, %v1222_v55  ;;  %v3347_v7 = vadd.f32 -0.28449672, %v3315_v30  ;;  %v3605_v63 = vmul.f32 %v5090_v59, %v3445_v11  ;;  %5095 = vrcp.f32 %v3124_v13  ;;  %v9625_v11 = vld [vmem:[#allocation76_spill] sm:$0xff] }
 0x1ed   :  { %v3222_v2 = vadd.f32 -1.4531521, %v3190_v35  ;;  %v1321_v55 = vmul.f32 0.3275911, %v1289_v8  ;;  %5097 = vpow2.f32 %v3545_v47  ;;  %v1739_v1 = vmul.f32 %v1707_v49, %v1291_v37 }
 0x1ee   :  { %9623 = vst [vmem:[#allocation73_spill] sm:$0xff] %v7060_v9  ;;  %v3379_v25 = vmul.f32 %v7013_v31, %v3347_v7  ;;  %v7079_v33 = vmul.f32 0.70710677, %v1158_v34  ;;  %v7083_v59 = vadd.f32 %v7000_v22, %v9625_v11  ;;  %v3637_v13 = vsub.f32 1.0, %v3605_v63 }
 0x1ef   :  { %v3254_v30 = vmul.f32 %v7052_v39, %v3222_v2  ;;  %v1353_v7 = vadd.f32 1.0, %v1321_v55  ;;  %v7088_v2 = vmul.f32 0.5, %v6950_v54  ;;  %v7091_v46 = vmul.f32 0.5, %v7004_v50  ;;  %v9626_v50 = vld [vmem:[#allocation75_spill] sm:$0xff] }
 0x1f0   :  { %v3411_v0 = vadd.f32 0.2548296, %v3379_v25  ;;  %v3508_v49 = vmul.f32 %v3476_v53, %v3060_v40  ;;  %v1292_v25 = vand.u32 2147483647, %v7079_v33  ;;  %v7098_v11 = vmul.f32 0.5, %v7029_v15 }
 0x1f1   :  { %v3286_v35 = vadd.f32 1.4214138, %v3254_v30  ;;  %v7085_v51 = vpop.eup %5091  ;;  %5099 = vrcp.f32 %v1353_v7  ;;  %v7101_v54 = vmul.f32 0.70710677, %v7083_v59  ;;  %v7105_v63 = vadd.f32 %v9626_v50, %v6879_v62 }
 0x1f2   :  { %v1419_v37 = vmul.f32 1.0614054, %v7085_v51  ;;  %v5094_v55 = vpop.eup %5093  ;;  %v3443_v30 = vmul.f32 %v7013_v31, %v3411_v0  ;;  %v1789_v52 = vmul.f32 1.442695, %v1739_v1  ;;  %v3701_v45 = vsub.f32 0.0, %v3637_v13 }
 0x1f3   :  { %v3318_v47 = vmul.f32 %v7052_v39, %v3286_v35  ;;  %v1705_v40 = vsub.f32 0.0, %v1289_v8  ;;  %v1324_v53 = vmul.f32 0.3275911, %v1292_v25  ;;  %v7108_v9 = vand.u32 2147483647, %v7101_v54 }
 0x1f4   :  { %v1451_v35 = vadd.f32 -1.4531521, %v1419_v37  ;;  %v3541_v0 = vmul.f32 1.442695, %v3508_v49  ;;  %v7113_v44 = vmul.f32 0.5, %v7043_v17  ;;  %v3603_v50 = vmul.f32 %v5094_v55, %v3443_v30  ;;  %v7125_v30 = vpop.f32.mrb[28].mxu1 }
 0x1f5   :  { %v3350_v7 = vadd.f32 -0.28449672, %v3318_v47  ;;  %v1356_v47 = vadd.f32 1.0, %v1324_v53  ;;  %v1322_v1 = vmul.f32 0.3275911, %v7108_v9  ;;  %5101 = vpow2.f32 %v1789_v52  ;;  %9627 = vst [vmem:[#allocation74_spill] sm:$0xff] %v7125_v30 }
 0x1f6   :  { %v1483_v15 = vmul.f32 %v7085_v51, %v1451_v35  ;;  %v7115_v43 = vpop.eup %5095  ;;  %v7119_v37 = vmul.f32 0.70710677, %v7105_v63  ;;  %v3733_v49 = vsel %vm3669_vm4, %v3701_v45, %v3637_v13  ;;  %vm3670_vm5 = vcmp.lt.f32.partialorder %v6976_v57, 0.0  ;;  %v9628_v30 = vld [vmem:[#allocation77_spill] sm:$0xff] }
 0x1f7   :  { %v3382_v31 = vmul.f32 %v7052_v39, %v3350_v7  ;;  %v3188_v7 = vmul.f32 1.0614054, %v7115_v43  ;;  %v5098_v18 = vpop.eup %5097  ;;  %v1737_v17 = vmul.f32 %v1705_v40, %v1289_v8  ;;  %5103 = vrcp.f32 %v1356_v47 }
 0x1f8   :  { %v1515_v3 = vadd.f32 1.4214138, %v1483_v15  ;;  %v1354_v55 = vadd.f32 1.0, %v1322_v1  ;;  %v7129_v15 = vmul.f32 0.5, %v1158_v34  ;;  %v3635_v23 = vsub.f32 1.0, %v3603_v50 }
 0x1f9   :  { %v3414_v12 = vadd.f32 0.2548296, %v3382_v31  ;;  %v3220_v31 = vadd.f32 -1.4531521, %v3188_v7  ;;  %vm3667_vm6 = vcmp.lt.f32.partialorder %v6942_v16, 0.0  ;;  %5105 = vpow2.f32 %v3541_v0 }
 0x1fa   :  { %v1547_v53 = vmul.f32 %v7085_v51, %v1515_v3  ;;  %v1708_v4 = vsub.f32 0.0, %v1292_v25  ;;  %v3065_v45 = vand.u32 2147483647, %v7119_v37  ;;  %v1785_v3 = vmul.f32 1.442695, %v1737_v17  ;;  %v7144_v17 = vpop.f32.mrb[79].mxu0 }
 0x1fb   :  { %v3446_v35 = vmul.f32 %v7052_v39, %v3414_v12  ;;  %v7131_v52 = vpop.eup %5099  ;;  %v3252_v40 = vmul.f32 %v7115_v43, %v3220_v31  ;;  %v3765_v39 = vadd.f32 1.0, %v3733_v49  ;;  %5107 = vrcp.f32 %v1354_v55  ;;  %9629 = vst [vmem:[#allocation76_spill] sm:$0xff] %v7144_v17 }
 0x1fc   :  { %v1579_v13 = vadd.f32 -0.28449672, %v1547_v53  ;;  %v1417_v12 = vmul.f32 1.0614054, %v7131_v52  ;;  %v3097_v34 = vmul.f32 0.3275911, %v3065_v45  ;;  %v1740_v0 = vmul.f32 %v1708_v4, %v1292_v25 }
 0x1fd   :  { %v3606_v8 = vmul.f32 %v5098_v18, %v3446_v35  ;;  %v3284_v50 = vadd.f32 1.4214138, %v3252_v40  ;;  %v3699_v29 = vsub.f32 0.0, %v3635_v23  ;;  %v7140_v18 = vadd.f32 %v6879_v62, %v9628_v30 }
 0x1fe   :  { %v1611_v1 = vmul.f32 %v7085_v51, %v1579_v13  ;;  %v1449_v7 = vadd.f32 -1.4531521, %v1417_v12  ;;  %v3129_v48 = vadd.f32 1.0, %v3097_v34  ;;  %v1706_v55 = vsub.f32 0.0, %v7108_v9 }
 0x1ff   :  { %v3638_v47 = vsub.f32 1.0, %v3606_v8  ;;  %v3316_v31 = vmul.f32 %v7115_v43, %v3284_v50  ;;  %v3481_v8 = vsub.f32 0.0, %v3065_v45  ;;  %v7148_v13 = vmul.f32 0.70710677, %v7140_v18  ;;  %v5102_v25 = vpop.eup %5101 }
 0x200   :  { %v1643_v53 = vadd.f32 0.2548296, %v1611_v1  ;;  %v1481_v49 = vmul.f32 %v7131_v52, %v1449_v7  ;;  %5109 = vrcp.f32 %v3129_v48  ;;  %v7156_v1 = vmul.f32 %v3765_v39, %v7072_v32 }
 0x201   :  { %v3702_v35 = vsub.f32 0.0, %v3638_v47  ;;  %v3348_v40 = vadd.f32 -0.28449672, %v3316_v31  ;;  %v7153_v34 = vpop.eup %5103  ;;  %5111 = vpow2.f32 %v1785_v3  ;;  %v3063_v48 = vand.u32 2147483647, %v7148_v13 }
 0x202   :  { %v1675_v4 = vmul.f32 %v7085_v51, %v1643_v53  ;;  %v1513_v12 = vadd.f32 1.4214138, %v1481_v49  ;;  %9630 = vst [vmem:[#allocation75_spill] sm:$0xff] %v7156_v1  ;;  %v3731_v7 = vsel %vm3667_vm6, %v3699_v29, %v3635_v23  ;;  %v1420_v51 = vmul.f32 1.0614054, %v7153_v34 }
 0x203   :  { %v3734_v30 = vsel %vm3670_vm5, %v3702_v35, %v3638_v47  ;;  %v3380_v17 = vmul.f32 %v7115_v43, %v3348_v40  ;;  %v5106_v47 = vpop.eup %5105  ;;  %v1791_v53 = vmul.f32 1.442695, %v1740_v0  ;;  %v1738_v32 = vmul.f32 %v1706_v55, %v7108_v9  ;;  %v7179_v9 = vpop.f32.mrb[29].mxu1 }
 0x204   :  { %v3766_v50 = vadd.f32 1.0, %v3734_v30  ;;  %v1545_v57 = vmul.f32 %v7131_v52, %v1513_v12  ;;  %v3095_v39 = vmul.f32 0.3275911, %v3063_v48  ;;  %v7168_v3 = vmul.f32 %v5102_v25, %v1675_v4 }
 0x205   :  { %v3412_v31 = vadd.f32 0.2548296, %v3380_v17  ;;  %v3513_v16 = vmul.f32 %v3481_v8, %v3065_v45  ;;  %v7170_v23 = vpop.eup %5107  ;;  %vm3668_vm7 = vcmp.lt.f32.partialorder %v7037_v38, 0.0  ;;  %v1452_v30 = vadd.f32 -1.4531521, %v1420_v51 }
 0x206   :  { %v7165_v35 = vmul.f32 %v3766_v50, %v7088_v2  ;;  %v1577_v49 = vadd.f32 -0.28449672, %v1545_v57  ;;  %v3127_v40 = vadd.f32 1.0, %v3095_v39  ;;  %v9632_v2 = vld [vmem:[#allocation78_spill] sm:$0xff]  ;;  %v3763_v55 = vadd.f32 1.0, %v3731_v7 }
 0x207   :  { %v7177_v0 = vadd.f32 %v9632_v2, %v6879_v62  ;;  %v3444_v17 = vmul.f32 %v7115_v43, %v3412_v31  ;;  %v1418_v8 = vmul.f32 1.0614054, %v7170_v23  ;;  %v1484_v25 = vmul.f32 %v7153_v34, %v1452_v30 }
 0x208   :  { %9631 = vst [vmem:[#allocation77_spill] sm:$0xff] %v7165_v35  ;;  %v1609_v45 = vmul.f32 %v7131_v52, %v1577_v49  ;;  %v1787_v4 = vmul.f32 1.442695, %v1738_v32  ;;  %5113 = vrcp.f32 %v3127_v40  ;;  %v3479_v12 = vsub.f32 0.0, %v3063_v48 }
 0x209   :  { %vm1899_vm8 = vcmp.lt.f32.partialorder %v7017_v56, 0.0  ;;  %v3604_v50 = vmul.f32 %v5106_v47, %v3444_v17  ;;  %v1450_v51 = vadd.f32 -1.4531521, %v1418_v8  ;;  %v3551_v39 = vmul.f32 1.442695, %v3513_v16 }
 0x20a   :  { %v1641_v57 = vadd.f32 0.2548296, %v1609_v45  ;;  %v7186_v2 = vpop.eup %5109  ;;  %v1867_v7 = vsub.f32 1.0, %v7168_v3  ;;  %v1516_v43 = vadd.f32 1.4214138, %v1484_v25  ;;  %5115 = vpow2.f32 %v1791_v53 }
 0x20b   :  { %v7190_v31 = vmul.f32 0.70710677, %v7177_v0  ;;  %v3636_v49 = vsub.f32 1.0, %v3604_v50  ;;  %v1482_v30 = vmul.f32 %v7170_v23, %v1450_v51  ;;  %v3193_v40 = vmul.f32 1.0614054, %v7186_v2  ;;  %v5112_v47 = vpop.eup %5111 }
 0x20c   :  { %v1673_v32 = vmul.f32 %v7131_v52, %v1641_v57  ;;  %v7196_v17 = vmul.f32 %v3763_v55, %v7076_v5  ;;  %v1548_v16 = vmul.f32 %v7153_v34, %v1516_v43  ;;  %v3511_v45 = vmul.f32 %v3479_v12, %v3063_v48  ;;  %v7205_v48 = vpop.f32.mrb[30].mxu1 }
 0x20d   :  { %v3066_v3 = vand.u32 2147483647, %v7190_v31  ;;  %v3700_v53 = vsub.f32 0.0, %v3636_v49  ;;  %v1514_v25 = vadd.f32 1.4214138, %v1482_v30  ;;  %v1931_v50 = vsub.f32 0.0, %v1867_v7 }
 0x20e   :  { %9633 = vst [vmem:[#allocation78_spill] sm:$0xff] %v7196_v17  ;;  %v1833_v8 = vmul.f32 %v5112_v47, %v1673_v32  ;;  %v3225_v29 = vadd.f32 -1.4531521, %v3193_v40  ;;  %v1580_v1 = vadd.f32 -0.28449672, %v1548_v16  ;;  %5117 = vpow2.f32 %v1787_v4  ;;  %v9634_v47 = vld [vmem:[#allocation79_spill] sm:$0xff] }
 0x20f   :  { %v3098_v52 = vmul.f32 0.3275911, %v3066_v3  ;;  %v3732_v57 = vsel %vm3668_vm7, %v3700_v53, %v3636_v49  ;;  %vm1897_vm9 = vcmp.lt.f32.partialorder %v7056_v60, 0.0  ;;  %v1546_v5 = vmul.f32 %v7170_v23, %v1514_v25 }
 0x210   :  { %v3257_v55 = vmul.f32 %v7186_v2, %v3225_v29  ;;  %5119 = vpow2.f32 %v3551_v39  ;;  %v3764_v12 = vadd.f32 1.0, %v3732_v57  ;;  %v1865_v51 = vsub.f32 1.0, %v1833_v8 }
 0x211   :  { %v1612_v43 = vmul.f32 %v7153_v34, %v1580_v1  ;;  %v3130_v32 = vadd.f32 1.0, %v3098_v52  ;;  %v1578_v30 = vadd.f32 -0.28449672, %v1546_v5  ;;  %v3547_v40 = vmul.f32 1.442695, %v3511_v45  ;;  %v7230_v52 = vpop.f32.mrb[31].mxu1 }
 0x212   :  { %v3289_v4 = vadd.f32 1.4214138, %v3257_v55  ;;  %v7210_v38 = vadd.f32 %v7000_v22, %v9634_v47  ;;  %v7212_v49 = vpop.eup %5113  ;;  %v1963_v29 = vsel %vm1899_vm8, %v1931_v50, %v1867_v7  ;;  %v7217_v39 = vmul.f32 %v3764_v12, %v7098_v11 }
 0x213   :  { %v1644_v16 = vadd.f32 0.2548296, %v1612_v43  ;;  %5121 = vrcp.f32 %v3130_v32  ;;  %vm1900_vm10 = vcmp.lt.f32.partialorder %v7079_v33, 0.0  ;;  %v1610_v1 = vmul.f32 %v7170_v23, %v1578_v30 }
 0x214   :  { %9635 = vst [vmem:[#allocation79_spill] sm:$0xff] %v7217_v39  ;;  %v3321_v45 = vmul.f32 %v7186_v2, %v3289_v4  ;;  %v3191_v53 = vmul.f32 1.0614054, %v7212_v49  ;;  %v7225_v8 = vadd.f32 %v6879_v62, %v6739_v36  ;;  %v5116_v25 = vpop.eup %5115  ;;  %v1929_v11 = vsub.f32 0.0, %v1865_v51 }
 0x215   :  { %v1676_v7 = vmul.f32 %v7153_v34, %v1644_v16  ;;  %v3482_v50 = vsub.f32 0.0, %v3066_v3  ;;  %v1642_v57 = vadd.f32 0.2548296, %v1610_v1  ;;  %v1995_v12 = vadd.f32 1.0, %v1963_v29 }
 0x216   :  { %v3353_v5 = vadd.f32 -0.28449672, %v3321_v45  ;;  %v3223_v55 = vadd.f32 -1.4531521, %v3191_v53  ;;  %5123 = vpow2.f32 %v3547_v40  ;;  %v7233_v32 = vmul.f32 0.70710677, %v7210_v38 }
 0x217   :  { %v1836_v43 = vmul.f32 %v5116_v25, %v1676_v7  ;;  %v1674_v36 = vmul.f32 %v7170_v23, %v1642_v57  ;;  %v7239_v34 = vmul.f32 0.70710677, %v7225_v8  ;;  %v1961_v47 = vsel %vm1897_vm9, %v1929_v11, %v1865_v51 }
 0x218   :  { %v3385_v62 = vmul.f32 %v7186_v2, %v3353_v5  ;;  %v3255_v30 = vmul.f32 %v7212_v49, %v3223_v55  ;;  %v5118_v4 = vpop.eup %5117  ;;  %v3514_v29 = vmul.f32 %v3482_v50, %v3066_v3  ;;  %v1295_v40 = vand.u32 2147483647, %v7233_v32  ;;  %v7247_v55 = vpop.f32.mrb[80].mxu0 }
 0x219   :  { %v1868_v16 = vsub.f32 1.0, %v1836_v43  ;;  %v1834_v45 = vmul.f32 %v5118_v4, %v1674_v36  ;;  %v3064_v23 = vand.u32 2147483647, %v7239_v34  ;;  %v1226_v57 = vmul.f32 0.5, %v7083_v59  ;;  %v7255_v59 = vpop.f32.mrb[81].mxu0 }
 0x21a   :  { %v5120_v1 = vpop.eup %5119  ;;  %v3417_v53 = vadd.f32 0.2548296, %v3385_v62  ;;  %v3287_v25 = vadd.f32 1.4214138, %v3255_v30  ;;  %vm1898_vm11 = vcmp.lt.f32.partialorder %v7101_v54, 0.0  ;;  %v1993_v43 = vadd.f32 1.0, %v1961_v47 }
 0x21b   :  { %v1932_v7 = vsub.f32 0.0, %v1868_v16  ;;  %v1327_v5 = vmul.f32 0.3275911, %v1295_v40  ;;  %v1866_v60 = vsub.f32 1.0, %v1834_v45  ;;  %v3096_v11 = vmul.f32 0.3275911, %v3064_v23 }
 0x21c   :  { %v3449_v51 = vmul.f32 %v7186_v2, %v3417_v53  ;;  %v3319_v3 = vmul.f32 %v7212_v49, %v3287_v25  ;;  %v3553_v62 = vmul.f32 1.442695, %v3514_v29  ;;  %9636 = vst [vmem:[#allocation94_spill] sm:$0xff] %v7255_v59  ;;  %v7258_v4 = vmul.f32 %v1995_v12, %v7091_v46 }
 0x21d   :  { %v7251_v50 = vpop.eup %5121  ;;  %v1964_v36 = vsel %vm1900_vm10, %v1932_v7, %v1868_v16  ;;  %v1359_v30 = vadd.f32 1.0, %v1327_v5  ;;  %v1930_v45 = vsub.f32 0.0, %v1866_v60  ;;  %v3128_v53 = vadd.f32 1.0, %v3096_v11 }
 0x21e   :  { %9637 = vst [vmem:[#allocation95_spill] sm:$0xff] %v7258_v4  ;;  %v1996_v56 = vadd.f32 1.0, %v1964_v36  ;;  %v3351_v35 = vadd.f32 -0.28449672, %v3319_v3  ;;  %v3194_v2 = vmul.f32 1.0614054, %v7251_v50  ;;  %v7263_v47 = vadd.f32 %v7000_v22, %v6750_v58 }
 0x21f   :  { %5125 = vrcp.f32 %v1359_v30  ;;  %v1962_v16 = vsel %vm1898_vm11, %v1930_v45, %v1866_v60  ;;  %v3609_v29 = vmul.f32 %v5120_v1, %v3449_v51  ;;  %v7272_v25 = vmul.f32 %v1993_v43, %v7113_v44 }
 0x220   :  { %v7266_v33 = vmul.f32 %v1996_v56, %v7129_v15  ;;  %v3383_v46 = vmul.f32 %v7212_v49, %v3351_v35  ;;  %v5124_v12 = vpop.eup %5123  ;;  %v1994_v7 = vadd.f32 1.0, %v1962_v16  ;;  %v3226_v5 = vadd.f32 -1.4531521, %v3194_v2  ;;  %v7305_v2 = vpop.f32.mrb[82].mxu0 }
 0x221   :  { %5127 = vpow2.f32 %v3553_v62  ;;  %v1711_v11 = vsub.f32 0.0, %v1295_v40  ;;  %v3480_v56 = vsub.f32 0.0, %v3064_v23  ;;  %v7280_v35 = vmul.f32 0.70710677, %v7263_v47  ;;  %9639 = vst [vmem:[#allocation97_spill] sm:$0xff] %v7305_v2  ;;  %v7332_v58 = vpop.f32.mrb[83].mxu0 }
 0x222   :  { %9638 = vst [vmem:[#allocation96_spill] sm:$0xff] %v7266_v33  ;;  %v3415_v3 = vadd.f32 0.2548296, %v3383_v46  ;;  %5129 = vrcp.f32 %v3128_v53  ;;  %v7276_v15 = vmul.f32 %v1994_v7, %v1226_v57  ;;  %v3258_v54 = vmul.f32 %v7251_v50, %v3226_v5  ;;  %9640 = vst [vmem:[#allocation98_spill] sm:$0xff] %v7332_v58 }
 0x223   :  { %v3641_v1 = vsub.f32 1.0, %v3609_v29  ;;  %v7285_v60 = vadd.f32 %v7000_v22, %v6785_v27  ;;  %v7289_v51 = vadd.f32 %v7000_v22, %v6798_v14  ;;  %v7294_v36 = vmul.f32 0.5, %v7105_v63 }
 0x224   :  { %v3447_v44 = vmul.f32 %v7212_v49, %v3415_v3  ;;  %v3290_v43 = vadd.f32 1.4214138, %v3258_v54  ;;  %vm3673_vm12 = vcmp.lt.f32.partialorder %v7119_v37, 0.0  ;;  %v1293_v49 = vand.u32 2147483647, %v7280_v35 }
 0x225   :  { %v7299_v30 = vmul.f32 0.5, %v7140_v18  ;;  %v1743_v45 = vmul.f32 %v1711_v11, %v1295_v40  ;;  %v7303_v14 = vmul.f32 0.70710677, %v7285_v60  ;;  %v3705_v53 = vsub.f32 0.0, %v3641_v1  ;;  %v7341_v37 = vld [vmem:[%s9193_s6] ss:$0 sm:$0xff] }
 0x226   :  { %v3607_v62 = vmul.f32 %v5124_v12, %v3447_v44  ;;  %v3322_v27 = vmul.f32 %v7251_v50, %v3290_v43  ;;  %v3512_v16 = vmul.f32 %v3480_v56, %v3064_v23  ;;  %v1325_v63 = vmul.f32 0.3275911, %v1293_v49 }
 0x227   :  { %v7308_v29 = vmul.f32 0.70710677, %v7289_v51  ;;  %vm3671_vm13 = vcmp.lt.f32.partialorder %v7148_v13, 0.0  ;;  %v7314_v18 = vmul.f32 0.5, %v7177_v0  ;;  %v7317_v40 = vand.u32 2147483647, %v7303_v14 }
 0x228   :  { %v3354_v12 = vadd.f32 -0.28449672, %v3322_v27  ;;  %v3639_v7 = vsub.f32 1.0, %v3607_v62  ;;  %v7320_v5 = vmul.f32 0.5, %v7210_v38  ;;  %v1357_v3 = vadd.f32 1.0, %v1325_v63 }
 0x229   :  { %v7310_v46 = vpop.eup %5125  ;;  %v1797_v56 = vmul.f32 1.442695, %v1743_v45  ;;  %v1328_v44 = vmul.f32 0.3275911, %v7317_v40  ;;  %v7326_v0 = vand.u32 2147483647, %v7308_v29  ;;  %v3737_v62 = vsel %vm3673_vm12, %v3705_v53, %v3641_v1 }
 0x22a   :  { %v1423_v23 = vmul.f32 1.0614054, %v7310_v46  ;;  %v3386_v54 = vmul.f32 %v7251_v50, %v3354_v12  ;;  %v3549_v38 = vmul.f32 1.442695, %v3512_v16  ;;  %5131 = vrcp.f32 %v1357_v3 }
 0x22b   :  { %v5128_v11 = vpop.eup %5127  ;;  %v1709_v12 = vsub.f32 0.0, %v1293_v49  ;;  %v1360_v45 = vadd.f32 1.0, %v1328_v44  ;;  %v3703_v17 = vsub.f32 0.0, %v3639_v7  ;;  %vm3674_vm14 = vcmp.lt.f32.partialorder %v7190_v31, 0.0 }
 0x22c   :  { %v7328_v43 = vpop.eup %5129  ;;  %v1455_v27 = vadd.f32 -1.4531521, %v1423_v23  ;;  %v3418_v63 = vadd.f32 0.2548296, %v3386_v54  ;;  %v1326_v2 = vmul.f32 0.3275911, %v7326_v0  ;;  %v7345_v1 = vadd.f32 %v7341_v37, %v6827_v20 }
 0x22d   :  { %v3192_v57 = vmul.f32 1.0614054, %v7328_v43  ;;  %v7349_v16 = vmul.f32 0.5, %v7225_v8  ;;  %5133 = vrcp.f32 %v1360_v45  ;;  %v3769_v3 = vadd.f32 1.0, %v3737_v62 }
 0x22e   :  { %v1487_v39 = vmul.f32 %v7310_v46, %v1455_v27  ;;  %v3450_v53 = vmul.f32 %v7251_v50, %v3418_v63  ;;  %v7352_v44 = vmul.f32 0.5, %v7263_v47  ;;  %v1358_v27 = vadd.f32 1.0, %v1326_v2 }
 0x22f   :  { %v3224_v23 = vadd.f32 -1.4531521, %v3192_v57  ;;  %5135 = vpow2.f32 %v1797_v56  ;;  %v1741_v4 = vmul.f32 %v1709_v12, %v1293_v49  ;;  %v3735_v20 = vsel %vm3671_vm13, %v3703_v17, %v3639_v7 }
 0x230   :  { %v1519_v54 = vadd.f32 1.4214138, %v1487_v39  ;;  %v3610_v58 = vmul.f32 %v5128_v11, %v3450_v53  ;;  %5137 = vpow2.f32 %v3549_v38  ;;  %v7359_v8 = vmul.f32 0.70710677, %v7345_v1 }
 0x231   :  { %v3256_v59 = vmul.f32 %v7328_v43, %v3224_v23  ;;  %5139 = vrcp.f32 %v1358_v27  ;;  %v7363_v47 = vadd.f32 %v7341_v37, %v6840_v28  ;;  %v7366_v2 = vmul.f32 %v3769_v3, %v7294_v36 }
 0x232   :  { %v1551_v50 = vmul.f32 %v7310_v46, %v1519_v54  ;;  %v3642_v57 = vsub.f32 1.0, %v3610_v58  ;;  %v7369_v13 = vmul.f32 0.5, %v7285_v60  ;;  %v3069_v17 = vand.u32 2147483647, %v7359_v8 }
 0x233   :  { %v3288_v39 = vadd.f32 1.4214138, %v3256_v59  ;;  %9641 = vst [vmem:[#allocation99_spill] sm:$0xff] %v7366_v2  ;;  %v1793_v56 = vmul.f32 1.442695, %v1741_v4  ;;  %v1712_v59 = vsub.f32 0.0, %v7317_v40 }
 0x234   :  { %v1583_v49 = vadd.f32 -0.28449672, %v1551_v50  ;;  %v3706_v7 = vsub.f32 0.0, %v3642_v57  ;;  %v7374_v58 = vpop.eup %5131  ;;  %v3767_v62 = vadd.f32 1.0, %v3735_v20  ;;  %v1710_v36 = vsub.f32 0.0, %v7326_v0 }
 0x235   :  { %v3320_v11 = vmul.f32 %v7328_v43, %v3288_v39  ;;  %v3101_v38 = vmul.f32 0.3275911, %v3069_v17  ;;  %v1421_v12 = vmul.f32 1.0614054, %v7374_v58  ;;  %v7382_v45 = vmul.f32 0.70710677, %v7363_v47 }
 0x236   :  { %v1615_v28 = vmul.f32 %v7310_v46, %v1583_v49  ;;  %v3738_v60 = vsel %vm3674_vm14, %v3706_v7, %v3642_v57  ;;  %v3485_v3 = vsub.f32 0.0, %v3069_v17  ;;  %v1744_v50 = vmul.f32 %v1712_v59, %v7317_v40  ;;  %v7392_v57 = vld [vmem:[%s9194_s7] sm:$0xff]  }
 0x237   :  { %v3352_v63 = vadd.f32 -0.28449672, %v3320_v11  ;;  %v3770_v4 = vadd.f32 1.0, %v3738_v60  ;;  %v3133_v23 = vadd.f32 1.0, %v3101_v38  ;;  %v7384_v54 = vpop.eup %5133  ;;  %v1453_v20 = vadd.f32 -1.4531521, %v1421_v12  ;;  %4807 = vmatprep.subr.bf16.mxu1 %v7392_v57 }
 0x238   :  { %v1647_v53 = vadd.f32 0.2548296, %v1615_v28  ;;  %v3067_v31 = vand.u32 2147483647, %v7382_v45  ;;  %v1424_v49 = vmul.f32 1.0614054, %v7384_v54  ;;  %v1742_v7 = vmul.f32 %v1710_v36, %v7326_v0 }
 0x239   :  { %v3384_v27 = vmul.f32 %v7328_v43, %v3352_v63  ;;  %v7395_v39 = vmul.f32 %v3770_v4, %v7314_v18  ;;  %5141 = vrcp.f32 %v3133_v23  ;;  %v5136_v11 = vpop.eup %5135  ;;  %v1485_v40 = vmul.f32 %v7374_v58, %v1453_v20  ;;  %v7408_v23 = vpop.f32.mrb[84].mxu0 }
 0x23a   :  { %v1679_v28 = vmul.f32 %v7310_v46, %v1647_v53  ;;  %v3099_v59 = vmul.f32 0.3275911, %v3067_v31  ;;  %v5138_v60 = vpop.eup %5137  ;;  %vm3672_vm15 = vcmp.lt.f32.partialorder %v7239_v34, 0.0  ;;  %5143 = vpow2.f32 %v1793_v56  ;;  %v7416_v56 = vpop.f32.mrb[85].mxu0 }
 0x23b   :  { %9642 = vst [vmem:[#allocation100_spill] sm:$0xff] %v7395_v39  ;;  %v3416_v38 = vadd.f32 0.2548296, %v3384_v27  ;;  %v1456_v18 = vadd.f32 -1.4531521, %v1424_v49  ;;  %v3517_v12 = vmul.f32 %v3485_v3, %v3069_v17  ;;  %v7405_v0 = vpop.eup %5139  ;;  %v7414_v63 = vadd.f32 %v7341_v37, %v6859_v41 }
 0x23c   :  { %v1517_v46 = vadd.f32 1.4214138, %v1485_v40  ;;  %v1799_v4 = vmul.f32 1.442695, %v1744_v50  ;;  %v3131_v53 = vadd.f32 1.0, %v3099_v59  ;;  %v1839_v17 = vmul.f32 %v5136_v11, %v1679_v28 }
 0x23d   :  { %v3448_v36 = vmul.f32 %v7328_v43, %v3416_v38  ;;  %v1488_v27 = vmul.f32 %v7384_v54, %v1456_v18  ;;  %v1422_v20 = vmul.f32 1.0614054, %v7405_v0  ;;  %v1795_v33 = vmul.f32 1.442695, %v1742_v7 }
 0x23e   :  { %v1549_v43 = vmul.f32 %v7374_v58, %v1517_v46  ;;  %5145 = vrcp.f32 %v3131_v53  ;;  %v3559_v38 = vmul.f32 1.442695, %v3517_v12  ;;  %v3483_v18 = vsub.f32 0.0, %v3067_v31 }
 0x23f   :  { %v3608_v3 = vmul.f32 %v5138_v60, %v3448_v36  ;;  %v1520_v50 = vadd.f32 1.4214138, %v1488_v27  ;;  %v1454_v49 = vadd.f32 -1.4531521, %v1422_v20  ;;  %5147 = vpow2.f32 %v1799_v4 }
 0x240   :  { %v1581_v59 = vadd.f32 -0.28449672, %v1549_v43  ;;  %v7420_v7 = vmul.f32 %v3767_v62, %v7299_v30  ;;  %vm1903_vm0 = vcmp.lt.f32.partialorder %v7233_v32, 0.0  ;;  %v7426_v28 = vmul.f32 0.70710677, %v7414_v63 }
 0x241   :  { %v3640_v40 = vsub.f32 1.0, %v3608_v3  ;;  %v1552_v41 = vmul.f32 %v7384_v54, %v1520_v50  ;;  %v1486_v11 = vmul.f32 %v7405_v0, %v1454_v49  ;;  %v1871_v60 = vsub.f32 1.0, %v1839_v17  ;;  %v7437_v17 = vpop.f32.mrb[86].mxu0 }
 0x242   :  { %9643 = vst [vmem:[#allocation101_spill] sm:$0xff] %v7420_v7  ;;  %v1613_v12 = vmul.f32 %v7374_v58, %v1581_v59  ;;  %5149 = vpow2.f32 %v1795_v33  ;;  %v7432_v30 = vand.u32 2147483647, %v7426_v28  ;;  %v3515_v3 = vmul.f32 %v3483_v18, %v3067_v31 }
 0x243   :  { %v3704_v36 = vsub.f32 0.0, %v3640_v40  ;;  %v7429_v46 = vpop.eup %5141  ;;  %v1584_v4 = vadd.f32 -0.28449672, %v1552_v41  ;;  %v1518_v53 = vadd.f32 1.4214138, %v1486_v11  ;;  %5151 = vpow2.f32 %v3559_v38 }
 0x244   :  { %v1645_v27 = vadd.f32 0.2548296, %v1613_v12  ;;  %v3197_v20 = vmul.f32 1.0614054, %v7429_v46  ;;  %v5144_v43 = vpop.eup %5143  ;;  %v3102_v38 = vmul.f32 0.3275911, %v7432_v30  ;;  %v7445_v34 = vadd.f32 %v7000_v22, %v6907_v61 }
 0x245   :  { %v3736_v62 = vsel %vm3672_vm15, %v3704_v36, %v3640_v40  ;;  %v1616_v33 = vmul.f32 %v7384_v54, %v1584_v4  ;;  %v1550_v49 = vmul.f32 %v7405_v0, %v1518_v53  ;;  %v1935_v59 = vsub.f32 0.0, %v1871_v60 }
 0x246   :  { %v3768_v50 = vadd.f32 1.0, %v3736_v62  ;;  %v1677_v41 = vmul.f32 %v7374_v58, %v1645_v27  ;;  %v3229_v11 = vadd.f32 -1.4531521, %v3197_v20  ;;  %v3134_v36 = vadd.f32 1.0, %v3102_v38  ;;  %v7463_v20 = vpop.f32.mrb[87].mxu0 }
 0x247   :  { %v1648_v40 = vadd.f32 0.2548296, %v1616_v33  ;;  %v1582_v18 = vadd.f32 -0.28449672, %v1550_v49  ;;  %vm1901_vm2 = vcmp.lt.f32.partialorder %v7280_v35, 0.0  ;;  %v7456_v58 = vadd.f32 %v7341_v37, %v6937_v26  ;;  %v7497_v39 = vpop.f32.mrb[88].mxu0 }
 0x248   :  { %v7448_v31 = vmul.f32 %v3768_v50, %v7349_v16  ;;  %v7450_v12 = vpop.eup %5145  ;;  %v1837_v4 = vmul.f32 %v5144_v43, %v1677_v41  ;;  %v3261_v53 = vmul.f32 %v7429_v46, %v3229_v11  ;;  %v3555_v62 = vmul.f32 1.442695, %v3515_v3  ;;  %9645 = vst [vmem:[#allocation103_spill] sm:$0xff] %v7497_v39 }
 0x249   :  { %v1680_v22 = vmul.f32 %v7384_v54, %v1648_v40  ;;  %v1614_v16 = vmul.f32 %v7405_v0, %v1582_v18  ;;  %v3195_v27 = vmul.f32 1.0614054, %v7450_v12  ;;  %v5148_v43 = vpop.eup %5147  ;;  %v1967_v50 = vsel %vm1903_vm0, %v1935_v59, %v1871_v60 }
 0x24a   :  { %9644 = vst [vmem:[#allocation102_spill] sm:$0xff] %v7448_v31  ;;  %v1869_v3 = vsub.f32 1.0, %v1837_v4  ;;  %v3293_v33 = vadd.f32 1.4214138, %v3261_v53  ;;  %5153 = vrcp.f32 %v3134_v36  ;;  %v7468_v41 = vmul.f32 0.70710677, %v7445_v34 }
 0x24b   :  { %v1840_v26 = vmul.f32 %v5148_v43, %v1680_v22  ;;  %v1646_v49 = vadd.f32 0.2548296, %v1614_v16  ;;  %v3227_v38 = vadd.f32 -1.4531521, %v3195_v27  ;;  %vm1904_vm3 = vcmp.lt.f32.partialorder %v7303_v14, 0.0 }
 0x24c   :  { %v5150_v54 = vpop.eup %5149  ;;  %v1933_v11 = vsub.f32 0.0, %v1869_v3  ;;  %vm1902_vm4 = vcmp.lt.f32.partialorder %v7308_v29, 0.0  ;;  %v3325_v40 = vmul.f32 %v7429_v46, %v3293_v33  ;;  %v1299_v36 = vand.u32 2147483647, %v7468_v41 }
 0x24d   :  { %v5152_v18 = vpop.eup %5151  ;;  %v1872_v32 = vsub.f32 1.0, %v1840_v26  ;;  %v1678_v60 = vmul.f32 %v7405_v0, %v1646_v49  ;;  %v3259_v59 = vmul.f32 %v7450_v12, %v3227_v38  ;;  %v1999_v4 = vadd.f32 1.0, %v1967_v50  ;;  %v7485_v49 = vld [vmem:[%s9189_s2] ss:$0 sm:$0xff] }
 0x24e   :  { %v3357_v53 = vadd.f32 -0.28449672, %v3325_v40  ;;  %v3486_v22 = vsub.f32 0.0, %v7432_v30  ;;  %v7478_v16 = vmul.f32 0.70710677, %v7456_v58  ;;  %5155 = vpow2.f32 %v3555_v62 }
 0x24f   :  { %v1936_v27 = vsub.f32 0.0, %v1872_v32  ;;  %v1838_v43 = vmul.f32 %v5150_v54, %v1678_v60  ;;  %v3291_v61 = vadd.f32 1.4214138, %v3259_v59  ;;  %v1331_v26 = vmul.f32 0.3275911, %v1299_v36 }
 0x250   :  { %v3389_v33 = vmul.f32 %v7429_v46, %v3357_v53  ;;  %v3068_v0 = vand.u32 2147483647, %v7478_v16  ;;  %v7489_v50 = vadd.f32 %v7485_v49, %v6952_v19  ;;  %v1965_v38 = vsel %vm1901_vm2, %v1933_v11, %v1869_v3 }
 0x251   :  { %v1968_v62 = vsel %vm1904_vm3, %v1936_v27, %v1872_v32  ;;  %v1870_v54 = vsub.f32 1.0, %v1838_v43  ;;  %v3323_v40 = vmul.f32 %v7450_v12, %v3291_v61  ;;  %v3518_v53 = vmul.f32 %v3486_v22, %v7432_v30 }
 0x252   :  { %v2000_v60 = vadd.f32 1.0, %v1968_v62  ;;  %v3421_v59 = vadd.f32 0.2548296, %v3389_v33  ;;  %v1363_v2 = vadd.f32 1.0, %v1331_v26  ;;  %v7500_v7 = vmul.f32 %v1999_v4, %v7320_v5 }
 0x253   :  { %v1934_v19 = vsub.f32 0.0, %v1870_v54  ;;  %v3355_v31 = vadd.f32 -0.28449672, %v3323_v40  ;;  %v3100_v35 = vmul.f32 0.3275911, %v3068_v0  ;;  %v1997_v14 = vadd.f32 1.0, %v1965_v38 }
 0x254   :  { %v7502_v3 = vpop.eup %5153  ;;  %v7505_v11 = vmul.f32 %v2000_v60, %v7369_v13  ;;  %v3453_v61 = vmul.f32 %v7429_v46, %v3421_v59  ;;  %5157 = vrcp.f32 %v1363_v2  ;;  %v1230_v27 = vmul.f32 0.5, %v7289_v51  ;;  %v7515_v13 = vpop.f32.mrb[89].mxu0 }
 0x255   :  { %v1966_v30 = vsel %vm1902_vm4, %v1934_v19, %v1870_v54  ;;  %v3387_v32 = vmul.f32 %v7450_v12, %v3355_v31  ;;  %v3198_v5 = vmul.f32 1.0614054, %v7502_v3  ;;  %v3132_v4 = vadd.f32 1.0, %v3100_v35  ;;  %9646 = vst [vmem:[#allocation104_spill] sm:$0xff] %v7515_v13 }
 0x256   :  { %v1998_v43 = vadd.f32 1.0, %v1966_v30  ;;  %v3561_v33 = vmul.f32 1.442695, %v3518_v53  ;;  %v3613_v26 = vmul.f32 %v5152_v18, %v3453_v61  ;;  %v7518_v29 = vmul.f32 %v1997_v14, %v7352_v44  ;;  %v7532_v44 = vpop.f32.mrb[90].mxu0 }
 0x257   :  { %v3230_v46 = vadd.f32 -1.4531521, %v3198_v5  ;;  %5159 = vrcp.f32 %v3132_v4  ;;  %v3419_v31 = vadd.f32 0.2548296, %v3387_v32  ;;  %v1715_v38 = vsub.f32 0.0, %v1299_v36  ;;  %9647 = vst [vmem:[#allocation105_spill] sm:$0xff] %v7532_v44 }
 0x258   :  { %v7520_v2 = vmul.f32 %v1998_v43, %v1230_v27  ;;  %v5156_v62 = vpop.eup %5155  ;;  %v7524_v40 = vmul.f32 0.70710677, %v7489_v50  ;;  %5161 = vpow2.f32 %v3561_v33  ;;  %v3484_v18 = vsub.f32 0.0, %v3068_v0 }
 0x259   :  { %v3262_v54 = vmul.f32 %v7502_v3, %v3230_v46  ;;  %v7530_v60 = vadd.f32 %v7485_v49, %v6994_v10  ;;  %v3645_v59 = vsub.f32 1.0, %v3613_v26  ;;  %v3451_v35 = vmul.f32 %v7450_v12, %v3419_v31 }
 0x25a   :  { %v1297_v19 = vand.u32 2147483647, %v7524_v40  ;;  %v1747_v14 = vmul.f32 %v1715_v38, %v1299_v36  ;;  %v7542_v5 = vadd.f32 %v7485_v49, %v7008_v21  ;;  %v3005_v4 = vmul.f32 0.5, %v7345_v1 }
 0x25b   :  { %v3294_v53 = vadd.f32 1.4214138, %v3262_v54  ;;  %v7537_v61 = vmul.f32 0.70710677, %v7530_v60  ;;  %v3516_v27 = vmul.f32 %v3484_v18, %v3068_v0  ;;  %vm3677_vm5 = vcmp.lt.f32.partialorder %v7359_v8, 0.0 }
 0x25c   :  { %v1329_v32 = vmul.f32 0.3275911, %v1297_v19  ;;  %v3709_v12 = vsub.f32 0.0, %v3645_v59  ;;  %v3611_v26 = vmul.f32 %v5156_v62, %v3451_v35  ;;  %v1805_v46 = vmul.f32 1.442695, %v1747_v14 }
 0x25d   :  { %v3326_v30 = vmul.f32 %v7502_v3, %v3294_v53  ;;  %v7548_v43 = vand.u32 2147483647, %v7537_v61  ;;  %v7556_v54 = vmul.f32 0.5, %v7363_v47  ;;  %v7560_v18 = vmul.f32 0.70710677, %v7542_v5 }
 0x25e   :  { %v7544_v10 = vpop.eup %5157  ;;  %v1361_v31 = vadd.f32 1.0, %v1329_v32  ;;  %v7563_v53 = vmul.f32 0.5, %v7414_v63  ;;  %v3557_v35 = vmul.f32 1.442695, %v3516_v27  ;;  %v3741_v14 = vsel %vm3677_vm5, %v3709_v12, %v3645_v59  ;;  %v7576_v59 = vpop.f32.mrb[91].mxu0 }
 0x25f   :  { %v3358_v36 = vadd.f32 -0.28449672, %v3326_v30  ;;  %v1427_v33 = vmul.f32 1.0614054, %v7544_v10  ;;  %v1332_v21 = vmul.f32 0.3275911, %v7548_v43 }
 0x260   :  { %5163 = vrcp.f32 %v1361_v31  ;;  %vm3675_vm6 = vcmp.lt.f32.partialorder %v7382_v45, 0.0  ;;  %vm3678_vm7 = vcmp.lt.f32.partialorder %v7426_v28, 0.0  ;;  %v1298_v22 = vand.u32 2147483647, %v7560_v18  ;;  %9648 = vst [vmem:[#allocation106_spill] sm:$0xff] %v7576_v59 }
 0x261   :  { %v7553_v38 = vpop.eup %5159  ;;  %v3390_v1 = vmul.f32 %v7502_v3, %v3358_v36  ;;  %v1459_v0 = vadd.f32 -1.4531521, %v1427_v33  ;;  %v1364_v32 = vadd.f32 1.0, %v1332_v21  ;;  %v3643_v33 = vsub.f32 1.0, %v3611_v26 }
 0x262   :  { %v3196_v62 = vmul.f32 1.0614054, %v7553_v38  ;;  %v5162_v36 = vpop.eup %5161  ;;  %5165 = vpow2.f32 %v1805_v46  ;;  %v7574_v31 = vmul.f32 0.5, %v7445_v34  ;;  %v3773_v12 = vadd.f32 1.0, %v3741_v14 }
 0x263   :  { %v3422_v47 = vadd.f32 0.2548296, %v3390_v1  ;;  %v1491_v30 = vmul.f32 %v7544_v10, %v1459_v0  ;;  %5167 = vrcp.f32 %v1364_v32  ;;  %v1713_v1 = vsub.f32 0.0, %v1297_v19 }
 0x264   :  { %v3228_v63 = vadd.f32 -1.4531521, %v3196_v62  ;;  %v1330_v26 = vmul.f32 0.3275911, %v1298_v22  ;;  %5169 = vpow2.f32 %v3557_v35  ;;  %v7582_v62 = vadd.f32 %v7341_v37, %v7039_v42 }
 0x265   :  { %v3454_v27 = vmul.f32 %v7502_v3, %v3422_v47  ;;  %v1523_v8 = vadd.f32 1.4214138, %v1491_v30  ;;  %v3707_v3 = vsub.f32 0.0, %v3643_v33  ;;  %v7586_v30 = vadd.f32 %v7341_v37, %v7050_v6 }
 0x266   :  { %v3260_v21 = vmul.f32 %v7553_v38, %v3228_v63  ;;  %v1362_v47 = vadd.f32 1.0, %v1330_v26  ;;  %v7589_v63 = vmul.f32 0.5, %v7456_v58  ;;  %v7594_v35 = vmul.f32 %v3773_v12, %v3005_v4 }
 0x267   :  { %v3614_v0 = vmul.f32 %v5162_v36, %v3454_v27  ;;  %v1555_v46 = vmul.f32 %v7544_v10, %v1523_v8  ;;  %v7592_v36 = vmul.f32 0.70710677, %v7582_v62  ;;  %v1745_v27 = vmul.f32 %v1713_v1, %v1297_v19 }
 0x268   :  { %v3292_v34 = vadd.f32 1.4214138, %v3260_v21  ;;  %5171 = vrcp.f32 %v1362_v47  ;;  %v1716_v6 = vsub.f32 0.0, %v7548_v43  ;;  %v3739_v58 = vsel %vm3675_vm6, %v3707_v3, %v3643_v33 }
 0x269   :  { %v3646_v14 = vsub.f32 1.0, %v3614_v0  ;;  %v1587_v32 = vadd.f32 -0.28449672, %v1555_v46  ;;  %v3073_v26 = vand.u32 2147483647, %v7592_v36  ;;  %v1714_v51 = vsub.f32 0.0, %v1298_v22 }
 0x26a   :  { %v3324_v42 = vmul.f32 %v7553_v38, %v3292_v34  ;;  %v7600_v0 = vpop.eup %5163  ;;  %v7605_v4 = vmul.f32 0.70710677, %v7586_v30  ;;  %v1801_v44 = vmul.f32 1.442695, %v1745_v27  ;;  %v1748_v28 = vmul.f32 %v1716_v6, %v7548_v43 }
 0x26b   :  { %v3710_v8 = vsub.f32 0.0, %v3646_v14  ;;  %v1619_v21 = vmul.f32 %v7544_v10, %v1587_v32  ;;  %v1425_v1 = vmul.f32 1.0614054, %v7600_v0  ;;  %v3105_v34 = vmul.f32 0.3275911, %v3073_v26 }
 0x26c   :  { %v3356_v46 = vadd.f32 -0.28449672, %v3324_v42  ;;  %v5166_v47 = vpop.eup %5165  ;;  %v7612_v45 = vand.u32 2147483647, %v7605_v4  ;;  %v1746_v13 = vmul.f32 %v1714_v51, %v1298_v22  ;;  %vm3676_vm8 = vcmp.lt.f32.partialorder %v7478_v16, 0.0 }
 0x26d   :  { %v3742_v19 = vsel %vm3678_vm7, %v3710_v8, %v3646_v14  ;;  %v1651_v12 = vadd.f32 0.2548296, %v1619_v21  ;;  %v7614_v33 = vpop.eup %5167  ;;  %v1457_v42 = vadd.f32 -1.4531521, %v1425_v1  ;;  %v3137_v14 = vadd.f32 1.0, %v3105_v34 }
 0x26e   :  { %v3774_v32 = vadd.f32 1.0, %v3742_v19  ;;  %v3388_v59 = vmul.f32 %v7553_v38, %v3356_v46  ;;  %v1428_v19 = vmul.f32 1.0614054, %v7614_v33  ;;  %v7622_v46 = vpop.f32.mrb[92].mxu0  ;;  %v5170_v27 = vpop.eup %5169  ;;  %v7629_v43 = vadd.f32 %v7341_v37, %v7069_v24 }
 0x26f   :  { %v1683_v3 = vmul.f32 %v7544_v10, %v1651_v12  ;;  %9649 = vst [vmem:[#allocation107_spill] sm:$0xff] %v7622_v46  ;;  %v1489_v39 = vmul.f32 %v7600_v0, %v1457_v42  ;;  %5173 = vrcp.f32 %v3137_v14  ;;  %v3103_v10 = vmul.f32 0.3275911, %v7612_v45  ;;  %v7639_v46 = vpop.f32.mrb[93].mxu0 }
 0x270   :  { %v7619_v8 = vmul.f32 %v3774_v32, %v7563_v53  ;;  %v3420_v21 = vadd.f32 0.2548296, %v3388_v59  ;;  %v1460_v22 = vadd.f32 -1.4531521, %v1428_v19  ;;  %v3489_v51 = vsub.f32 0.0, %v3073_v26  ;;  %9650 = vst [vmem:[#allocation108_spill] sm:$0xff] %v7639_v46 }
 0x271   :  { %v7634_v6 = vmul.f32 %v5166_v47, %v1683_v3  ;;  %v1521_v12 = vadd.f32 1.4214138, %v1489_v39  ;;  %v1807_v1 = vmul.f32 1.442695, %v1748_v28  ;;  %v3135_v34 = vadd.f32 1.0, %v3103_v10 }
 0x272   :  { %v3452_v59 = vmul.f32 %v7553_v38, %v3420_v21  ;;  %v7636_v32 = vpop.eup %5171  ;;  %v3771_v42 = vadd.f32 1.0, %v3739_v58  ;;  %5175 = vpow2.f32 %v1801_v44  ;;  %v1492_v24 = vmul.f32 %v7614_v33, %v1460_v22 }
 0x273   :  { %v1553_v53 = vmul.f32 %v7600_v0, %v1521_v12  ;;  %v1426_v38 = vmul.f32 1.0614054, %v7636_v32  ;;  %v1803_v21 = vmul.f32 1.442695, %v1746_v13  ;;  %5177 = vrcp.f32 %v3135_v34 }
 0x274   :  { %v3612_v14 = vmul.f32 %v5170_v27, %v3452_v59  ;;  %v1524_v3 = vadd.f32 1.4214138, %v1492_v24  ;;  %v3521_v39 = vmul.f32 %v3489_v51, %v3073_v26  ;;  %v7644_v28 = vmul.f32 0.70710677, %v7629_v43 }
 0x275   :  { %v1875_v58 = vsub.f32 1.0, %v7634_v6  ;;  %v1585_v19 = vadd.f32 -0.28449672, %v1553_v53  ;;  %5179 = vpow2.f32 %v1807_v1  ;;  %v1458_v44 = vadd.f32 -1.4531521, %v1426_v38 }
 0x276   :  { %v3644_v47 = vsub.f32 1.0, %v3612_v14  ;;  %v7648_v10 = vmul.f32 0.5, %v7530_v60  ;;  %v1556_v59 = vmul.f32 %v7614_v33, %v1524_v3  ;;  %v3487_v13 = vsub.f32 0.0, %v7612_v45 }
 0x277   :  { %v7653_v22 = vmul.f32 %v3771_v42, %v7556_v54  ;;  %vm1907_vm9 = vcmp.lt.f32.partialorder %v7468_v41, 0.0  ;;  %v1617_v26 = vmul.f32 %v7600_v0, %v1585_v19  ;;  %v1490_v51 = vmul.f32 %v7636_v32, %v1458_v44  ;;  %v7666_v44 = vpop.f32.mrb[94].mxu0 }
 0x278   :  { %v3708_v27 = vsub.f32 0.0, %v3644_v47  ;;  %v3074_v53 = vand.u32 2147483647, %v7644_v28  ;;  %v1588_v60 = vadd.f32 -0.28449672, %v1556_v59  ;;  %5181 = vpow2.f32 %v1803_v21  ;;  %9651 = vst [vmem:[#allocation109_spill] sm:$0xff] %v7666_v44 }
 0x279   :  { %v3567_v12 = vmul.f32 1.442695, %v3521_v39  ;;  %v7661_v1 = vpop.eup %5173  ;;  %v1939_v34 = vsub.f32 0.0, %v1875_v58  ;;  %v1649_v54 = vadd.f32 0.2548296, %v1617_v26  ;;  %v3519_v3 = vmul.f32 %v3487_v13, %v7612_v45  ;;  %v9652_v39 = vld [vmem:[#allocation74_spill] sm:$0xff] }
 0x27a   :  { %v3740_v6 = vsel %vm3676_vm8, %v3708_v27, %v3644_v47  ;;  %v1522_v42 = vadd.f32 1.4214138, %v1490_v51  ;;  %v1620_v24 = vmul.f32 %v7614_v33, %v1588_v60  ;;  %v3201_v38 = vmul.f32 1.0614054, %v7661_v1 }
 0x27b   :  { %v3772_v14 = vadd.f32 1.0, %v3740_v6  ;;  %v3106_v19 = vmul.f32 0.3275911, %v3074_v53  ;;  %v1681_v21 = vmul.f32 %v7600_v0, %v1649_v54  ;;  %v7675_v27 = vadd.f32 %v7485_v49, %v9652_v39  ;;  %v9654_v54 = vld [vmem:[#allocation82_spill] sm:$0xff]  ;;  %v9656_v39 = vld [vmem:[#allocation81_spill] sm:$0xff] }
 0x27c   :  { %v1554_v47 = vmul.f32 %v7636_v32, %v1522_v42  ;;  %v5176_v59 = vpop.eup %5175  ;;  %v1652_v26 = vadd.f32 0.2548296, %v1620_v24  ;;  %v3233_v51 = vadd.f32 -1.4531521, %v3201_v38  ;;  %vm2072_vm10 = vcmask 130048  }
 0x27d   :  { %v7669_v16 = vmul.f32 %v3772_v14, %v7589_v63  ;;  %v3138_v6 = vadd.f32 1.0, %v3106_v19  ;;  %v7677_v45 = vpop.eup %5177  ;;  %v1841_v63 = vmul.f32 %v5176_v59, %v1681_v21  ;;  %vm1908_vm11 = vcmp.lt.f32.partialorder %v7537_v61, 0.0  ;;  %v9653_v14 = vld [vmem:[#allocation83_spill] sm:$0xff]  ;;  %v9657_v21 = vld [vmem:[#allocation80_spill] sm:$0xff] }
 0x27e   :  { %v1586_v0 = vadd.f32 -0.28449672, %v1554_v47  ;;  %v3490_v60 = vsub.f32 0.0, %v3074_v53  ;;  %v9655_v42 = vpack.c.bf16 %v9653_v14, %v9654_v54  ;;  %vm1905_vm12 = vcmp.lt.f32.partialorder %v7524_v40, 0.0  ;;  %v7694_v47 = vpop.f32.mrb[95].mxu0 }
 0x27f   :  { %v1684_v24 = vmul.f32 %v7614_v33, %v1652_v26  ;;  %v3265_v38 = vmul.f32 %v7661_v1, %v3233_v51  ;;  %v3199_v19 = vmul.f32 1.0614054, %v7677_v45  ;;  %5183 = vrcp.f32 %v3138_v6  ;;  %9659 = vst [vmem:[#allocation74_spill] sm:$0xff] %v7694_v47  ;;  %v5180_v13 = vpop.eup %5179  ;;  %v9660_v33 = vld [vmem:[#allocation87_spill] sm:$0xff]  ;;  %v9661_v26 = vld [vmem:[#allocation86_spill] sm:$0xff] }
 0x280   :  { %4735 = vmatprep.mubr.msk.bf16.mxu1 %vm2072_vm10, %v9655_v42  ;;  %v9658_v59 = vpack.c.bf16 %v9656_v39, %v9657_v21  ;;  %v1873_v14 = vsub.f32 1.0, %v1841_v63  ;;  %v1618_v54 = vmul.f32 %v7636_v32, %v1586_v0  ;;  %5185 = vpow2.f32 %v3567_v12  ;;  %v9663_v0 = vld [vmem:[#allocation76_spill] sm:$0xff] }
 0x281   :  { %v7698_v42 = vmul.f32 0.70710677, %v7675_v27  ;;  %v9662_v51 = vpack.c.bf16 %v9660_v33, %v9661_v26  ;;  %v1971_v6 = vsel %vm1907_vm9, %v1939_v34, %v1875_v58  ;;  %v1844_v39 = vmul.f32 %v5180_v13, %v1684_v24 }
 0x282   :  { %4736 = vmatmul.mubr.msk.bf16.vlgmr.msra.gmra.mrb[32].mxu1 %vm2072_vm10, %v9658_v59  ;;  %v3297_v21 = vadd.f32 1.4214138, %v3265_v38  ;;  %v3231_v59 = vadd.f32 -1.4531521, %v3199_v19  ;;  %v1650_v63 = vadd.f32 0.2548296, %v1618_v54  ;;  %v7712_v44 = vadd.f32 %v7341_v37, %v9663_v0 }
 0x283   :  { %4808 = vmatpush3.bf16.msra.mxu1 %v7392_v57  ;;  %4739 = vmatprep.mubr.msk.bf16.mxu1 %vm2072_vm10, %v9662_v51  ;;  %v3563_v47 = vmul.f32 1.442695, %v3519_v3  ;;  %v7708_v12 = vand.u32 2147483647, %v7698_v42  ;;  %v5182_v57 = vpop.eup %5181  ;;  %v1876_v46 = vsub.f32 1.0, %v1844_v39  ;;  %v3522_v41 = vmul.f32 %v3490_v60, %v3074_v53 }
 0x284   :  { %v3329_v33 = vmul.f32 %v7661_v1, %v3297_v21  ;;  %v3263_v26 = vmul.f32 %v7677_v45, %v3231_v59  ;;  %v1937_v58 = vsub.f32 0.0, %v1873_v14  ;;  %v1682_v34 = vmul.f32 %v7636_v32, %v1650_v63  ;;  %v9664_v59 = vld [vmem:[#allocation85_spill] sm:$0xff]  ;;  %v9665_v63 = vld [vmem:[#allocation84_spill] sm:$0xff] }
 0x285   :  { %vm1906_vm13 = vcmp.lt.f32.partialorder %v7560_v18, 0.0  ;;  %v1335_v3 = vmul.f32 0.3275911, %v7708_v12  ;;  %v2003_v13 = vadd.f32 1.0, %v1971_v6  ;;  %v1940_v24 = vsub.f32 0.0, %v1876_v46 }
 0x286   :  { %v3361_v38 = vadd.f32 -0.28449672, %v3329_v33  ;;  %v3295_v19 = vadd.f32 1.4214138, %v3263_v26  ;;  %v1842_v54 = vmul.f32 %v5182_v57, %v1682_v34  ;;  %5187 = vpow2.f32 %v3563_v47  ;;  %v9667_v33 = vld [vmem:[#allocation91_spill] sm:$0xff]  ;;  %v9668_v26 = vld [vmem:[#allocation89_spill] sm:$0xff] }
 0x287   :  { %v1367_v51 = vadd.f32 1.0, %v1335_v3  ;;  %v7720_v39 = vmul.f32 0.70710677, %v7712_v44  ;;  %v1972_v53 = vsel %vm1908_vm11, %v1940_v24, %v1876_v46  ;;  %v3569_v21 = vmul.f32 1.442695, %v3522_v41 }
 0x288   :  { %v3393_v60 = vmul.f32 %v7661_v1, %v3361_v38  ;;  %v3327_v32 = vmul.f32 %v7677_v45, %v3295_v19  ;;  %v9666_v6 = vpack.c.bf16 %v9664_v59, %v9665_v63  ;;  %v1969_v47 = vsel %vm1905_vm12, %v1937_v58, %v1873_v14 }
 0x289   :  { %v2004_v0 = vadd.f32 1.0, %v1972_v53  ;;  %v1874_v57 = vsub.f32 1.0, %v1842_v54  ;;  %5189 = vrcp.f32 %v1367_v51  ;;  %v9669_v61 = vpack.c.bf16 %v9667_v33, %v9668_v26  ;;  %v7736_v46 = vpop.eup %5183  ;;  %v9671_v26 = vld [vmem:[#allocation88_spill] sm:$0xff] }
 0x28a   :  { %4740 = vmatmul.mubr.msk.bf16.gmra.mrb[36].mxu1 %vm2072_vm10, %v9666_v6  ;;  %v7739_v41 = vmul.f32 %v2003_v13, %v7574_v31  ;;  %v3425_v34 = vadd.f32 0.2548296, %v3393_v60  ;;  %v3359_v3 = vadd.f32 -0.28449672, %v3327_v32  ;;  %v3072_v24 = vand.u32 2147483647, %v7720_v39  ;;  %v5186_v38 = vpop.eup %5185 }
 0x28b   :  { %4743 = vmatprep.mubr.msk.bf16.mxu1 %vm2072_vm10, %v9669_v61  ;;  %v7743_v40 = vmul.f32 %v2004_v0, %v7648_v10  ;;  %v1938_v14 = vsub.f32 0.0, %v1874_v57  ;;  %v3202_v58 = vmul.f32 1.0614054, %v7736_v46  ;;  %v7748_v19 = vadd.f32 %v7485_v49, %v7179_v9 }
 0x28c   :  { %v2001_v54 = vadd.f32 1.0, %v1969_v47  ;;  %v3457_v51 = vmul.f32 %v7661_v1, %v3425_v34  ;;  %v3391_v31 = vmul.f32 %v7677_v45, %v3359_v3  ;;  %v3104_v13 = vmul.f32 0.3275911, %v3072_v24 }
 0x28d   :  { %v1233_v53 = vmul.f32 0.5, %v7489_v50  ;;  %v2054_v60 = vpack.c.bf16 %v7743_v40, %v7739_v41  ;;  %v1970_v10 = vsel %vm1906_vm13, %v1938_v14, %v1874_v57  ;;  %v3234_v32 = vadd.f32 -1.4531521, %v3202_v58  ;;  %v9670_v57 = vld [vmem:[#allocation90_spill] sm:$0xff]  ;;  %v9673_v14 = vld [vmem:[#allocation73_spill] sm:$0xff]  ;;  %v9674_v58 = vld [vmem:[#allocation72_spill] sm:$0xff] }
 0x28e   :  { %v1234_v59 = vmul.f32 0.5, %v7542_v5  ;;  %v2002_v63 = vadd.f32 1.0, %v1970_v10  ;;  %v3423_v9 = vadd.f32 0.2548296, %v3391_v31  ;;  %v3136_v6 = vadd.f32 1.0, %v3104_v13 }
 0x28f   :  { %v3266_v47 = vmul.f32 %v7736_v46, %v3234_v32  ;;  %5191 = vpow2.f32 %v3569_v21  ;;  %v1719_v1 = vsub.f32 0.0, %v7708_v12  ;;  %v7761_v0 = vmul.f32 0.70710677, %v7748_v19 }
 0x290   :  { %v7763_v50 = vmul.f32 %v2001_v54, %v1233_v53  ;;  %v7765_v33 = vmul.f32 %v2002_v63, %v1234_v59  ;;  %v3617_v18 = vmul.f32 %v5186_v38, %v3457_v51  ;;  %5193 = vrcp.f32 %v3136_v6  ;;  %v5188_v61 = vpop.eup %5187 }
 0x291   :  { %v9672_v5 = vpack.c.bf16 %v9670_v57, %v9671_v26  ;;  %v3298_v34 = vadd.f32 1.4214138, %v3266_v47  ;;  %v3488_v3 = vsub.f32 0.0, %v3072_v24  ;;  %v1301_v21 = vand.u32 2147483647, %v7761_v0 }
 0x292   :  { %v9675_v31 = vpack.c.bf16 %v9673_v14, %v9674_v58  ;;  %v2053_v54 = vpack.c.bf16 %v7765_v33, %v7763_v50  ;;  %v3455_v38 = vmul.f32 %v7677_v45, %v3423_v9  ;;  %v7781_v51 = vadd.f32 %v7485_v49, %v7205_v48 }
 0x293   :  { %4744 = vmatmul.mubr.msk.bf16.gmra.mrb[40].mxu1 %vm2072_vm10, %v9672_v5  ;;  %v7783_v13 = vpop.eup %5189  ;;  %v3330_v53 = vmul.f32 %v7736_v46, %v3298_v34  ;;  %v1751_v10 = vmul.f32 %v1719_v1, %v7708_v12  ;;  %v1333_v32 = vmul.f32 0.3275911, %v1301_v21  ;;  %v7788_v59 = vmul.f32 0.5, %v7582_v62 }
 0x294   :  { %4747 = vmatprep.mubr.msk.bf16.mxu1 %vm2072_vm10, %v9675_v31  ;;  %v3649_v63 = vsub.f32 1.0, %v3617_v18  ;;  %v1431_v6 = vmul.f32 1.0614054, %v7783_v13  ;;  %v7792_v47 = vmul.f32 0.5, %v7586_v30  ;;  %v3520_v9 = vmul.f32 %v3488_v3, %v3072_v24  ;;  %v9676_v3 = vld [vmem:[#allocation93_spill] sm:$0xff] }
 0x295   :  { %v3362_v45 = vadd.f32 -0.28449672, %v3330_v53  ;;  %v1365_v48 = vadd.f32 1.0, %v1333_v32  ;;  %vm3681_vm14 = vcmp.lt.f32.partialorder %v7592_v36, 0.0  ;;  %v3615_v57 = vmul.f32 %v5188_v61, %v3455_v38  ;;  %v9677_v61 = vld [vmem:[#allocation92_spill] sm:$0xff] }
 0x296   :  { %v1463_v26 = vadd.f32 -1.4531521, %v1431_v6  ;;  %v7796_v5 = vmul.f32 0.70710677, %v7781_v51  ;;  %v1813_v62 = vmul.f32 1.442695, %v1751_v10  ;;  %v7801_v1 = vadd.f32 %v7485_v49, %v7230_v52 }
 0x297   :  { %v3394_v12 = vmul.f32 %v7736_v46, %v3362_v45  ;;  %5195 = vrcp.f32 %v1365_v48  ;;  %v3713_v30 = vsub.f32 0.0, %v3649_v63  ;;  %v1717_v24 = vsub.f32 0.0, %v1301_v21 }
 0x298   :  { %v1495_v18 = vmul.f32 %v7783_v13, %v1463_v26  ;;  %v1304_v34 = vand.u32 2147483647, %v7796_v5  ;;  %v9678_v14 = vpack.c.bf16 %v9676_v3, %v9677_v61  ;;  %vm3679_vm15 = vcmp.lt.f32.partialorder %v7605_v4, 0.0 }
 0x299   :  { %v5192_v58 = vpop.eup %5191  ;;  %v3010_v31 = vmul.f32 0.5, %v7629_v43  ;;  %v3426_v38 = vadd.f32 0.2548296, %v3394_v12  ;;  %v3565_v53 = vmul.f32 1.442695, %v3520_v9  ;;  %v9679_v52 = vpack.c.bf16 %v7276_v15, %v7272_v25 }
 0x29a   :  { %v7815_v49 = vpop.eup %5193  ;;  %v3647_v10 = vsub.f32 1.0, %v3615_v57  ;;  %vm3682_vm0 = vcmp.lt.f32.partialorder %v7644_v28, 0.0  ;;  %v1527_v32 = vadd.f32 1.4214138, %v1495_v18  ;;  %v1336_v6 = vmul.f32 0.3275911, %v1304_v34 }
 0x29b   :  { %4748 = vmatmul.mubr.msk.bf16.gmra.mrb[44].mxu1 %vm2072_vm10, %v9678_v14  ;;  %v7820_v45 = vadd.f32 %v7341_v37, %v7247_v55  ;;  %v3458_v43 = vmul.f32 %v7736_v46, %v3426_v38  ;;  %5197 = vpow2.f32 %v1813_v62  ;;  %v3200_v9 = vmul.f32 1.0614054, %v7815_v49  ;;  %v9681_v38 = vld [vmem:[#allocation95_spill] sm:$0xff] }
 0x29c   :  { %4751 = vmatprep.mubr.msk.bf16.mxu1 %vm2072_vm10, %v9679_v52  ;;  %v7825_v25 = vmul.f32 0.70710677, %v7801_v1  ;;  %v3745_v15 = vsel %vm3681_vm14, %v3713_v30, %v3649_v63  ;;  %v1559_v48 = vmul.f32 %v7783_v13, %v1527_v32  ;;  %v1749_v57 = vmul.f32 %v1717_v24, %v1301_v21 }
 0x29d   :  { %v1368_v26 = vadd.f32 1.0, %v1336_v6  ;;  %v3618_v12 = vmul.f32 %v5192_v58, %v3458_v43  ;;  %v3232_v18 = vadd.f32 -1.4531521, %v3200_v9  ;;  %5199 = vpow2.f32 %v3565_v53  ;;  %v9680_v58 = vld [vmem:[#allocation96_spill] sm:$0xff] }
 0x29e   :  { %v1302_v55 = vand.u32 2147483647, %v7825_v25  ;;  %v3711_v37 = vsub.f32 0.0, %v3647_v10  ;;  %v1591_v46 = vadd.f32 -0.28449672, %v1559_v48  ;;  %v3777_v3 = vadd.f32 1.0, %v3745_v15 }
 0x29f   :  { %5201 = vrcp.f32 %v1368_v26  ;;  %v7832_v62 = vmul.f32 0.70710677, %v7820_v45  ;;  %v3650_v61 = vsub.f32 1.0, %v3618_v12  ;;  %v3264_v36 = vmul.f32 %v7815_v49, %v3232_v18 }
 0x2a0   :  { %v1334_v63 = vmul.f32 0.3275911, %v1302_v55  ;;  %v1623_v30 = vmul.f32 %v7783_v13, %v1591_v46  ;;  %v1809_v21 = vmul.f32 1.442695, %v1749_v57  ;;  %v1720_v24 = vsub.f32 0.0, %v1304_v34 }
 0x2a1   :  { %v7837_v14 = vand.u32 2147483647, %v7832_v62  ;;  %v9682_v53 = vpack.c.bf16 %v9680_v58, %v9681_v38  ;;  %v7843_v52 = vpop.eup %5195  ;;  %v3714_v32 = vsub.f32 0.0, %v3650_v61  ;;  %v3296_v6 = vadd.f32 1.4214138, %v3264_v36 }
 0x2a2   :  { %v1366_v43 = vadd.f32 1.0, %v1334_v63  ;;  %v1718_v9 = vsub.f32 0.0, %v1302_v55  ;;  %v9683_v15 = vpack.c.bf16 %v7520_v2, %v7518_v29  ;;  %v3743_v48 = vsel %vm3679_vm15, %v3711_v37, %v3647_v10  ;;  %v7859_v29 = vld [vmem:[%s9193_s6] ss:$0 sm:$0xff]  ;;  %v9684_v2 = vld [vmem:[#allocation94_spill] sm:$0xff] }
 0x2a3   :  { %4752 = vmatmul.mubr.msk.bf16.gmra.mrb[48].mxu1 %vm2072_vm10, %v9682_v53  ;;  %v1655_v57 = vadd.f32 0.2548296, %v1623_v30  ;;  %v1429_v26 = vmul.f32 1.0614054, %v7843_v52  ;;  %v3109_v12 = vmul.f32 0.3275911, %v7837_v14  ;;  %v3746_v18 = vsel %vm3682_vm0, %v3714_v32, %v3650_v61 }
 0x2a4   :  { %4755 = vmatprep.mubr.msk.bf16.mxu1 %vm2072_vm10, %v9683_v15  ;;  %v3328_v46 = vmul.f32 %v7815_v49, %v3296_v6  ;;  %5203 = vrcp.f32 %v1366_v43  ;;  %v7863_v4 = vadd.f32 %v7859_v29, %v9684_v2  ;;  %v3778_v10 = vadd.f32 1.0, %v3746_v18 }
 0x2a5   :  { %v1687_v37 = vmul.f32 %v7783_v13, %v1655_v57  ;;  %v1461_v36 = vadd.f32 -1.4531521, %v1429_v26  ;;  %v3141_v63 = vadd.f32 1.0, %v3109_v12  ;;  %v5198_v30 = vpop.eup %5197  ;;  %v7867_v28 = vmul.f32 0.5, %v7675_v27 }
 0x2a6   :  { %v7870_v61 = vmul.f32 0.5, %v7712_v44  ;;  %v3360_v58 = vadd.f32 -0.28449672, %v3328_v46  ;;  %v1752_v38 = vmul.f32 %v1720_v24, %v1304_v34  ;;  %v7873_v53 = vmul.f32 %v3777_v3, %v7788_v59 }
 0x2a7   :  { %v7875_v32 = vmul.f32 %v3778_v10, %v3010_v31  ;;  %v1493_v6 = vmul.f32 %v7843_v52, %v1461_v36  ;;  %5205 = vrcp.f32 %v3141_v63  ;;  %v5200_v13 = vpop.eup %5199  ;;  %v3775_v43 = vadd.f32 1.0, %v3743_v48 }
 0x2a8   :  { %v3392_v15 = vmul.f32 %v7815_v49, %v3360_v58  ;;  %v1750_v57 = vmul.f32 %v1718_v9, %v1302_v55  ;;  %v7880_v27 = vmul.f32 0.70710677, %v7863_v4  ;;  %v1847_v59 = vmul.f32 %v5198_v30, %v1687_v37  ;;  %v9686_v9 = vld [vmem:[#allocation97_spill] sm:$0xff] }
 0x2a9   :  { %v7882_v44 = vpop.eup %5201  ;;  %v3834_v34 = vpack.c.bf16 %v7875_v32, %v7873_v53  ;;  %v1525_v3 = vadd.f32 1.4214138, %v1493_v6  ;;  %5207 = vpow2.f32 %v1809_v21  ;;  %v9685_v31 = vpack.c.bf16 %v7505_v11, %v7500_v7 }
 0x2aa   :  { %v3424_v24 = vadd.f32 0.2548296, %v3392_v15  ;;  %v1432_v48 = vmul.f32 1.0614054, %v7882_v44  ;;  %v1815_v55 = vmul.f32 1.442695, %v1752_v38  ;;  %v7893_v26 = vadd.f32 %v7859_v29, %v9686_v9 }
 0x2ab   :  { %4756 = vmatmul.mubr.msk.bf16.gmra.mrb[52].mxu1 %vm2072_vm10, %v9685_v31  ;;  %vm3680_vm2 = vcmp.lt.f32.partialorder %v7720_v39, 0.0  ;;  %v1557_v21 = vmul.f32 %v7843_v52, %v1525_v3  ;;  %v3493_v7 = vsub.f32 0.0, %v7837_v14  ;;  %v7903_v11 = vand.u32 2147483647, %v7880_v27 }
 0x2ac   :  { %4759 = vmatprep.mubr.msk.bf16.mxu1 %vm2072_vm10, %v2053_v54  ;;  %vm1911_vm3 = vcmp.lt.f32.partialorder %v7698_v42, 0.0  ;;  %v3456_v12 = vmul.f32 %v7815_v49, %v3424_v24  ;;  %v7908_v18 = vmul.f32 0.5, %v7748_v19  ;;  %v1464_v46 = vadd.f32 -1.4531521, %v1432_v48 }
 0x2ad   :  { %v1811_v50 = vmul.f32 1.442695, %v1750_v57  ;;  %v7911_v33 = vmul.f32 %v3775_v43, %v7792_v47  ;;  %v1879_v54 = vsub.f32 1.0, %v1847_v59  ;;  %v1589_v2 = vadd.f32 -0.28449672, %v1557_v21 }
 0x2ae   :  { %v3107_v10 = vmul.f32 0.3275911, %v7903_v11  ;;  %v7914_v37 = vpop.eup %5203  ;;  %v3616_v36 = vmul.f32 %v5200_v13, %v3456_v12  ;;  %v1496_v63 = vmul.f32 %v7882_v44, %v1464_v46  ;;  %5209 = vpow2.f32 %v1815_v55 }
 0x2af   :  { %v7918_v49 = vmul.f32 0.70710677, %v7893_v26  ;;  %v1621_v19 = vmul.f32 %v7843_v52, %v1589_v2  ;;  %v1430_v30 = vmul.f32 1.0614054, %v7914_v37  ;;  %v3525_v47 = vmul.f32 %v3493_v7, %v7837_v14  ;;  %v9687_v7 = vld [vmem:[#allocation98_spill] sm:$0xff] }
 0x2b0   :  { %v3139_v58 = vadd.f32 1.0, %v3107_v10  ;;  %v3648_v38 = vsub.f32 1.0, %v3616_v36  ;;  %v1528_v6 = vadd.f32 1.4214138, %v1496_v63  ;;  %5211 = vpow2.f32 %v1811_v50 }
 0x2b1   :  { %v3078_v43 = vand.u32 2147483647, %v7918_v49  ;;  %v7924_v15 = vpop.eup %5205  ;;  %v1943_v13 = vsub.f32 0.0, %v1879_v54  ;;  %v1653_v57 = vadd.f32 0.2548296, %v1621_v19  ;;  %v7936_v12 = vadd.f32 %v7859_v29, %v9687_v7 }
 0x2b2   :  { %v1462_v59 = vadd.f32 -1.4531521, %v1430_v30  ;;  %5213 = vrcp.f32 %v3139_v58  ;;  %v3712_v3 = vsub.f32 0.0, %v3648_v38  ;;  %v1560_v14 = vmul.f32 %v7882_v44, %v1528_v6 }
 0x2b3   :  { %4760 = vmatmul.mubr.msk.bf16.gmra.mrb[56].mxu1 %vm2072_vm10, %v2054_v60  ;;  %v3205_v31 = vmul.f32 1.0614054, %v7924_v15  ;;  %v3110_v24 = vmul.f32 0.3275911, %v3078_v43  ;;  %v5208_v48 = vpop.eup %5207  ;;  %v1685_v55 = vmul.f32 %v7843_v52, %v1653_v57  ;;  %v3575_v21 = vmul.f32 1.442695, %v3525_v47 }
 0x2b4   :  { %v1494_v9 = vmul.f32 %v7914_v37, %v1462_v59  ;;  %v3744_v41 = vsel %vm3680_vm2, %v3712_v3, %v3648_v38  ;;  %v1592_v40 = vadd.f32 -0.28449672, %v1560_v14  ;;  %v1975_v50 = vsel %vm1911_vm3, %v1943_v13, %v1879_v54 }
 0x2b5   :  { %v3237_v60 = vadd.f32 -1.4531521, %v3205_v31  ;;  %v3142_v46 = vadd.f32 1.0, %v3110_v24  ;;  %v3776_v2 = vadd.f32 1.0, %v3744_v41  ;;  %v1845_v10 = vmul.f32 %v5208_v48, %v1685_v55 }
 0x2b6   :  { %v1526_v36 = vadd.f32 1.4214138, %v1494_v9  ;;  %v1624_v52 = vmul.f32 %v7882_v44, %v1592_v40  ;;  %v3491_v19 = vsub.f32 0.0, %v7903_v11  ;;  %v3494_v47 = vsub.f32 0.0, %v3078_v43 }
 0x2b7   :  { %v3269_v63 = vmul.f32 %v7924_v15, %v3237_v60  ;;  %5215 = vrcp.f32 %v3142_v46  ;;  %v7946_v30 = vmul.f32 %v3776_v2, %v7870_v61  ;;  %v7951_v42 = vadd.f32 %v7859_v29, %v7408_v23 }
 0x2b8   :  { %v1558_v39 = vmul.f32 %v7914_v37, %v1526_v36  ;;  %v5210_v54 = vpop.eup %5209  ;;  %v1877_v58 = vsub.f32 1.0, %v1845_v10  ;;  %v1656_v38 = vadd.f32 0.2548296, %v1624_v52  ;;  %5217 = vpow2.f32 %v3575_v21 }
 0x2b9   :  { %v3301_v6 = vadd.f32 1.4214138, %v3269_v63  ;;  %v2007_v13 = vadd.f32 1.0, %v1975_v50  ;;  %v3833_v57 = vpack.c.bf16 %v7946_v30, %v7911_v33  ;;  %vm1909_vm4 = vcmp.lt.f32.partialorder %v7761_v0, 0.0  ;;  %v9705_v30 = vld [vmem:[#allocation106_spill] sm:$0xff] }
 0x2ba   :  { %v1590_v61 = vadd.f32 -0.28449672, %v1558_v39  ;;  %v5212_v59 = vpop.eup %5211  ;;  %v1688_v3 = vmul.f32 %v7882_v44, %v1656_v38  ;;  %v3523_v23 = vmul.f32 %v3491_v19, %v7903_v11  ;;  %v7960_v31 = vmul.f32 0.70710677, %v7936_v12 }
 0x2bb   :  { %v3333_v14 = vmul.f32 %v7924_v15, %v3301_v6  ;;  %v1240_v48 = vmul.f32 0.5, %v7781_v51  ;;  %v3526_v9 = vmul.f32 %v3494_v47, %v3078_v43  ;;  %v7967_v21 = vmul.f32 0.70710677, %v7951_v42 }
 0x2bc   :  { %v7962_v24 = vpop.eup %5213  ;;  %v1622_v55 = vmul.f32 %v7914_v37, %v1590_v61  ;;  %v1941_v7 = vsub.f32 0.0, %v1877_v58  ;;  %v1848_v41 = vmul.f32 %v5210_v54, %v1688_v3  ;;  %v7971_v11 = vmul.f32 %v2007_v13, %v7867_v28 }
 0x2bd   :  { %v3365_v44 = vadd.f32 -0.28449672, %v3333_v14  ;;  %v3203_v40 = vmul.f32 1.0614054, %v7962_v24  ;;  %vm1912_vm5 = vcmp.lt.f32.partialorder %v7796_v5, 0.0  ;;  %vm1910_vm6 = vcmp.lt.f32.partialorder %v7825_v25, 0.0 }
 0x2be   :  { %v1654_v60 = vadd.f32 0.2548296, %v1622_v55  ;;  %v3076_v46 = vand.u32 2147483647, %v7960_v31  ;;  %v1880_v51 = vsub.f32 1.0, %v1848_v41  ;;  %v1973_v19 = vsel %vm1909_vm4, %v1941_v7, %v1877_v58 }
 0x2bf   :  { %v3397_v43 = vmul.f32 %v7924_v15, %v3365_v44  ;;  %v3235_v50 = vadd.f32 -1.4531521, %v3203_v40  ;;  %v3571_v2 = vmul.f32 1.442695, %v3523_v23  ;;  %v3577_v36 = vmul.f32 1.442695, %v3526_v9 }
 0x2c0   :  { %v1686_v10 = vmul.f32 %v7914_v37, %v1654_v60  ;;  %v3108_v52 = vmul.f32 0.3275911, %v3076_v46  ;;  %v3081_v63 = vand.u32 2147483647, %v7967_v21  ;;  %v1944_v39 = vsub.f32 0.0, %v1880_v51 }
 0x2c1   :  { %v7979_v28 = vpop.eup %5215  ;;  %v3429_v47 = vadd.f32 0.2548296, %v3397_v43  ;;  %v3267_v54 = vmul.f32 %v7962_v24, %v3235_v50  ;;  %v7987_v37 = vadd.f32 %v7859_v29, %v7416_v56  ;;  %v3492_v7 = vsub.f32 0.0, %v3076_v46 }
 0x2c2   :  { %v1846_v38 = vmul.f32 %v5212_v59, %v1686_v10  ;;  %v3206_v6 = vmul.f32 1.0614054, %v7979_v28  ;;  %v3140_v13 = vadd.f32 1.0, %v3108_v52  ;;  %v5218_v61 = vpop.eup %5217  ;;  %v1976_v3 = vsel %vm1912_vm5, %v1944_v39, %v1880_v51 }
 0x2c3   :  { %v3461_v14 = vmul.f32 %v7924_v15, %v3429_v47  ;;  %v3299_v0 = vadd.f32 1.4214138, %v3267_v54  ;;  %v3113_v58 = vmul.f32 0.3275911, %v3081_v63  ;;  %v2008_v23 = vadd.f32 1.0, %v1976_v3 }
 0x2c4   :  { %v1878_v55 = vsub.f32 1.0, %v1846_v38  ;;  %v3238_v9 = vadd.f32 -1.4531521, %v3206_v6  ;;  %5219 = vrcp.f32 %v3140_v13  ;;  %v2005_v5 = vadd.f32 1.0, %v1973_v19 }
 0x2c5   :  { %v3331_v59 = vmul.f32 %v7962_v24, %v3299_v0  ;;  %5221 = vpow2.f32 %v3571_v2  ;;  %v3145_v41 = vadd.f32 1.0, %v3113_v58  ;;  %v2040_v44 = vmul.f32 %v2008_v23, %v1240_v48 }
 0x2c6   :  { %v1942_v56 = vsub.f32 0.0, %v1878_v55  ;;  %v3621_v40 = vmul.f32 %v5218_v61, %v3461_v14  ;;  %v3270_v60 = vmul.f32 %v7979_v28, %v3238_v9  ;;  %5223 = vpow2.f32 %v3577_v36 }
 0x2c7   :  { %v3363_v51 = vadd.f32 -0.28449672, %v3331_v59  ;;  %v7995_v15 = vmul.f32 0.70710677, %v7987_v37  ;;  %v2056_v43 = vpack.c.bf16 %v2040_v44, %v7971_v11  ;;  %5225 = vrcp.f32 %v3145_v41 }
 0x2c8   :  { %v1974_v50 = vsel %vm1910_vm6, %v1942_v56, %v1878_v55  ;;  %v3302_v10 = vadd.f32 1.4214138, %v3270_v60  ;;  %v1238_v2 = vmul.f32 0.5, %v7801_v1  ;;  %v8004_v19 = vadd.f32 %v7859_v29, %v7437_v17 }
 0x2c9   :  { %v2006_v48 = vadd.f32 1.0, %v1974_v50  ;;  %v3395_v52 = vmul.f32 %v7962_v24, %v3363_v51  ;;  %v3653_v36 = vsub.f32 1.0, %v3621_v40  ;;  %v3524_v47 = vmul.f32 %v3492_v7, %v3076_v46  ;;  %v9689_v51 = vld [vmem:[#allocation78_spill] sm:$0xff] }
 0x2ca   :  { %v3334_v39 = vmul.f32 %v7979_v28, %v3302_v10  ;;  %v3079_v11 = vand.u32 2147483647, %v7995_v15  ;;  %v2037_v25 = vmul.f32 %v2005_v5, %v7908_v18  ;;  %v8010_v38 = vmul.f32 0.5, %v7820_v45  ;;  %v9688_v5 = vld [vmem:[#allocation79_spill] sm:$0xff] }
 0x2cb   :  { %v2038_v54 = vmul.f32 %v2006_v48, %v1238_v2  ;;  %v3497_v1 = vsub.f32 0.0, %v3081_v63  ;;  %v3427_v6 = vadd.f32 0.2548296, %v3395_v52  ;;  %vm3685_vm7 = vcmp.lt.f32.partialorder %v7832_v62, 0.0 }
 0x2cc   :  { %v3366_v13 = vadd.f32 -0.28449672, %v3334_v39  ;;  %v3111_v61 = vmul.f32 0.3275911, %v3079_v11  ;;  %v8014_v17 = vmul.f32 0.5, %v7863_v4  ;;  %v3717_v18 = vsub.f32 0.0, %v3653_v36 }
 0x2cd   :  { %v2055_v3 = vpack.c.bf16 %v2038_v54, %v2037_v25  ;;  %v8017_v46 = vmul.f32 0.70710677, %v8004_v19  ;;  %v3573_v45 = vmul.f32 1.442695, %v3524_v47  ;;  %v8023_v55 = vmul.f32 0.5, %v7893_v26 }
 0x2ce   :  { %v8019_v14 = vpop.eup %5219  ;;  %v3398_v0 = vmul.f32 %v7979_v28, %v3366_v13  ;;  %v3143_v58 = vadd.f32 1.0, %v3111_v61  ;;  %v3529_v59 = vmul.f32 %v3497_v1, %v3081_v63  ;;  %v3459_v7 = vmul.f32 %v7962_v24, %v3427_v6 }
 0x2cf   :  { %v5222_v23 = vpop.eup %5221  ;;  %v3204_v9 = vmul.f32 1.0614054, %v8019_v14  ;;  %v3082_v4 = vand.u32 2147483647, %v8017_v46  ;;  %4763 = vmatprep.mubr.msk.bf16.mxu1 %vm2072_vm10, %v2055_v3  ;;  %v8031_v44 = vadd.f32 %v7859_v29, %v7463_v20  ;;  %vm3686_vm8 = vcmp.lt.f32.partialorder %v7918_v49, 0.0 }
 0x2d0   :  { %v3430_v41 = vadd.f32 0.2548296, %v3398_v0  ;;  %5227 = vrcp.f32 %v3143_v58  ;;  %4764 = vmatmul.mubr.msk.bf16.gmra.mrb[60].mxu1 %vm2072_vm10, %v2056_v43  ;;  %v5224_v56 = vpop.eup %5223  ;;  %v8036_v26 = vmul.f32 0.5, %v7936_v12  ;;  %v3495_v40 = vsub.f32 0.0, %v3079_v11  ;;  %v9691_v0 = vld [vmem:[#allocation103_spill] sm:$0xff] }
 0x2d1   :  { %v3236_v63 = vadd.f32 -1.4531521, %v3204_v9  ;;  %v3114_v60 = vmul.f32 0.3275911, %v3082_v4  ;;  %v9690_v24 = vpack.c.bf16 %v9688_v5, %v9689_v51  ;;  %v8042_v50 = vpop.eup %5225  ;;  %v3749_v20 = vsel %vm3685_vm7, %v3717_v18, %v3653_v36 }
 0x2d2   :  { %v3462_v43 = vmul.f32 %v7979_v28, %v3430_v41  ;;  %5229 = vpow2.f32 %v3573_v45  ;;  %v8048_v10 = vmul.f32 0.70710677, %v8031_v44  ;;  %v3209_v2 = vmul.f32 1.0614054, %v8042_v50 }
 0x2d3   :  { %4809 = vmatprep.mubr.msk.bf16.mxu1 %vm2072_vm10, %v9690_v24  ;;  %v3268_v12 = vmul.f32 %v8019_v14, %v3236_v63  ;;  %v3583_v48 = vmul.f32 1.442695, %v3529_v59  ;;  %v3146_v52 = vadd.f32 1.0, %v3114_v60  ;;  %v3619_v39 = vmul.f32 %v5222_v23, %v3459_v7  ;;  %v9692_v59 = vld [vmem:[#allocation77_spill] sm:$0xff]  ;;  %v9693_v7 = vld [vmem:[#allocation75_spill] sm:$0xff] }
 0x2d4   :  { %v3622_v47 = vmul.f32 %v5224_v56, %v3462_v43  ;;  %v3498_v25 = vsub.f32 0.0, %v3082_v4  ;;  %v3080_v54 = vand.u32 2147483647, %v8048_v10  ;;  %v3241_v62 = vadd.f32 -1.4531521, %v3209_v2  ;;  %v9696_v60 = vld [vmem:[#allocation101_spill] sm:$0xff] }
 0x2d5   :  { %v3300_v1 = vadd.f32 1.4214138, %v3268_v12  ;;  %v3527_v36 = vmul.f32 %v3495_v40, %v3079_v11  ;;  %5231 = vrcp.f32 %v3146_v52  ;;  %v3781_v28 = vadd.f32 1.0, %v3749_v20  ;;  %v9695_v40 = vld [vmem:[#allocation102_spill] sm:$0xff]  ;;  %v9698_v20 = vld [vmem:[#allocation104_spill] sm:$0xff] }
 0x2d6   :  { %v3654_v6 = vsub.f32 1.0, %v3622_v47  ;;  %v8054_v13 = vmul.f32 0.5, %v7951_v42  ;;  %v3112_v61 = vmul.f32 0.3275911, %v3080_v54  ;;  %vm3683_vm9 = vcmp.lt.f32.partialorder %v7880_v27, 0.0 }
 0x2d7   :  { %v3332_v3 = vmul.f32 %v8019_v14, %v3300_v1  ;;  %v3273_v18 = vmul.f32 %v8042_v50, %v3241_v62  ;;  %5233 = vpow2.f32 %v3583_v48  ;;  %v8061_v45 = vadd.f32 %v7859_v29, %v9691_v0 }
 0x2d8   :  { %v3651_v58 = vsub.f32 1.0, %v3619_v39  ;;  %v3718_v11 = vsub.f32 0.0, %v3654_v6  ;;  %v3530_v23 = vmul.f32 %v3498_v25, %v3082_v4  ;;  %v3144_v9 = vadd.f32 1.0, %v3112_v61 }
 0x2d9   :  { %v9694_v42 = vpack.c.bf16 %v9692_v59, %v9693_v7  ;;  %v3364_v41 = vadd.f32 -0.28449672, %v3332_v3  ;;  %v3305_v56 = vadd.f32 1.4214138, %v3273_v18  ;;  %v3579_v63 = vmul.f32 1.442695, %v3527_v36 }
 0x2da   :  { %v9697_v5 = vpack.c.bf16 %v9695_v40, %v9696_v60  ;;  %v8071_v51 = vpop.eup %5227  ;;  %v3750_v24 = vsel %vm3686_vm8, %v3718_v11, %v3654_v6  ;;  %5235 = vrcp.f32 %v3144_v9  ;;  %v8076_v4 = vmul.f32 0.70710677, %v8061_v45 }
 0x2db   :  { %4810 = vmatmul.mubr.msk.bf16.vlgmr.msra.gmra.mrb[64].mxu1 %vm2072_vm10, %v9694_v42  ;;  %v8080_v43 = vadd.f32 %v7859_v29, %v9698_v20  ;;  %v3782_v12 = vadd.f32 1.0, %v3750_v24  ;;  %v3396_v2 = vmul.f32 %v8019_v14, %v3364_v41  ;;  %v3337_v48 = vmul.f32 %v8042_v50, %v3305_v56  ;;  %v9699_v41 = vld [vmem:[#allocation100_spill] sm:$0xff]  ;;  %v9700_v56 = vld [vmem:[#allocation99_spill] sm:$0xff] }
 0x2dc   :  { %4813 = vmatprep.mubr.msk.bf16.mxu1 %vm2072_vm10, %v9697_v5  ;;  %v3207_v52 = vmul.f32 1.0614054, %v8071_v51  ;;  %v5230_v39 = vpop.eup %5229  ;;  %v8086_v47 = vmul.f32 %v3781_v28, %v8010_v38  ;;  %v3715_v49 = vsub.f32 0.0, %v3651_v58  ;;  %v3585_v25 = vmul.f32 1.442695, %v3530_v23 }
 0x2dd   :  { %v8089_v1 = vand.u32 2147483647, %v8076_v4  ;;  %v8092_v62 = vmul.f32 %v3782_v12, %v8023_v55  ;;  %v3428_v36 = vadd.f32 0.2548296, %v3396_v2  ;;  %v3369_v6 = vadd.f32 -0.28449672, %v3337_v48 }
 0x2de   :  { %v3239_v61 = vadd.f32 -1.4531521, %v3207_v52  ;;  %5237 = vpow2.f32 %v3579_v63  ;;  %v3496_v3 = vsub.f32 0.0, %v3080_v54  ;;  %v8096_v0 = vmul.f32 0.70710677, %v8080_v43 }
 0x2df   :  { %v3117_v18 = vmul.f32 0.3275911, %v8089_v1  ;;  %v8098_v38 = vpop.eup %5231  ;;  %v3836_v28 = vpack.c.bf16 %v8092_v62, %v8086_v47  ;;  %v3460_v11 = vmul.f32 %v8019_v14, %v3428_v36  ;;  %v3401_v55 = vmul.f32 %v8042_v50, %v3369_v6 }
 0x2e0   :  { %v3271_v23 = vmul.f32 %v8071_v51, %v3239_v61  ;;  %v3747_v9 = vsel %vm3683_vm9, %v3715_v49, %v3651_v58  ;;  %v3210_v59 = vmul.f32 1.0614054, %v8098_v38  ;;  %v8109_v42 = vand.u32 2147483647, %v8096_v0 }
 0x2e1   :  { %v3149_v7 = vadd.f32 1.0, %v3117_v18  ;;  %v9701_v63 = vpack.c.bf16 %v9699_v41, %v9700_v56  ;;  %v5234_v40 = vpop.eup %5233  ;;  %v3620_v14 = vmul.f32 %v5230_v39, %v3460_v11  ;;  %vm3684_vm11 = vcmp.lt.f32.partialorder %v7960_v31, 0.0 }
 0x2e2   :  { %v3433_v60 = vadd.f32 0.2548296, %v3401_v55  ;;  %v3303_v5 = vadd.f32 1.4214138, %v3271_v23  ;;  %v9702_v27 = vpack.c.bf16 %v7669_v16, %v7653_v22  ;;  %v3242_v58 = vadd.f32 -1.4531521, %v3210_v59 }
 0x2e3   :  { %4814 = vmatmul.mubr.msk.bf16.gmra.mrb[68].mxu1 %vm2072_vm10, %v9701_v63  ;;  %v3528_v24 = vmul.f32 %v3496_v3, %v3080_v54  ;;  %5239 = vrcp.f32 %v3149_v7  ;;  %v3115_v20 = vmul.f32 0.3275911, %v8109_v42  ;;  %v3779_v12 = vadd.f32 1.0, %v3747_v9  ;;  %v9703_v22 = vld [vmem:[#allocation105_spill] sm:$0xff] }
 0x2e4   :  { %4817 = vmatprep.mubr.msk.bf16.mxu1 %vm2072_vm10, %v9702_v27  ;;  %v3652_v2 = vsub.f32 1.0, %v3620_v14  ;;  %v3465_v48 = vmul.f32 %v8042_v50, %v3433_v60  ;;  %v3335_v52 = vmul.f32 %v8071_v51, %v3303_v5  ;;  %v8123_v39 = vpop.eup %5235  ;;  %v3274_v49 = vmul.f32 %v8098_v38, %v3242_v58 }
 0x2e5   :  { %5241 = vpow2.f32 %v3585_v25  ;;  %v3147_v36 = vadd.f32 1.0, %v3115_v20  ;;  %v8128_v16 = vadd.f32 %v7859_v29, %v9703_v22  ;;  %v3208_v3 = vmul.f32 1.0614054, %v8123_v39 }
 0x2e6   :  { %v3716_v54 = vsub.f32 0.0, %v3652_v2  ;;  %v3625_v6 = vmul.f32 %v5234_v40, %v3465_v48  ;;  %v3367_v61 = vadd.f32 -0.28449672, %v3335_v52  ;;  %v3306_v18 = vadd.f32 1.4214138, %v3274_v49 }
 0x2e7   :  { %v3581_v11 = vmul.f32 1.442695, %v3528_v24  ;;  %v3501_v50 = vsub.f32 0.0, %v8089_v1  ;;  %5243 = vrcp.f32 %v3147_v36  ;;  %v3240_v9 = vadd.f32 -1.4531521, %v3208_v3 }
 0x2e8   :  { %v3748_v55 = vsel %vm3684_vm11, %v3716_v54, %v3652_v2  ;;  %v3657_v23 = vsub.f32 1.0, %v3625_v6  ;;  %v3399_v25 = vmul.f32 %v8071_v51, %v3367_v61  ;;  %v5238_v59 = vpop.eup %5237  ;;  %vm3689_vm12 = vcmp.lt.f32.partialorder %v7967_v21, 0.0 }
 0x2e9   :  { %v3780_v7 = vadd.f32 1.0, %v3748_v55  ;;  %v3338_v41 = vmul.f32 %v8098_v38, %v3306_v18  ;;  %v8138_v56 = vmul.f32 0.70710677, %v8128_v16  ;;  %v9704_v63 = vpack.c.bf16 %v7619_v8, %v7594_v35 }
 0x2ea   :  { %v3811_v31 = vmul.f32 %v3779_v12, %v8014_v17  ;;  %v8146_v40 = vmul.f32 0.5, %v7987_v37  ;;  %v3431_v14 = vadd.f32 0.2548296, %v3399_v25  ;;  %v3272_v60 = vmul.f32 %v8123_v39, %v3240_v9 }
 0x2eb   :  { %4818 = vmatmul.mubr.msk.bf16.gmra.mrb[72].mxu1 %vm2072_vm10, %v9704_v63  ;;  %v3812_v5 = vmul.f32 %v3780_v7, %v8036_v26  ;;  %v3370_v27 = vadd.f32 -0.28449672, %v3338_v41  ;;  %5245 = vpow2.f32 %v3581_v11  ;;  %v3086_v35 = vand.u32 2147483647, %v8138_v56 }
 0x2ec   :  { %4821 = vmatprep.mubr.msk.bf16.mxu1 %vm2072_vm10, %v3833_v57  ;;  %v3721_v8 = vsub.f32 0.0, %v3657_v23  ;;  %v3463_v17 = vmul.f32 %v8071_v51, %v3431_v14  ;;  %v3304_v58 = vadd.f32 1.4214138, %v3272_v60  ;;  %v3533_v37 = vmul.f32 %v3501_v50, %v8089_v1  ;;  %v9706_v14 = vld [vmem:[#allocation107_spill] sm:$0xff] }
 0x2ed   :  { %v8157_v24 = vpop.eup %5239  ;;  %v3835_v20 = vpack.c.bf16 %v3812_v5, %v3811_v31  ;;  %v3402_v12 = vmul.f32 %v8098_v38, %v3370_v27  ;;  %v3118_v33 = vmul.f32 0.3275911, %v3086_v35  ;;  %v8162_v57 = vadd.f32 %v7859_v29, %v9705_v30 }
 0x2ee   :  { %v3623_v26 = vmul.f32 %v5238_v59, %v3463_v17  ;;  %v3336_v2 = vmul.f32 %v8123_v39, %v3304_v58  ;;  %v3213_v48 = vmul.f32 1.0614054, %v8157_v24  ;;  %v3499_v51 = vsub.f32 0.0, %v8109_v42 }
 0x2ef   :  { %v5242_v52 = vpop.eup %5241  ;;  %vm3687_vm13 = vcmp.lt.f32.partialorder %v7995_v15, 0.0  ;;  %v3018_v1 = vmul.f32 0.5, %v8004_v19  ;;  %v3434_v49 = vadd.f32 0.2548296, %v3402_v12  ;;  %v8170_v36 = vmul.f32 0.5, %v8031_v44 }
 0x2f0   :  { %v3150_v22 = vadd.f32 1.0, %v3118_v33  ;;  %v3753_v54 = vsel %vm3689_vm12, %v3721_v8, %v3657_v23  ;;  %v3655_v6 = vsub.f32 1.0, %v3623_v26  ;;  %vm3690_vm14 = vcmp.lt.f32.partialorder %v8017_v46, 0.0 }
 0x2f1   :  { %v3368_v61 = vadd.f32 -0.28449672, %v3336_v2  ;;  %v3245_v3 = vadd.f32 -1.4531521, %v3213_v48  ;;  %v8175_v18 = vpop.eup %5243  ;;  %v3466_v11 = vmul.f32 %v8098_v38, %v3434_v49  ;;  %v3591_v50 = vmul.f32 1.442695, %v3533_v37 }
 0x2f2   :  { %5247 = vrcp.f32 %v3150_v22  ;;  %v8179_v19 = vmul.f32 0.70710677, %v8162_v57  ;;  %v3211_v55 = vmul.f32 1.0614054, %v8175_v18  ;;  %v3531_v23 = vmul.f32 %v3499_v51, %v8109_v42  ;;  %v9707_v22 = vld [vmem:[#allocation108_spill] sm:$0xff] }
 0x2f3   :  { %4822 = vmatmul.mubr.msk.bf16.gmra.mrb[76].mxu1 %vm2072_vm10, %v3834_v34  ;;  %v3400_v21 = vmul.f32 %v8123_v39, %v3368_v61  ;;  %v3277_v44 = vmul.f32 %v8157_v24, %v3245_v3  ;;  %v3785_v38 = vadd.f32 1.0, %v3753_v54  ;;  %v3719_v25 = vsub.f32 0.0, %v3655_v6 }
 0x2f4   :  { %4825 = vmatprep.mubr.msk.bf16.mxu1 %vm2072_vm10, %v3835_v20  ;;  %v3626_v9 = vmul.f32 %v5242_v52, %v3466_v11  ;;  %v3084_v59 = vand.u32 2147483647, %v8179_v19  ;;  %v3243_v53 = vadd.f32 -1.4531521, %v3211_v55  ;;  %v3502_v63 = vsub.f32 0.0, %v3086_v35 }
 0x2f5   :  { %v3432_v7 = vadd.f32 0.2548296, %v3400_v21  ;;  %v3309_v41 = vadd.f32 1.4214138, %v3277_v44  ;;  %v5246_v32 = vpop.eup %5245  ;;  %v8193_v60 = vadd.f32 %v7859_v29, %v9706_v14  ;;  %5249 = vpow2.f32 %v3591_v50 }
 0x2f6   :  { %v3658_v34 = vsub.f32 1.0, %v3626_v9  ;;  %v3116_v31 = vmul.f32 0.3275911, %v3084_v59  ;;  %v3275_v27 = vmul.f32 %v8175_v18, %v3243_v53  ;;  %v8199_v8 = vmul.f32 %v3785_v38, %v8054_v13 }
 0x2f7   :  { %v3464_v42 = vmul.f32 %v8123_v39, %v3432_v7  ;;  %v3341_v5 = vmul.f32 %v8157_v24, %v3309_v41  ;;  %v3587_v58 = vmul.f32 1.442695, %v3531_v23  ;;  %v3751_v20 = vsel %vm3687_vm13, %v3719_v25, %v3655_v6 }
 0x2f8   :  { %v3722_v17 = vsub.f32 0.0, %v3658_v34  ;;  %v3148_v37 = vadd.f32 1.0, %v3116_v31  ;;  %v3307_v30 = vadd.f32 1.4214138, %v3275_v27  ;;  %v3534_v26 = vmul.f32 %v3502_v63, %v3086_v35 }
 0x2f9   :  { %v3624_v12 = vmul.f32 %v5246_v32, %v3464_v42  ;;  %v3373_v33 = vadd.f32 -0.28449672, %v3341_v5  ;;  %v8206_v2 = vmul.f32 0.70710677, %v8193_v60  ;;  %v3783_v46 = vadd.f32 1.0, %v3751_v20  ;;  %v9708_v32 = vld [vmem:[#allocation109_spill] sm:$0xff] }
 0x2fa   :  { %v3754_v39 = vsel %vm3690_vm14, %v3722_v17, %v3658_v34  ;;  %5251 = vrcp.f32 %v3148_v37  ;;  %v3339_v51 = vmul.f32 %v8175_v18, %v3307_v30  ;;  %v3500_v49 = vsub.f32 0.0, %v3084_v59 }
 0x2fb   :  { %4826 = vmatmul.mubr.msk.bf16.gmra.mrb[80].mxu1 %vm2072_vm10, %v3836_v28  ;;  %v3786_v13 = vadd.f32 1.0, %v3754_v39  ;;  %v3656_v48 = vsub.f32 1.0, %v3624_v12  ;;  %v3405_v15 = vmul.f32 %v8157_v24, %v3373_v33  ;;  %v3089_v35 = vand.u32 2147483647, %v8206_v2 }
 0x2fc   :  { %v8214_v52 = vpop.eup %5247  ;;  %v8219_v54 = vadd.f32 %v7859_v29, %v9707_v22  ;;  %v3371_v28 = vadd.f32 -0.28449672, %v3339_v51  ;;  %vm3688_vm15 = vcmp.lt.f32.partialorder %v8048_v10, 0.0  ;;  %5253 = vpow2.f32 %v3587_v58 }
 0x2fd   :  { %v3818_v6 = vmul.f32 %v3786_v13, %v3018_v1  ;;  %v3720_v47 = vsub.f32 0.0, %v3656_v48  ;;  %v3437_v62 = vadd.f32 0.2548296, %v3405_v15  ;;  %v3214_v61 = vmul.f32 1.0614054, %v8214_v52  ;;  %v9709_v13 = vld [vmem:[#allocation74_spill] sm:$0xff] }
 0x2fe   :  { %v3121_v3 = vmul.f32 0.3275911, %v3089_v35  ;;  %v3593_v44 = vmul.f32 1.442695, %v3534_v26  ;;  %v3403_v23 = vmul.f32 %v8175_v18, %v3371_v28  ;;  %v3815_v9 = vmul.f32 %v3783_v46, %v8146_v40 }
 0x2ff   :  { %v3838_v11 = vpack.c.bf16 %v3818_v6, %v8199_v8  ;;  %v3752_v50 = vsel %vm3688_vm15, %v3720_v47, %v3656_v48  ;;  %v3469_v21 = vmul.f32 %v8157_v24, %v3437_v62  ;;  %v3246_v38 = vadd.f32 -1.4531521, %v3214_v61  ;;  %v5250_v25 = vpop.eup %5249 }
 0x300   :  { %v3784_v55 = vadd.f32 1.0, %v3752_v50  ;;  %v3153_v1 = vadd.f32 1.0, %v3121_v3  ;;  %v3532_v7 = vmul.f32 %v3500_v49, %v3084_v59  ;;  %v8228_v10 = vmul.f32 0.70710677, %v8219_v54 }
 0x301   :  { %v3278_v53 = vmul.f32 %v8214_v52, %v3246_v38  ;;  %v8234_v24 = vadd.f32 %v7859_v29, %v9708_v32  ;;  %v3629_v40 = vmul.f32 %v5250_v25, %v3469_v21  ;;  %v3435_v59 = vadd.f32 0.2548296, %v3403_v23 }
 0x302   :  { %v3816_v41 = vmul.f32 %v3784_v55, %v8170_v36  ;;  %5255 = vrcp.f32 %v3153_v1  ;;  %v3087_v34 = vand.u32 2147483647, %v8228_v10  ;;  %v3589_v27 = vmul.f32 1.442695, %v3532_v7 }
 0x303   :  { %5257 = vpow2.f32 %v3593_v44  ;;  %v3310_v14 = vadd.f32 1.4214138, %v3278_v53  ;;  %v3505_v8 = vsub.f32 0.0, %v3089_v35  ;;  %v8242_v17 = vmul.f32 0.70710677, %v8234_v24 }
 0x304   :  { %v8237_v63 = vpop.eup %5251  ;;  %v3837_v31 = vpack.c.bf16 %v3816_v41, %v3815_v9  ;;  %v3119_v5 = vmul.f32 0.3275911, %v3087_v34  ;;  %v3661_v12 = vsub.f32 1.0, %v3629_v40  ;;  %v3467_v33 = vmul.f32 %v8175_v18, %v3435_v59 }
 0x305   :  { %v3212_v42 = vmul.f32 1.0614054, %v8237_v63  ;;  %v3342_v36 = vmul.f32 %v8214_v52, %v3310_v14  ;;  %v3090_v39 = vand.u32 2147483647, %v8242_v17  ;;  %v8251_v48 = vadd.f32 %v7859_v29, %v9709_v13 }
 0x306   :  { %4829 = vmatprep.mubr.msk.bf16.mxu1 %vm2072_vm10, %v3837_v31  ;;  %v3151_v37 = vadd.f32 1.0, %v3119_v5  ;;  %v5254_v20 = vpop.eup %5253  ;;  %v3537_v51 = vmul.f32 %v3505_v8, %v3089_v35  ;;  %v3725_v6 = vsub.f32 0.0, %v3661_v12  ;;  %vm3693_vm0 = vcmp.lt.f32.partialorder %v8076_v4, 0.0 }
 0x307   :  { %v3244_v58 = vadd.f32 -1.4531521, %v3212_v42  ;;  %4830 = vmatmul.mubr.msk.bf16.gmra.mrb[84].mxu1 %vm2072_vm10, %v3838_v11  ;;  %v3374_v30 = vadd.f32 -0.28449672, %v3342_v36  ;;  %v3122_v46 = vmul.f32 0.3275911, %v3090_v39  ;;  %v3627_v18 = vmul.f32 %v5254_v20, %v3467_v33 }
 0x308   :  { %5259 = vrcp.f32 %v3151_v37  ;;  %v8259_v29 = vmul.f32 0.70710677, %v8251_v48  ;;  %v3599_v50 = vmul.f32 1.442695, %v3537_v51  ;;  %v3503_v44 = vsub.f32 0.0, %v3087_v34 }
 0x309   :  { %v3276_v26 = vmul.f32 %v8237_v63, %v3244_v58  ;;  %v3406_v15 = vmul.f32 %v8214_v52, %v3374_v30  ;;  %5261 = vpow2.f32 %v3589_v27  ;;  %v3154_v62 = vadd.f32 1.0, %v3122_v46 }
 0x30a   :  { %v3757_v55 = vsel %vm3693_vm0, %v3725_v6, %v3661_v12  ;;  %v3659_v23 = vsub.f32 1.0, %v3627_v18  ;;  %v3088_v1 = vand.u32 2147483647, %v8259_v29  ;;  %v3021_v25 = vmul.f32 0.5, %v8061_v45 }
 0x30b   :  { %v3308_v49 = vadd.f32 1.4214138, %v3276_v26  ;;  %v3438_v47 = vadd.f32 0.2548296, %v3406_v15  ;;  %5263 = vrcp.f32 %v3154_v62  ;;  %v3789_v4 = vadd.f32 1.0, %v3757_v55 }
 0x30c   :  { %v8254_v22 = vpop.eup %5255  ;;  %5265 = vpow2.f32 %v3599_v50  ;;  %v3120_v53 = vmul.f32 0.3275911, %v3088_v1  ;;  %v3535_v59 = vmul.f32 %v3503_v44, %v3087_v34  ;;  %v3723_v42 = vsub.f32 0.0, %v3659_v23 }
 0x30d   :  { %v5258_v28 = vpop.eup %5257  ;;  %v3340_v61 = vmul.f32 %v8237_v63, %v3308_v49  ;;  %v3217_v3 = vmul.f32 1.0614054, %v8254_v22  ;;  %v3470_v11 = vmul.f32 %v8214_v52, %v3438_v47  ;;  %v3506_v52 = vsub.f32 0.0, %v3090_v39 }
 0x30e   :  { %v3152_v45 = vadd.f32 1.0, %v3120_v53  ;;  %vm3691_vm2 = vcmp.lt.f32.partialorder %v8096_v0, 0.0  ;;  %vm3694_vm3 = vcmp.lt.f32.partialorder %v8138_v56, 0.0  ;;  %v3022_v34 = vmul.f32 0.5, %v8128_v16 }
 0x30f   :  { %v3372_v35 = vadd.f32 -0.28449672, %v3340_v61  ;;  %v3249_v21 = vadd.f32 -1.4531521, %v3217_v3  ;;  %v3630_v38 = vmul.f32 %v5258_v28, %v3470_v11  ;;  %v3538_v20 = vmul.f32 %v3506_v52, %v3090_v39 }
 0x310   :  { %5267 = vrcp.f32 %v3152_v45  ;;  %v3821_v13 = vmul.f32 %v3789_v4, %v3021_v25  ;;  %v3755_v15 = vsel %vm3691_vm2, %v3723_v42, %v3659_v23  ;;  %v3595_v51 = vmul.f32 1.442695, %v3535_v59 }
 0x311   :  { %v3404_v9 = vmul.f32 %v8237_v63, %v3372_v35  ;;  %v3281_v7 = vmul.f32 %v8254_v22, %v3249_v21  ;;  %v3662_v41 = vsub.f32 1.0, %v3630_v38  ;;  %v3019_v6 = vmul.f32 0.5, %v8080_v43 }
 0x312   :  { %v8267_v32 = vpop.eup %5259  ;;  %v3601_v18 = vmul.f32 1.442695, %v3538_v20  ;;  %v3504_v47 = vsub.f32 0.0, %v3088_v1  ;;  %v3787_v11 = vadd.f32 1.0, %v3755_v15  ;;  %vm3692_vm4 = vcmp.lt.f32.partialorder %v8179_v19, 0.0 }
 0x313   :  { %v3436_v31 = vadd.f32 0.2548296, %v3404_v9  ;;  %v3313_v40 = vadd.f32 1.4214138, %v3281_v7  ;;  %v5262_v14 = vpop.eup %5261  ;;  %v3726_v5 = vsub.f32 0.0, %v3662_v41  ;;  %5269 = vpow2.f32 %v3595_v51 }
 0x314   :  { %v3215_v36 = vmul.f32 1.0614054, %v8267_v32  ;;  %v3020_v35 = vmul.f32 0.5, %v8162_v57  ;;  %5271 = vpow2.f32 %v3601_v18  ;;  %v3536_v38 = vmul.f32 %v3504_v47, %v3088_v1 }
 0x315   :  { %v3468_v27 = vmul.f32 %v8237_v63, %v3436_v31  ;;  %v3345_v8 = vmul.f32 %v8254_v22, %v3313_v40  ;;  %v3758_v58 = vsel %vm3694_vm3, %v3726_v5, %v3662_v41  ;;  %v5264_v26 = vpop.eup %5263  ;;  %v3819_v7 = vmul.f32 %v3787_v11, %v3019_v6 }
 0x316   :  { %v3247_v37 = vadd.f32 -1.4531521, %v3215_v36  ;;  %v3790_v12 = vadd.f32 1.0, %v3758_v58  ;;  %v3218_v49 = vmul.f32 1.0614054, %v5264_v26  ;;  %v5266_v3 = vpop.eup %5265  ;;  %vm3697_vm5 = vcmp.lt.f32.partialorder %v8206_v2, 0.0 }
 0x317   :  { %v3628_v33 = vmul.f32 %v5262_v14, %v3468_v27  ;;  %v3377_v30 = vadd.f32 -0.28449672, %v3345_v8  ;;  %v3597_v57 = vmul.f32 1.442695, %v3536_v38  ;;  %vm3698_vm6 = vcmp.lt.f32.partialorder %v8242_v17, 0.0 }
 0x318   :  { %v3279_v0 = vmul.f32 %v8267_v32, %v3247_v37  ;;  %v3822_v56 = vmul.f32 %v3790_v12, %v3022_v34  ;;  %v3250_v61 = vadd.f32 -1.4531521, %v3218_v49  ;;  %vm3695_vm7 = vcmp.lt.f32.partialorder %v8228_v10, 0.0  ;;  %v8299_v10 = vld [vmem:[%s9191_s4] ss:$0 sm:$0xff] }
 0x319   :  { %v3660_v46 = vsub.f32 1.0, %v3628_v33  ;;  %v3409_v63 = vmul.f32 %v8254_v22, %v3377_v30  ;;  %5273 = vpow2.f32 %v3597_v57  ;;  %vm3696_vm8 = vcmp.lt.f32.partialorder %v8259_v29, 0.0 }
 0x31a   :  { %v3311_v39 = vadd.f32 1.4214138, %v3279_v0  ;;  %v3840_v16 = vpack.c.bf16 %v3822_v56, %v3821_v13  ;;  %v3282_v43 = vmul.f32 %v5264_v26, %v3250_v61  ;;  %v5268_v9 = vpop.eup %5267 }
 0x31b   :  { %v3724_v62 = vsub.f32 0.0, %v3660_v46  ;;  %v3441_v28 = vadd.f32 0.2548296, %v3409_v63  ;;  %v3216_v4 = vmul.f32 1.0614054, %v5268_v9 }
 0x31c   :  { %v3343_v50 = vmul.f32 %v8267_v32, %v3311_v39  ;;  %v3314_v25 = vadd.f32 1.4214138, %v3282_v43  ;;  %v3026_v39 = vmul.f32 0.5, %v8234_v24 }
 0x31d   :  { %v3756_v21 = vsel %vm3692_vm4, %v3724_v62, %v3660_v46  ;;  %v3473_v44 = vmul.f32 %v8254_v22, %v3441_v28  ;;  %v3248_v14 = vadd.f32 -1.4531521, %v3216_v4  ;;  %v5270_v36 = vpop.eup %5269 }
 0x31e   :  { %v3788_v55 = vadd.f32 1.0, %v3756_v21  ;;  %v3375_v23 = vadd.f32 -0.28449672, %v3343_v50  ;;  %v3346_v53 = vmul.f32 %v5264_v26, %v3314_v25  ;;  %v5272_v8 = vpop.eup %5271  ;;  %v3023_v50 = vmul.f32 0.5, %v8219_v54 }
 0x31f   :  { %v3633_v19 = vmul.f32 %v5266_v3, %v3473_v44  ;;  %v3280_v5 = vmul.f32 %v5268_v9, %v3248_v14 }
 0x320   :  { %v3820_v41 = vmul.f32 %v3788_v55, %v3020_v35  ;;  %v3407_v52 = vmul.f32 %v8267_v32, %v3375_v23  ;;  %v3378_v59 = vadd.f32 -0.28449672, %v3346_v53 }
 0x321   :  { %v3665_v22 = vsub.f32 1.0, %v3633_v19  ;;  %v3312_v27 = vadd.f32 1.4214138, %v3280_v5 }
 0x322   :  { %v3839_v31 = vpack.c.bf16 %v3820_v41, %v3819_v7  ;;  %v3439_v40 = vadd.f32 0.2548296, %v3407_v52  ;;  %v3410_v1 = vmul.f32 %v5264_v26, %v3378_v59 }
 0x323   :  { %v3729_v58 = vsub.f32 0.0, %v3665_v22  ;;  %v3344_v34 = vmul.f32 %v5268_v9, %v3312_v27  ;;  %v5274_v56 = vpop.eup %5273 }
 0x324   :  { %4833 = vmatprep.mubr.msk.bf16.mxu1 %vm2072_vm10, %v3839_v31  ;;  %v3471_v42 = vmul.f32 %v8267_v32, %v3439_v40  ;;  %v3442_v45 = vadd.f32 0.2548296, %v3410_v1 }
 0x325   :  { %4834 = vmatmul.mubr.msk.bf16.gmra.mrb[88].mxu1 %vm2072_vm10, %v3840_v16  ;;  %v3376_v33 = vadd.f32 -0.28449672, %v3344_v34  ;;  %v3761_v30 = vsel %vm3697_vm5, %v3729_v58, %v3665_v22 }
 0x326   :  { %v3631_v37 = vmul.f32 %v5270_v36, %v3471_v42  ;;  %v3474_v20 = vmul.f32 %v5264_v26, %v3442_v45  ;;  %v3793_v46 = vadd.f32 1.0, %v3761_v30  ;;  %v3025_v26 = vmul.f32 0.5, %v8193_v60 }
 0x327   :  { %v3408_v15 = vmul.f32 %v5268_v9, %v3376_v33  ;;  %v3024_v60 = vmul.f32 0.5, %v8251_v48 }
 0x328   :  { %v3634_v12 = vmul.f32 %v5272_v8, %v3474_v20  ;;  %v3663_v13 = vsub.f32 1.0, %v3631_v37  ;;  %v3825_v2 = vmul.f32 %v3793_v46, %v3025_v26 }
 0x329   :  { %v3440_v51 = vadd.f32 0.2548296, %v3408_v15 }
 0x32a   :  { %v3666_v32 = vsub.f32 1.0, %v3634_v12  ;;  %v3727_v63 = vsub.f32 0.0, %v3663_v13 }
 0x32b   :  { %v3472_v6 = vmul.f32 %v5268_v9, %v3440_v51 }
 0x32c   :  { %v3730_v0 = vsub.f32 0.0, %v3666_v32  ;;  %v3759_v62 = vsel %vm3695_vm7, %v3727_v63, %v3663_v13 }
 0x32d   :  { %v3632_v47 = vmul.f32 %v5274_v56, %v3472_v6  ;;  %v3791_v11 = vadd.f32 1.0, %v3759_v62 }
 0x32e   :  { %v3762_v49 = vsel %vm3698_vm6, %v3730_v0, %v3666_v32 }
 0x32f   :  { %v3794_v18 = vadd.f32 1.0, %v3762_v49  ;;  %v3664_v28 = vsub.f32 1.0, %v3632_v47  ;;  %v3823_v24 = vmul.f32 %v3791_v11, %v3023_v50 }
 0x331   :  { %v3826_v16 = vmul.f32 %v3794_v18, %v3026_v39  ;;  %v3728_v3 = vsub.f32 0.0, %v3664_v28 }
 0x333   :  { %v3842_v61 = vpack.c.bf16 %v3826_v16, %v3825_v2  ;;  %v3760_v17 = vsel %vm3696_vm8, %v3728_v3, %v3664_v28 }
 0x334   :  { %v3792_v35 = vadd.f32 1.0, %v3760_v17 }
 0x336   :  { %v3824_v21 = vmul.f32 %v3792_v35, %v3024_v60 }
 0x338   :  { %v3841_v44 = vpack.c.bf16 %v3824_v21, %v3823_v24 }
 0x33a   :  { %4837 = vmatprep.mubr.msk.bf16.mxu1 %vm2072_vm10, %v3841_v44 }
 0x33b   :  { %4838 = vmatmul.mubr.msk.bf16.gmra.mrb[92].mxu1 %vm2072_vm10, %v3842_v61  ;;  %vm2378_vm10 = vcmask 1046528  }
 0x355   :  { %v4737_v43 = vpop.f32.mrb[32].mxu1 }
 0x356   :  { %v8302_v29 = vadd.f32 %v4737_v43, %v8299_v10  ;;  %v2155_v54 = vpop.f32.mrb[33].mxu1  ;;  %v8457_v43 = vld [vmem:[%s9195_s8] ss:$0 sm:$0xff] }
 0x357   :  { %v4738_v55 = vpop.f32.mrb[34].mxu1  ;;  %v8310_v38 = vadd.f32 %v8299_v10, %v2155_v54 }
 0x358   :  { %v8305_v48 = vadd.f32 %v4738_v55, %v8299_v10  ;;  %2318 = vrot.lane.b32.xlu0 %v8302_v29, %s5336_s24  ;;  %v2158_v23 = vpop.f32.mrb[35].mxu1 }
 0x359   :  { %v8315_v25 = vadd.f32 %v8299_v10, %v2158_v23 }
 0x35a   :  { %2320 = vrot.lane.b32.xlu1 %v8305_v48, %s5336_s24 }
 0x35c   :  { %2314 = vrot.lane.b32.xlu0 %v8310_v38, %s5336_s24 }
 0x35d   :  { %v4741_v9 = vpop.f32.mrb[36].mxu1 }
 0x35e   :  { %v8320_v7 = vadd.f32 %v4741_v9, %v8299_v10  ;;  %v2171_v41 = vpop.f32.mrb[37].mxu1  ;;  %2316 = vrot.lane.b32.xlu1 %v8315_v25, %s5336_s24 }
 0x35f   :  { %v4742_v52 = vpop.f32.mrb[38].mxu1  ;;  %v8330_v4 = vadd.f32 %v8299_v10, %v2171_v41 }
 0x360   :  { %v8325_v19 = vadd.f32 %v4742_v52, %v8299_v10  ;;  %v2174_v53 = vpop.f32.mrb[39].mxu1  ;;  %2326 = vrot.lane.b32.xlu0 %v8320_v7, %s5336_s24 }
 0x361   :  { %v8335_v31 = vadd.f32 %v8299_v10, %v2174_v53 }
 0x362   :  { %2328 = vrot.lane.b32.xlu1 %v8325_v19, %s5336_s24 }
 0x364   :  { %2322 = vrot.lane.b32.xlu0 %v8330_v4, %s5336_s24 }
 0x366   :  { %v4745_v40 = vpop.f32.mrb[40].mxu1  ;;  %2324 = vrot.lane.b32.xlu1 %v8335_v31, %s5336_s24 }
 0x367   :  { %v8340_v57 = vadd.f32 %v4745_v40, %v8299_v10  ;;  %v2187_v59 = vpop.f32.mrb[41].mxu1 }
 0x368   :  { %v4746_v14 = vpop.f32.mrb[42].mxu1  ;;  %v8350_v1 = vadd.f32 %v8299_v10, %v2187_v59 }
 0x369   :  { %v8345_v22 = vadd.f32 %v4746_v14, %v8299_v10  ;;  %v2190_v42 = vpop.f32.mrb[43].mxu1  ;;  %2334 = vrot.lane.b32.xlu0 %v8340_v57, %s5336_s24 }
 0x36a   :  { %v8355_v5 = vadd.f32 %v8299_v10, %v2190_v42 }
 0x36b   :  { %2336 = vrot.lane.b32.xlu1 %v8345_v22, %s5336_s24 }
 0x36d   :  { %2330 = vrot.lane.b32.xlu0 %v8350_v1, %s5336_s24 }
 0x36e   :  { %v4749_v36 = vpop.f32.mrb[44].mxu1 }
 0x36f   :  { %v8360_v45 = vadd.f32 %v4749_v36, %v8299_v10  ;;  %v2203_v27 = vpop.f32.mrb[45].mxu1  ;;  %2332 = vrot.lane.b32.xlu1 %v8355_v5, %s5336_s24 }
 0x370   :  { %v4750_v8 = vpop.f32.mrb[46].mxu1  ;;  %v8370_v20 = vadd.f32 %v8299_v10, %v2203_v27 }
 0x371   :  { %9710 = vst [vmem:[#allocation83_spill] sm:$0xff] %v8360_v45  ;;  %v8365_v58 = vadd.f32 %v4750_v8, %v8299_v10  ;;  %v2206_v37 = vpop.f32.mrb[47].mxu1  ;;  %2342 = vrot.lane.b32.xlu0 %v8360_v45, %s5336_s24 }
 0x372   :  { %9712 = vst [vmem:[#allocation81_spill] sm:$0xff] %v8370_v20  ;;  %v8375_v34 = vadd.f32 %v8299_v10, %v2206_v37 }
 0x373   :  { %9711 = vst [vmem:[#allocation82_spill] sm:$0xff] %v8365_v58  ;;  %2344 = vrot.lane.b32.xlu1 %v8365_v58, %s5336_s24  ;;  %v9777_v58 = vld [vmem:[#allocation10_spill] sm:$0xff] }
 0x374   :  { %9713 = vst [vmem:[#allocation80_spill] sm:$0xff] %v8375_v34 }
 0x375   :  { %2338 = vrot.lane.b32.xlu0 %v8370_v20, %s5336_s24 }
 0x376   :  { %v4753_v12 = vpop.f32.mrb[48].mxu1 }
 0x377   :  { %v8380_v33 = vadd.f32 %v4753_v12, %v8299_v10  ;;  %v2219_v30 = vpop.f32.mrb[49].mxu1  ;;  %2340 = vrot.lane.b32.xlu1 %v8375_v34, %s5336_s24  ;;  %v9765_v34 = vld [vmem:[#allocation23_spill] sm:$0xff] }
 0x378   :  { %v4754_v13 = vpop.f32.mrb[50].mxu1  ;;  %v8390_v0 = vadd.f32 %v8299_v10, %v2219_v30 }
 0x379   :  { %9714 = vst [vmem:[#allocation87_spill] sm:$0xff] %v8380_v33  ;;  %v8385_v32 = vadd.f32 %v4754_v13, %v8299_v10  ;;  %v2222_v15 = vpop.f32.mrb[51].mxu1  ;;  %2350 = vrot.lane.b32.xlu0 %v8380_v33, %s5336_s24  ;;  %v9761_v33 = vld [vmem:[#allocation21_spill] sm:$0xff] }
 0x37a   :  { %9716 = vst [vmem:[#allocation76_spill] sm:$0xff] %v8390_v0  ;;  %v8395_v51 = vadd.f32 %v8299_v10, %v2222_v15 }
 0x37b   :  { %9715 = vst [vmem:[#allocation86_spill] sm:$0xff] %v8385_v32  ;;  %2352 = vrot.lane.b32.xlu1 %v8385_v32, %s5336_s24 }
 0x37c   :  { %9717 = vst [vmem:[#allocation85_spill] sm:$0xff] %v8395_v51 }
 0x37d   :  { %2346 = vrot.lane.b32.xlu0 %v8390_v0, %s5336_s24 }
 0x37e   :  { %v4757_v56 = vpop.f32.mrb[52].mxu1 }
 0x37f   :  { %v8400_v46 = vadd.f32 %v4757_v56, %v8299_v10  ;;  %v2235_v63 = vpop.f32.mrb[53].mxu1  ;;  %2348 = vrot.lane.b32.xlu1 %v8395_v51, %s5336_s24 }
 0x380   :  { %v4758_v49 = vpop.f32.mrb[54].mxu1  ;;  %v8410_v39 = vadd.f32 %v8299_v10, %v2235_v63  ;;  %v8512_v63 = vld [vmem:[%s9197_s10] ss:$0 sm:$0xff]  ;;  %s5337_s10 = smov [#allocation5]  }
 0x381   :  { %9718 = vst [vmem:[#allocation84_spill] sm:$0xff] %v8400_v46  ;;  %v8405_v6 = vadd.f32 %v4758_v49, %v8299_v10  ;;  %v2238_v26 = vpop.f32.mrb[55].mxu1  ;;  %2358 = vrot.lane.b32.xlu0 %v8400_v46, %s5336_s24  ;;  %s4392_s29 = sshll.u32 %s5337_s10, 4  ;;  %s4393_s29 = int_to_ptr.vmem [resolvable:$true] %s4392_s29 }
 0x382   :  { %9720 = vst [vmem:[#allocation89_spill] sm:$0xff] %v8410_v39  ;;  %v8415_v18 = vadd.f32 %v8299_v10, %v2238_v26  ;;  %s5306_s30 = scalar_lea.vmem %s4393_s29, 8192  ;;  %p5311_p9 = scmp.lt.s32.totalorder %s4393_s29, %s4393_s29 }
 0x383   :  { %9719 = vst [vmem:[#allocation91_spill] sm:$0xff] %v8405_v6  ;;  %2360 = vrot.lane.b32.xlu1 %v8405_v6, %s5336_s24  ;;  %v9753_v6 = vld [vmem:[#allocation31_spill] sm:$0xff]  ;;  %p5307_p8 = scmp.ne.s32.totalorder %s4393_s29, %s5306_s30  ;;  %p5312_p10 = scmp.lt.s32.totalorder %s5306_s30, %s5306_s30 }
 0x384   :  { %9721 = vst [vmem:[#allocation90_spill] sm:$0xff] %v8415_v18 }
 0x385   :  { %2354 = vrot.lane.b32.xlu0 %v8410_v39, %s5336_s24  ;;  %p5313_p11 = por %p5312_p10, %p5311_p9 }
 0x386   :  { %v4761_v47 = vpop.f32.mrb[56].mxu1 }
 0x387   :  { %v8420_v2 = vadd.f32 %v4761_v47, %v8299_v10  ;;  %v2251_v16 = vpop.f32.mrb[57].mxu1  ;;  %2356 = vrot.lane.b32.xlu1 %v8415_v18, %s5336_s24  ;;  %p5314_p12 = pnand %p5313_p11, %p5307_p8 }
 0x388   :  { %v4762_v62 = vpop.f32.mrb[58].mxu1  ;;  %v8430_v3 = vadd.f32 %v8299_v10, %v2251_v16  ;;  %v9732_v16 = vld [vmem:[#allocation27_spill] sm:$0xff] }
 0x389   :  { %9722 = vst [vmem:[#allocation88_spill] sm:$0xff] %v8420_v2  ;;  %v8425_v28 = vadd.f32 %v4762_v62, %v8299_v10  ;;  %v2254_v61 = vpop.f32.mrb[59].mxu1  ;;  %2366 = vrot.lane.b32.xlu0 %v8420_v2, %s5336_s24  ;;  %v8526_v62 = vadd.f32 %v9732_v16, %v8512_v63  ;;  %v9751_v2 = vld [vmem:[#allocation32_spill] sm:$0xff] }
 0x38a   :  { %9724 = vst [vmem:[#allocation72_spill] sm:$0xff] %v8430_v3  ;;  %v8435_v11 = vadd.f32 %v8299_v10, %v2254_v61  ;;  %v9733_v61 = vld [vmem:[#allocation28_spill] sm:$0xff]  ;;  %v8608_v18 = vadd.f32 %v9751_v2, %v8512_v63 }
 0x38b   :  { %9723 = vst [vmem:[#allocation73_spill] sm:$0xff] %v8425_v28  ;;  %2368 = vrot.lane.b32.xlu1 %v8425_v28, %s5336_s24  ;;  %v9757_v2 = vld [vmem:[#allocation20_spill] sm:$0xff] }
 0x38c   :  { %9725 = vst [vmem:[#allocation93_spill] sm:$0xff] %v8435_v11  ;;  %9752 = vst [vmem:[#allocation78_spill] sm:$0xff] %v8608_v18  ;;  %v8629_v0 = vadd.f32 %v9757_v2, %v8512_v63  ;;  %v8649_v2 = vadd.f32 %v8512_v63, %v9765_v34  ;;  %v9773_v34 = vld [vmem:[#allocation9_spill] sm:$0xff] }
 0x38d   :  { %2362 = vrot.lane.b32.xlu0 %v8430_v3, %s5336_s24 }
 0x38e   :  { %9766 = vst [vmem:[#allocation101_spill] sm:$0xff] %v8649_v2  ;;  %v8670_v2 = vadd.f32 %v8512_v63, %v9773_v34 }
 0x38f   :  { %2364 = vrot.lane.b32.xlu1 %v8435_v11, %s5336_s24 }
 0x390   :  { %9774 = vst [vmem:[#allocation105_spill] sm:$0xff] %v8670_v2  ;;  %v2388_v2 = vrot.slane %v8305_v48, 1 }
 0x3a3   :  { %v4765_v17 = vpop.f32.mrb[60].mxu1 }
 0x3a4   :  { %v8442_v50 = vadd.f32 %v4765_v17, %v8299_v10  ;;  %v2267_v60 = vpop.f32.mrb[61].mxu1  ;;  %v8530_v17 = vadd.f32 %v8512_v63, %v9733_v61  ;;  %v9741_v61 = vld [vmem:[#allocation37_spill] sm:$0xff] }
 0x3a5   :  { %v4766_v35 = vpop.f32.mrb[62].mxu1  ;;  %v8450_v44 = vadd.f32 %v8299_v10, %v2267_v60  ;;  %v9734_v60 = vld [vmem:[#allocation29_spill] sm:$0xff] }
 0x3a6   :  { %9726 = vst [vmem:[#allocation92_spill] sm:$0xff] %v8442_v50  ;;  %v8445_v24 = vadd.f32 %v4766_v35, %v8299_v10  ;;  %v2270_v21 = vpop.f32.mrb[63].mxu1  ;;  %2374 = vrot.lane.b32.xlu0 %v8442_v50, %s5336_s24  ;;  %v8534_v35 = vadd.f32 %v9734_v60, %v8512_v63  ;;  %v8567_v60 = vadd.f32 %v8512_v63, %v9741_v61 }
 0x3a7   :  { %9728 = vst [vmem:[#allocation95_spill] sm:$0xff] %v8450_v44  ;;  %v8460_v54 = vadd.f32 %v8299_v10, %v2270_v21  ;;  %v9735_v21 = vld [vmem:[#allocation30_spill] sm:$0xff] }
 0x3a8   :  { %9727 = vst [vmem:[#allocation96_spill] sm:$0xff] %v8445_v24  ;;  %2376 = vrot.lane.b32.xlu1 %v8445_v24, %s5336_s24 }
 0x3a9   :  { %9729 = vst [vmem:[#allocation94_spill] sm:$0xff] %v8460_v54 }
 0x3aa   :  { %2370 = vrot.lane.b32.xlu0 %v8450_v44, %s5336_s24  ;;  %v9745_v44 = vld [vmem:[#allocation41_spill] sm:$0xff] }
 0x3ac   :  { %2372 = vrot.lane.b32.xlu1 %v8460_v54, %s5336_s24 }
 0x3ae   :  { %v4811_v55 = vpop.f32.mrb[64].mxu1 }
 0x3af   :  { %v8465_v23 = vadd.f32 %v4811_v55, %v8457_v43  ;;  %v3940_v9 = vpop.f32.mrb[65].mxu1  ;;  %v8538_v55 = vadd.f32 %v8512_v63, %v9735_v21  ;;  %v9742_v21 = vld [vmem:[#allocation40_spill] sm:$0xff] }
 0x3b0   :  { %v4812_v41 = vpop.f32.mrb[66].mxu1  ;;  %v8475_v53 = vadd.f32 %v8457_v43, %v3940_v9  ;;  %v9736_v9 = vld [vmem:[#allocation33_spill] sm:$0xff] }
 0x3b1   :  { %v8470_v52 = vadd.f32 %v4812_v41, %v8457_v43  ;;  %4103 = vrot.lane.b32.xlu0 %v8465_v23, %s5336_s24  ;;  %v3943_v10 = vpop.f32.mrb[67].mxu1  ;;  %v8542_v41 = vadd.f32 %v9736_v9, %v8512_v63  ;;  %v8571_v9 = vadd.f32 %v9742_v21, %v8512_v63  ;;  %v9746_v21 = vld [vmem:[#allocation44_spill] sm:$0xff] }
 0x3b2   :  { %9730 = vst [vmem:[#allocation97_spill] sm:$0xff] %v8475_v53  ;;  %v8480_v40 = vadd.f32 %v8457_v43, %v3943_v10  ;;  %v9737_v10 = vld [vmem:[#allocation34_spill] sm:$0xff]  ;;  %v8592_v50 = vadd.f32 %v9746_v21, %v8512_v63  ;;  %v8612_v21 = vadd.f32 %v8512_v63, %v9753_v6  ;;  %v9758_v6 = vld [vmem:[#allocation19_spill] sm:$0xff] }
 0x3b3   :  { %4105 = vrot.lane.b32.xlu1 %v8470_v52, %s5336_s24  ;;  %v8633_v32 = vadd.f32 %v8512_v63, %v9758_v6  ;;  %v9767_v6 = vld [vmem:[#allocation26_spill] sm:$0xff] }
 0x3b4   :  { %9731 = vst [vmem:[#allocation98_spill] sm:$0xff] %v8480_v40  ;;  %9754 = vst [vmem:[#allocation103_spill] sm:$0xff] %v8612_v21 }
 0x3b5   :  { %4099 = vrot.lane.b32.xlu0 %v8475_v53, %s5336_s24  ;;  %v9763_v53 = vld [vmem:[#allocation24_spill] sm:$0xff] }
 0x3b6   :  { %v4815_v59 = vpop.f32.mrb[68].mxu1 }
 0x3b7   :  { %v8485_v14 = vadd.f32 %v4815_v59, %v8457_v43  ;;  %v3956_v42 = vpop.f32.mrb[69].mxu1  ;;  %4101 = vrot.lane.b32.xlu1 %v8480_v40, %s5336_s24  ;;  %v8546_v59 = vadd.f32 %v8512_v63, %v9737_v10  ;;  %v9743_v10 = vld [vmem:[#allocation39_spill] sm:$0xff]  ;;  %v8641_v40 = vadd.f32 %v8512_v63, %v9761_v33  ;;  %v9769_v33 = vld [vmem:[#allocation25_spill] sm:$0xff] }
 0x3b8   :  { %v4816_v36 = vpop.f32.mrb[70].mxu1  ;;  %v8495_v37 = vadd.f32 %v8457_v43, %v3956_v42  ;;  %v9738_v42 = vld [vmem:[#allocation35_spill] sm:$0xff] }
 0x3b9   :  { %v8490_v27 = vadd.f32 %v4816_v36, %v8457_v43  ;;  %v3959_v8 = vpop.f32.mrb[71].mxu1  ;;  %4111 = vrot.lane.b32.xlu0 %v8485_v14, %s5336_s24  ;;  %v8550_v36 = vadd.f32 %v9738_v42, %v8512_v63  ;;  %v8575_v42 = vadd.f32 %v8512_v63, %v9743_v10  ;;  %v9747_v10 = vld [vmem:[#allocation43_spill] sm:$0xff]  ;;  %9762 = vst [vmem:[#allocation75_spill] sm:$0xff] %v8641_v40 }
 0x3ba   :  { %v8500_v12 = vadd.f32 %v8457_v43, %v3959_v8  ;;  %v8596_v11 = vadd.f32 %v8512_v63, %v9747_v10  ;;  %v9755_v10 = vld [vmem:[#allocation18_spill] sm:$0xff] }
 0x3bb   :  { %4113 = vrot.lane.b32.xlu1 %v8490_v27, %s5336_s24  ;;  %v8616_v39 = vadd.f32 %v9755_v10, %v8512_v63  ;;  %v9759_v10 = vld [vmem:[#allocation22_spill] sm:$0xff] }
 0x3bd   :  { %4107 = vrot.lane.b32.xlu0 %v8495_v37, %s5336_s24 }
 0x3be   :  { %v4819_v30 = vpop.f32.mrb[72].mxu1 }
 0x3bf   :  { %v8505_v13 = vadd.f32 %v4819_v30, %v8457_v43  ;;  %v3972_v15 = vpop.f32.mrb[73].mxu1  ;;  %4109 = vrot.lane.b32.xlu1 %v8500_v12, %s5336_s24  ;;  %v9739_v30 = vld [vmem:[#allocation36_spill] sm:$0xff] }
 0x3c0   :  { %v4820_v56 = vpop.f32.mrb[74].mxu1  ;;  %v8520_v47 = vadd.f32 %v8457_v43, %v3972_v15  ;;  %v8559_v15 = vadd.f32 %v8512_v63, %v9739_v30  ;;  %v9744_v30 = vld [vmem:[#allocation42_spill] sm:$0xff] }
 0x3c1   :  { %v8515_v49 = vadd.f32 %v4820_v56, %v8457_v43  ;;  %v3975_v26 = vpop.f32.mrb[75].mxu1  ;;  %4119 = vrot.lane.b32.xlu0 %v8505_v13, %s5336_s24  ;;  %v9740_v56 = vld [vmem:[#allocation38_spill] sm:$0xff]  ;;  %v8579_v54 = vadd.f32 %v9744_v30, %v8512_v63 }
 0x3c2   :  { %v8553_v8 = vadd.f32 %v8457_v43, %v3975_v26  ;;  %v8563_v16 = vadd.f32 %v9740_v56, %v8512_v63  ;;  %v8583_v56 = vadd.f32 %v8512_v63, %v9745_v44  ;;  %v9748_v30 = vld [vmem:[#allocation46_spill] sm:$0xff]  ;;  %v9750_v44 = vld [vmem:[#allocation45_spill] sm:$0xff] }
 0x3c3   :  { %4121 = vrot.lane.b32.xlu1 %v8515_v49, %s5336_s24  ;;  %v8600_v3 = vadd.f32 %v9748_v30, %v8512_v63 }
 0x3c5   :  { %4115 = vrot.lane.b32.xlu0 %v8520_v47, %s5336_s24  ;;  %9749 = vst [vmem:[#allocation79_spill] sm:$0xff] %v8600_v3 }
 0x3c6   :  { %v4823_v26 = vpop.f32.mrb[76].mxu1 }
 0x3c7   :  { %v8586_v61 = vadd.f32 %v4823_v26, %v8457_v43  ;;  %v3988_v24 = vpop.f32.mrb[77].mxu1  ;;  %4117 = vrot.lane.b32.xlu1 %v8553_v8, %s5336_s24  ;;  %v8604_v26 = vadd.f32 %v8512_v63, %v9750_v44  ;;  %v9756_v44 = vld [vmem:[#allocation17_spill] sm:$0xff] }
 0x3c8   :  { %v4824_v28 = vpop.f32.mrb[78].mxu1  ;;  %v8625_v51 = vadd.f32 %v8512_v63, %v9756_v44  ;;  %v8645_v44 = vadd.f32 %v9763_v53, %v8512_v63  ;;  %v8652_v20 = vadd.f32 %v8457_v43, %v3988_v24  ;;  %v9771_v53 = vld [vmem:[#allocation8_spill] sm:$0xff]  ;;  %v9775_v24 = vld [vmem:[#allocation11_spill] sm:$0xff] }
 0x3c9   :  { %v8619_v30 = vadd.f32 %v4824_v28, %v8457_v43  ;;  %v3991_v46 = vpop.f32.mrb[79].mxu1  ;;  %4127 = vrot.lane.b32.xlu0 %v8586_v61, %s5336_s24  ;;  %v8637_v28 = vadd.f32 %v9759_v10, %v8512_v63  ;;  %v8658_v10 = vadd.f32 %v9767_v6, %v8512_v63  ;;  %v8674_v40 = vadd.f32 %v9775_v24, %v8512_v63 }
 0x3ca   :  { %9764 = vst [vmem:[#allocation102_spill] sm:$0xff] %v8645_v44  ;;  %v8666_v44 = vadd.f32 %v9771_v53, %v8512_v63  ;;  %v8678_v6 = vadd.f32 %v8512_v63, %v9777_v58  ;;  %v9779_v53 = vld [vmem:[#allocation12_spill] sm:$0xff] }
 0x3cb   :  { %9760 = vst [vmem:[#allocation77_spill] sm:$0xff] %v8637_v28  ;;  %4129 = vrot.lane.b32.xlu1 %v8619_v30, %s5336_s24  ;;  %9768 = vst [vmem:[#allocation104_spill] sm:$0xff] %v8658_v10  ;;  %v8662_v28 = vadd.f32 %v8512_v63, %v9769_v33  ;;  %v8681_v10 = vadd.f32 %v8457_v43, %v3991_v46  ;;  %v2319_v33 = vpop.permute.xlu0 %2318  ;;  %v8687_v34 = vadd.f32 %v9779_v53, %v8512_v63 }
 0x3cc   :  { %9772 = vst [vmem:[#allocation99_spill] sm:$0xff] %v8666_v44  ;;  %9776 = vst [vmem:[#allocation106_spill] sm:$0xff] %v8674_v40  ;;  %v9781_v44 = vld [vmem:[#allocation13_spill] sm:$0xff]  ;;  %v2385_v40 = vrot.slane %v8302_v29, 1  ;;  %v2379_v46 = vrot.slane %v8310_v38, 1  ;;  %v2321_v53 = vpop.permute.xlu1 %2320 }
 0x3cd   :  { %9770 = vst [vmem:[#allocation100_spill] sm:$0xff] %v8662_v28  ;;  %9778 = vst [vmem:[#allocation107_spill] sm:$0xff] %v8678_v6  ;;  %4123 = vrot.lane.b32.xlu0 %v8652_v20, %s5336_s24  ;;  %v8691_v24 = vadd.f32 %v8512_v63, %v9781_v44  ;;  %v2386_v6 = vrot.slane %v2319_v33, 1  ;;  %v2382_v28 = vrot.slane %v8315_v25, 1  ;;  %v2397_v44 = vrot.slane %v8320_v7, 1 }
 0x3ce   :  { %9780 = vst [vmem:[#allocation108_spill] sm:$0xff] %v8687_v34  ;;  %v4827_v58 = vpop.f32.mrb[80].mxu1  ;;  %v2389_v38 = vrot.slane %v2321_v53, 1 }
 0x3cf   :  { %9782 = vst [vmem:[#allocation109_spill] sm:$0xff] %v8691_v24  ;;  %v8698_v18 = vadd.f32 %v4827_v58, %v8457_v43  ;;  %v4004_v3 = vpop.f32.mrb[81].mxu1  ;;  %4125 = vrot.lane.b32.xlu1 %v8681_v10, %s5336_s24  ;;  %v2387_v29 = vsel %vm2378_vm10, %v2385_v40, %v2386_v6  ;;  %v2573_v33 = vsel %vm2378_vm10, %v2386_v6, %v2385_v40  ;;  %v2315_v7 = vpop.permute.xlu0 %2314 }
 0x3d0   :  { %v4828_v34 = vpop.f32.mrb[82].mxu1  ;;  %v4199_v24 = vadd.f32 %v2387_v29, %v8546_v59  ;;  %v4200_v45 = vadd.f32 %v2573_v33, %v8559_v15  ;;  %v8714_v21 = vadd.f32 %v8457_v43, %v4004_v3  ;;  %v2390_v40 = vsel %vm2378_vm10, %v2388_v2, %v2389_v38  ;;  %v2317_v29 = vpop.permute.xlu1 %2316 }
 0x3d1   :  { %v8707_v25 = vadd.f32 %v4828_v34, %v8457_v43  ;;  %v4007_v58 = vpop.f32.mrb[83].mxu1  ;;  %4135 = vrot.lane.b32.xlu0 %v8698_v18, %s5336_s24  ;;  %v2574_v6 = vsel %vm2378_vm10, %v2389_v38, %v2388_v2  ;;  %v2380_v53 = vrot.slane %v2315_v7, 1  ;;  %v4201_v59 = vadd.f32 %v2390_v40, %v8542_v41 }
 0x3d2   :  { %v4263_v34 = vadd.f32 %v4199_v24, %v8485_v14  ;;  %v4264_v48 = vadd.f32 %v4200_v45, %v8490_v27  ;;  %v4202_v15 = vadd.f32 %v2574_v6, %v8550_v36  ;;  %v8725_v3 = vadd.f32 %v8457_v43, %v4007_v58 }
 0x3d3   :  { %4137 = vrot.lane.b32.xlu1 %v8707_v25, %s5336_s24  ;;  %v2381_v33 = vsel %vm2378_vm10, %v2379_v46, %v2380_v53  ;;  %v2571_v2 = vsel %vm2378_vm10, %v2380_v53, %v2379_v46  ;;  %v2383_v38 = vrot.slane %v2317_v29, 1  ;;  %v4265_v45 = vadd.f32 %v4201_v59, %v8520_v47  ;;  %v2327_v36 = vpop.permute.xlu0 %2326 }
 0x3d4   :  { %4327 = vst.msk [vmem:[#allocation5 + $0x20] sm:$0xff] %vm173_vm1, %v4263_v34  ;;  %4328 = vst.msk [vmem:[#allocation5 + $0x28] sm:$0xff] %vm173_vm1, %v4264_v48  ;;  %v4266_v14 = vadd.f32 %v4202_v15, %v8553_v8  ;;  %v4195_v27 = vadd.f32 %v2381_v33, %v8530_v17  ;;  %v4196_v41 = vadd.f32 %v2571_v2, %v8538_v55  ;;  %v2400_v24 = vrot.slane %v8325_v19, 1  ;;  %v2329_v8 = vpop.permute.xlu1 %2328 }
 0x3d5   :  { %4131 = vrot.lane.b32.xlu0 %v8714_v21, %s5336_s24  ;;  %v2384_v46 = vsel %vm2378_vm10, %v2382_v28, %v2383_v38  ;;  %v2572_v58 = vsel %vm2378_vm10, %v2383_v38, %v2382_v28  ;;  %v2398_v7 = vrot.slane %v2327_v36, 1  ;;  %4329 = vst.msk [vmem:[#allocation5 + $0x30] sm:$0xff] %vm173_vm1, %v4265_v45  ;;  %v2394_v48 = vrot.slane %v8335_v31, 1 }
 0x3d6   :  { %4330 = vst.msk [vmem:[#allocation5 + $0x38] sm:$0xff] %vm173_vm1, %v4266_v14  ;;  %v4259_v47 = vadd.f32 %v4195_v27, %v8465_v23  ;;  %v4260_v17 = vadd.f32 %v4196_v41, %v8470_v52  ;;  %v4197_v55 = vadd.f32 %v2384_v46, %v8526_v62  ;;  %v4198_v19 = vadd.f32 %v2572_v58, %v8534_v35 }
 0x3d7   :  { %4133 = vrot.lane.b32.xlu1 %v8725_v3, %s5336_s24  ;;  %v2399_v28 = vsel %vm2378_vm10, %v2397_v44, %v2398_v7  ;;  %v2577_v40 = vsel %vm2378_vm10, %v2398_v7, %v2397_v44  ;;  %v2401_v6 = vrot.slane %v2329_v8, 1  ;;  %v2323_v53 = vpop.permute.xlu0 %2322  ;;  %v2409_v31 = vrot.slane %v8340_v57, 1 }
 0x3d8   :  { %4323 = vst.msk [vmem:[#allocation5] sm:$0xff] %vm173_vm1, %v4259_v47  ;;  %4324 = vst.msk [vmem:[#allocation5 + $0x8] sm:$0xff] %vm173_vm1, %v4260_v17  ;;  %v4261_v23 = vadd.f32 %v4197_v55, %v8495_v37  ;;  %v4262_v52 = vadd.f32 %v4198_v19, %v8500_v12  ;;  %v4207_v62 = vadd.f32 %v2399_v28, %v8583_v56  ;;  %v2392_v34 = vrot.slane %v2323_v53, 1  ;;  %v2325_v56 = vpop.permute.xlu1 %2324 }
 0x3d9   :  { %v4208_v35 = vadd.f32 %v2577_v40, %v8596_v11  ;;  %v2402_v59 = vsel %vm2378_vm10, %v2400_v24, %v2401_v6  ;;  %v2578_v44 = vsel %vm2378_vm10, %v2401_v6, %v2400_v24  ;;  %v9783_v2 = vrot.slane %v8330_v4, 1 }
 0x3da   :  { %v4831_v15 = vpop.f32.mrb[84].mxu1  ;;  %4325 = vst.msk [vmem:[#allocation5 + $0x10] sm:$0xff] %vm173_vm1, %v4261_v23  ;;  %4326 = vst.msk [vmem:[#allocation5 + $0x18] sm:$0xff] %vm173_vm1, %v4262_v52  ;;  %v4271_v37 = vadd.f32 %v4207_v62, %v8586_v61  ;;  %v8765_v11 = vadd.f32 %v2402_v59, %v8579_v54  ;;  %v8768_v57 = vadd.f32 %v2578_v44, %v8592_v50  ;;  %v2403_v14 = vrot.slane %v8350_v1, 1  ;;  %v9785_v52 = vld [vmem:[#allocation15_spill] sm:$0xff]  ;;  %v9786_v62 = vld [vmem:[#allocation14_spill] sm:$0xff] }
 0x3db   :  { %v4272_v12 = vadd.f32 %v4208_v35, %v8619_v30  ;;  %v8771_v29 = vadd.f32 %v4831_v15, %v8457_v43  ;;  %v4020_v33 = vpop.f32.mrb[85].mxu1  ;;  %v2393_v38 = vsel %vm2378_vm10, %v9783_v2, %v2392_v34  ;;  %v9784_v45 = vmov %v9783_v2  ;;  %v2335_v36 = vpop.permute.xlu0 %2334  ;;  %v9787_v44 = vld [vmem:[#allocation16_spill] sm:$0xff] }
 0x3dc   :  { %v2575_v61 = vsel %vm2378_vm10, %v2392_v34, %v9784_v45  ;;  %v2395_v30 = vrot.slane %v2325_v56, 1  ;;  %v2412_v54 = vrot.slane %v8345_v22, 1  ;;  %v4832_v27 = vpop.f32.mrb[86].mxu1  ;;  %4335 = vst.msk [vmem:[#allocation5 + $0x60] sm:$0xff] %vm173_vm1, %v4271_v37  ;;  %v4203_v50 = vadd.f32 %v2393_v38, %v8567_v60 }
 0x3dd   :  { %4336 = vst.msk [vmem:[#allocation5 + $0x68] sm:$0xff] %vm173_vm1, %v4272_v12  ;;  %v4204_v41 = vadd.f32 %v2575_v61, %v8575_v42  ;;  %v8786_v24 = vadd.f32 %v4832_v27, %v8457_v43  ;;  %v4023_v4 = vpop.f32.mrb[87].mxu1  ;;  %4143 = vrot.lane.b32.xlu0 %v8771_v29, %s5336_s24  ;;  %v2410_v46 = vrot.slane %v2335_v36, 1  ;;  %v8793_v58 = vadd.f32 %v8457_v43, %v4020_v33  ;;  %v2337_v47 = vpop.permute.xlu1 %2336  ;;  %v9789_v12 = vld [vmem:[#allocation103_spill] sm:$0xff]  ;;  %v9794_v36 = vld [vmem:[#allocation78_spill] sm:$0xff] }
 0x3de   :  { %v2396_v1 = vsel %vm2378_vm10, %v2394_v48, %v2395_v30  ;;  %v2576_v22 = vsel %vm2378_vm10, %v2395_v30, %v2394_v48  ;;  %v4267_v60 = vadd.f32 %v4203_v50, %v8505_v13  ;;  %v2413_v55 = vrot.slane %v2337_v47, 1  ;;  %v9790_v33 = vld [vmem:[#allocation83_spill] sm:$0xff]  ;;  %v9791_v30 = vld [vmem:[#allocation48_spill] sm:$0xff] }
 0x3df   :  { %v4268_v42 = vadd.f32 %v4204_v41, %v8515_v49  ;;  %v4205_v7 = vadd.f32 %v2396_v1, %v8563_v16  ;;  %4145 = vrot.lane.b32.xlu1 %v8786_v24, %s5336_s24  ;;  %v4206_v17 = vadd.f32 %v2576_v22, %v8571_v9  ;;  %v2411_v19 = vsel %vm2378_vm10, %v2409_v31, %v2410_v46  ;;  %v2331_v49 = vpop.permute.xlu0 %2330  ;;  %v9793_v50 = vld [vmem:[#allocation79_spill] sm:$0xff]  ;;  %v9795_v1 = vld [vmem:[#allocation82_spill] sm:$0xff] }
 0x3e0   :  { %v2581_v8 = vsel %vm2378_vm10, %v2410_v46, %v2409_v31  ;;  %v8804_v48 = vadd.f32 %v8457_v43, %v4023_v4  ;;  %4331 = vst.msk [vmem:[#allocation5 + $0x40] sm:$0xff] %vm173_vm1, %v4267_v60  ;;  %v8810_v16 = vadd.f32 %v2411_v19, %v8625_v51  ;;  %v2404_v40 = vrot.slane %v2331_v49, 1  ;;  %v9799_v49 = vld [vmem:[#allocation105_spill] sm:$0xff] }
 0x3e1   :  { %4332 = vst.msk [vmem:[#allocation5 + $0x48] sm:$0xff] %vm173_vm1, %v4268_v42  ;;  %v4269_v13 = vadd.f32 %v4205_v7, %v8652_v20  ;;  %v8813_v9 = vadd.f32 %v2581_v8, %v8633_v32  ;;  %4139 = vrot.lane.b32.xlu0 %v8793_v58, %s5336_s24  ;;  %v4270_v28 = vadd.f32 %v4206_v17, %v8681_v10  ;;  %v2333_v32 = vpop.permute.xlu1 %2332  ;;  %v2406_v53 = vrot.slane %v8355_v5, 1  ;;  %v9796_v7 = vld [vmem:[#allocation50_spill] sm:$0xff]  ;;  %v9797_v17 = vld [vmem:[#allocation51_spill] sm:$0xff]  ;;  %v9798_v8 = vld [vmem:[#allocation100_spill] sm:$0xff] }
 0x3e2   :  { %v2414_v6 = vsel %vm2378_vm10, %v2412_v54, %v2413_v55  ;;  %v2582_v23 = vsel %vm2378_vm10, %v2413_v55, %v2412_v54  ;;  %v8822_v20 = vadd.f32 %v9785_v52, %v8512_v63  ;;  %v8826_v51 = vadd.f32 %v8512_v63, %v9786_v62  ;;  %v9792_v54 = vld [vmem:[#allocation49_spill] sm:$0xff] }
 0x3e3   :  { %4333 = vst.msk [vmem:[#allocation5 + $0x50] sm:$0xff] %vm173_vm1, %v4269_v13  ;;  %v8830_v35 = vadd.f32 %v2414_v6, %v8616_v39  ;;  %v8833_v10 = vadd.f32 %v2582_v23, %v8629_v0  ;;  %4141 = vrot.lane.b32.xlu1 %v8804_v48, %s5336_s24  ;;  %4334 = vst.msk [vmem:[#allocation5 + $0x58] sm:$0xff] %vm173_vm1, %v4270_v28  ;;  %v2407_v31 = vrot.slane %v2333_v32, 1  ;;  %v9788_v39 = vld [vmem:[#allocation47_spill] sm:$0xff]  ;;  %v2343_v37 = vpop.permute.xlu0 %2342  ;;  %v2421_v2 = vrot.slane %v9790_v33, 1  ;;  %v9801_v32 = vld [vmem:[#allocation52_spill] sm:$0xff] }
 0x3e4   :  { %v2405_v34 = vsel %vm2378_vm10, %v2403_v14, %v2404_v40  ;;  %v2579_v59 = vsel %vm2378_vm10, %v2404_v40, %v2403_v14  ;;  %v8843_v15 = vadd.f32 %v9787_v44, %v8512_v63  ;;  %v452_v0 = vadd.f32 %v8512_v63, %v9788_v39  ;;  %v9800_v40 = vld [vmem:[#allocation81_spill] sm:$0xff]  ;;  %v9804_v39 = vld [vmem:[#allocation99_spill] sm:$0xff]  ;;  %v9805_v33 = vld [vmem:[#allocation80_spill] sm:$0xff] }
 0x3e5   :  { %v8848_v5 = vadd.f32 %v2405_v34, %v8604_v26  ;;  %v8851_v56 = vadd.f32 %v2579_v59, %v9789_v12  ;;  %v2422_v38 = vrot.slane %v2343_v37, 1  ;;  %v2408_v45 = vsel %vm2378_vm10, %v2406_v53, %v2407_v31  ;;  %v2345_v26 = vpop.permute.xlu1 %2344  ;;  %v9803_v59 = vld [vmem:[#allocation104_spill] sm:$0xff] }
 0x3e6   :  { %v2580_v61 = vsel %vm2378_vm10, %v2407_v31, %v2406_v53  ;;  %v8858_v14 = vadd.f32 %v9791_v30, %v8512_v63  ;;  %v8862_v27 = vadd.f32 %v8512_v63, %v9792_v54  ;;  %v8865_v41 = vadd.f32 %v2408_v45, %v9793_v50  ;;  %v9802_v31 = vld [vmem:[#allocation53_spill] sm:$0xff] }
 0x3e7   :  { %v8868_v4 = vadd.f32 %v2580_v61, %v9794_v36  ;;  %v2424_v22 = vrot.slane %v9795_v1, 1  ;;  %v2425_v46 = vrot.slane %v2345_v26, 1  ;;  %v2423_v60 = vsel %vm2378_vm10, %v2421_v2, %v2422_v38  ;;  %v2339_v19 = vpop.permute.xlu0 %2338  ;;  %v9806_v30 = vld [vmem:[#allocation97_spill] sm:$0xff]  ;;  %v9807_v26 = vld [vmem:[#allocation98_spill] sm:$0xff]  ;;  %v9808_v1 = vld [vmem:[#allocation75_spill] sm:$0xff] }
 0x3e8   :  { %v2585_v42 = vsel %vm2378_vm10, %v2422_v38, %v2421_v2  ;;  %v8875_v47 = vadd.f32 %v9796_v7, %v8512_v63  ;;  %v8879_v55 = vadd.f32 %v8512_v63, %v9797_v17  ;;  %v8882_v13 = vadd.f32 %v2423_v60, %v9798_v8 }
 0x3e9   :  { %v8885_v28 = vadd.f32 %v2585_v42, %v9799_v49  ;;  %v2415_v6 = vrot.slane %v9800_v40, 1  ;;  %v2426_v23 = vsel %vm2378_vm10, %v2424_v22, %v2425_v46  ;;  %v2586_v52 = vsel %vm2378_vm10, %v2425_v46, %v2424_v22  ;;  %v2341_v12 = vpop.permute.xlu1 %2340  ;;  %v9809_v46 = vld [vmem:[#allocation101_spill] sm:$0xff]  ;;  %v9810_v42 = vld [vmem:[#allocation87_spill] sm:$0xff]  ;;  %v9811_v49 = vld [vmem:[#allocation54_spill] sm:$0xff] }
 0x3ea   :  { %v2416_v62 = vrot.slane %v2339_v19, 1  ;;  %v8892_v53 = vadd.f32 %v9801_v32, %v8512_v63  ;;  %v8896_v34 = vadd.f32 %v8512_v63, %v9802_v31  ;;  %v4225_v44 = vadd.f32 %v2426_v23, %v9803_v59  ;;  %v9814_v31 = vld [vmem:[#allocation102_spill] sm:$0xff] }
 0x3eb   :  { %v4226_v37 = vadd.f32 %v2586_v52, %v9804_v39  ;;  %v2418_v2 = vrot.slane %v9805_v33, 1  ;;  %v2419_v38 = vrot.slane %v2341_v12, 1  ;;  %v2351_v36 = vpop.permute.xlu0 %2350  ;;  %v2433_v7 = vrot.slane %v9810_v42, 1 }
 0x3ec   :  { %v2417_v45 = vsel %vm2378_vm10, %v2415_v6, %v2416_v62  ;;  %v2583_v61 = vsel %vm2378_vm10, %v2416_v62, %v2415_v6  ;;  %v4289_v54 = vadd.f32 %v4225_v44, %v9806_v30  ;;  %v2434_v17 = vrot.slane %v2351_v36, 1  ;;  %v9812_v6 = vld [vmem:[#allocation55_spill] sm:$0xff]  ;;  %v9813_v62 = vld [vmem:[#allocation77_spill] sm:$0xff]  ;;  %v9815_v44 = vld [vmem:[#allocation86_spill] sm:$0xff] }
 0x3ed   :  { %v4290_v50 = vadd.f32 %v4226_v37, %v9807_v26  ;;  %v8906_v22 = vadd.f32 %v2417_v45, %v9808_v1  ;;  %v8909_v60 = vadd.f32 %v2583_v61, %v9809_v46  ;;  %v2420_v19 = vsel %vm2378_vm10, %v2418_v2, %v2419_v38  ;;  %v2353_v52 = vpop.permute.xlu1 %2352  ;;  %v9817_v45 = vld [vmem:[#allocation63_spill] sm:$0xff] }
 0x3ee   :  { %v2584_v8 = vsel %vm2378_vm10, %v2419_v38, %v2418_v2  ;;  %v8916_v40 = vadd.f32 %v9811_v49, %v8512_v63  ;;  %v484_v23 = vadd.f32 %v8512_v63, %v9812_v6  ;;  %4353 = vst.msk [vmem:[#allocation5 + $0xf0] sm:$0xff] %vm173_vm1, %v4289_v54  ;;  %v8923_v32 = vadd.f32 %v2420_v19, %v9813_v62  ;;  %v9816_v2 = vld [vmem:[#allocation61_spill] sm:$0xff] }
 0x3ef   :  { %4354 = vst.msk [vmem:[#allocation5 + $0xf8] sm:$0xff] %vm173_vm1, %v4290_v50  ;;  %v8926_v59 = vadd.f32 %v2584_v8, %v9814_v31  ;;  %v2436_v39 = vrot.slane %v9815_v44, 1  ;;  %v2435_v37 = vsel %vm2378_vm10, %v2433_v7, %v2434_v17  ;;  %v2589_v12 = vsel %vm2378_vm10, %v2434_v17, %v2433_v7  ;;  %v2347_v26 = vpop.permute.xlu0 %2346  ;;  %v9818_v50 = vld [vmem:[#allocation76_spill] sm:$0xff] }
 0x3f0   :  { %v2437_v33 = vrot.slane %v2353_v52, 1  ;;  %v8933_v38 = vadd.f32 %v8512_v63, %v9816_v2  ;;  %v8937_v61 = vadd.f32 %v8512_v63, %v9817_v45  ;;  %v4231_v30 = vadd.f32 %v2435_v37, %v8826_v51  ;;  %v9819_v51 = vld [vmem:[#allocation85_spill] sm:$0xff]  ;;  %v9820_v31 = vld [vmem:[#allocation84_spill] sm:$0xff] }
 0x3f1   :  { %v4232_v54 = vadd.f32 %v2589_v12, %v452_v0  ;;  %v2427_v36 = vrot.slane %v9818_v50, 1  ;;  %v2428_v42 = vrot.slane %v2347_v26, 1  ;;  %v2349_v49 = vpop.permute.xlu1 %2348  ;;  %v2430_v0 = vrot.slane %v9819_v51, 1 }
 0x3f2   :  { %v2438_v1 = vsel %vm2378_vm10, %v2436_v39, %v2437_v33  ;;  %v2590_v46 = vsel %vm2378_vm10, %v2437_v33, %v2436_v39  ;;  %v4295_v7 = vadd.f32 %v4231_v30, %v8771_v29  ;;  %v2431_v62 = vrot.slane %v2349_v49, 1  ;;  %v9821_v39 = vld [vmem:[#allocation89_spill] sm:$0xff]  ;;  %v9822_v29 = vld [vmem:[#allocation107_spill] sm:$0xff] }
 0x3f3   :  { %v4296_v17 = vadd.f32 %v4232_v54, %v8786_v24  ;;  %v4233_v19 = vadd.f32 %v2438_v1, %v8822_v20  ;;  %v8947_v8 = vadd.f32 %v2590_v46, %v8843_v15  ;;  %v2429_v6 = vsel %vm2378_vm10, %v2427_v36, %v2428_v42  ;;  %v9823_v20 = vld [vmem:[#allocation109_spill] sm:$0xff]  ;;  %v2359_v12 = vpop.permute.xlu0 %2358  ;;  %v9824_v33 = vld [vmem:[#allocation91_spill] sm:$0xff]  ;;  %v9826_v46 = vld [vmem:[#allocation108_spill] sm:$0xff] }
 0x3f4   :  { %v2587_v52 = vsel %vm2378_vm10, %v2428_v42, %v2427_v36  ;;  %v2445_v44 = vrot.slane %v9820_v31, 1  ;;  %v2439_v37 = vrot.slane %v9821_v39, 1  ;;  %4359 = vst.msk [vmem:[#allocation5 + $0x120] sm:$0xff] %vm173_vm1, %v4295_v7  ;;  %v4227_v24 = vadd.f32 %v2429_v6, %v9822_v29  ;;  %v9825_v36 = vld [vmem:[#allocation106_spill] sm:$0xff] }
 0x3f5   :  { %4360 = vst.msk [vmem:[#allocation5 + $0x128] sm:$0xff] %vm173_vm1, %v4296_v17  ;;  %v4228_v15 = vadd.f32 %v2587_v52, %v9823_v20  ;;  %v2448_v2 = vrot.slane %v9824_v33, 1  ;;  %v2432_v45 = vsel %vm2378_vm10, %v2430_v0, %v2431_v62  ;;  %v2588_v30 = vsel %vm2378_vm10, %v2431_v62, %v2430_v0  ;;  %v2361_v7 = vpop.permute.xlu1 %2360  ;;  %v9827_v17 = vld [vmem:[#allocation90_spill] sm:$0xff] }
 0x3f6   :  { %v2446_v54 = vrot.slane %v2359_v12, 1  ;;  %v4291_v26 = vadd.f32 %v4227_v24, %v8698_v18  ;;  %v4229_v1 = vadd.f32 %v2432_v45, %v9825_v36  ;;  %v4230_v42 = vadd.f32 %v2588_v30, %v9826_v46  ;;  %v9828_v12 = vld [vmem:[#allocation88_spill] sm:$0xff] }
 0x3f7   :  { %v4292_v50 = vadd.f32 %v4228_v15, %v8707_v25  ;;  %v2442_v49 = vrot.slane %v9827_v17, 1  ;;  %v2449_v52 = vrot.slane %v2361_v7, 1  ;;  %v2355_v39 = vpop.permute.xlu0 %2354  ;;  %v2457_v33 = vrot.slane %v9828_v12, 1 }
 0x3f8   :  { %v2447_v51 = vsel %vm2378_vm10, %v2445_v44, %v2446_v54  ;;  %v2593_v6 = vsel %vm2378_vm10, %v2446_v54, %v2445_v44  ;;  %v4835_v31 = vpop.f32.mrb[88].mxu1  ;;  %4355 = vst.msk [vmem:[#allocation5 + $0x100] sm:$0xff] %vm173_vm1, %v4291_v26  ;;  %v4293_v18 = vadd.f32 %v4229_v1, %v8793_v58  ;;  %v4294_v25 = vadd.f32 %v4230_v42, %v8804_v48 }
 0x3f9   :  { %4356 = vst.msk [vmem:[#allocation5 + $0x108] sm:$0xff] %vm173_vm1, %v4292_v50  ;;  %v8973_v0 = vadd.f32 %v2447_v51, %v8896_v34  ;;  %v8975_v62 = vadd.f32 %v2593_v6, %v484_v23  ;;  %v4045_v29 = vadd.f32 %v4835_v31, %v8457_v43  ;;  %v4036_v24 = vpop.f32.mrb[89].mxu1  ;;  %v2440_v44 = vrot.slane %v2355_v39, 1  ;;  %v2357_v48 = vpop.permute.xlu1 %2356 }
 0x3fa   :  { %v2450_v20 = vsel %vm2378_vm10, %v2448_v2, %v2449_v52  ;;  %v2594_v15 = vsel %vm2378_vm10, %v2449_v52, %v2448_v2  ;;  %v4037_v58 = vadd.f32 %v8457_v43, %v4036_v24  ;;  %v4836_v45 = vpop.f32.mrb[90].mxu1  ;;  %4357 = vst.msk [vmem:[#allocation5 + $0x110] sm:$0xff] %vm173_vm1, %v4293_v18  ;;  %4358 = vst.msk [vmem:[#allocation5 + $0x118] sm:$0xff] %vm173_vm1, %v4294_v25  ;;  %v2443_v50 = vrot.slane %v2357_v48, 1 }
 0x3fb   :  { %v8985_v34 = vadd.f32 %v2450_v20, %v8892_v53  ;;  %v8988_v23 = vadd.f32 %v2594_v15, %v8916_v40  ;;  %v4048_v30 = vadd.f32 %v4836_v45, %v8457_v43  ;;  %v4039_v54 = vpop.f32.mrb[91].mxu1  ;;  %4151 = vrot.lane.b32.xlu0 %v4045_v29, %s5336_s24  ;;  %v2441_v2 = vsel %vm2378_vm10, %v2439_v37, %v2440_v44  ;;  %v2367_v42 = vpop.permute.xlu0 %2366  ;;  %v9829_v40 = vld [vmem:[#allocation73_spill] sm:$0xff]  ;;  %v9832_v20 = vld [vmem:[#allocation72_spill] sm:$0xff] }
 0x3fc   :  { %v2591_v26 = vsel %vm2378_vm10, %v2440_v44, %v2439_v37  ;;  %v4040_v36 = vadd.f32 %v8457_v43, %v4039_v54  ;;  %v4297_v1 = vadd.f32 %v4233_v19, %v4037_v58  ;;  %v4235_v46 = vadd.f32 %v2441_v2, %v8862_v27  ;;  %v9833_v45 = vld [vmem:[#allocation57_spill] sm:$0xff] }
 0x3fd   :  { %v4236_v53 = vadd.f32 %v2591_v26, %v8879_v55  ;;  %v2460_v7 = vrot.slane %v9829_v40, 1  ;;  %4153 = vrot.lane.b32.xlu1 %v4048_v30, %s5336_s24  ;;  %v2444_v17 = vsel %vm2378_vm10, %v2442_v49, %v2443_v50  ;;  %v2592_v51 = vsel %vm2378_vm10, %v2443_v50, %v2442_v49  ;;  %v2369_v31 = vpop.permute.xlu1 %2368  ;;  %v9830_v49 = vld [vmem:[#allocation60_spill] sm:$0xff]  ;;  %v9835_v26 = vld [vmem:[#allocation93_spill] sm:$0xff]  ;;  %v9837_v40 = vld [vmem:[#allocation58_spill] sm:$0xff] }
 0x3fe   :  { %v2458_v6 = vrot.slane %v2367_v42, 1  ;;  %v4298_v37 = vadd.f32 %v8947_v8, %v4040_v36  ;;  %4361 = vst.msk [vmem:[#allocation5 + $0x130] sm:$0xff] %vm173_vm1, %v4297_v1  ;;  %v4299_v52 = vadd.f32 %v4235_v46, %v4045_v29  ;;  %v4237_v27 = vadd.f32 %v2444_v17, %v8858_v14  ;;  %v9831_v8 = vld [vmem:[#allocation62_spill] sm:$0xff] }
 0x3ff   :  { %v4300_v19 = vadd.f32 %v4236_v53, %v4048_v30  ;;  %4147 = vrot.lane.b32.xlu0 %v4037_v58, %s5336_s24  ;;  %v4238_v55 = vadd.f32 %v2592_v51, %v8875_v47  ;;  %v2461_v18 = vrot.slane %v2369_v31, 1  ;;  %v521_v24 = vadd.f32 %v9830_v49, %v8512_v63  ;;  %v2363_v14 = vpop.permute.xlu0 %2362  ;;  %v9834_v30 = vld [vmem:[#allocation59_spill] sm:$0xff]  ;;  %v9836_v53 = vld [vmem:[#allocation56_spill] sm:$0xff] }
 0x400   :  { %v2459_v25 = vsel %vm2378_vm10, %v2457_v33, %v2458_v6  ;;  %v2597_v39 = vsel %vm2378_vm10, %v2458_v6, %v2457_v33  ;;  %v524_v44 = vadd.f32 %v9831_v8, %v8512_v63  ;;  %4362 = vst.msk [vmem:[#allocation5 + $0x138] sm:$0xff] %vm173_vm1, %v4298_v37  ;;  %4363 = vst.msk [vmem:[#allocation5 + $0x140] sm:$0xff] %vm173_vm1, %v4299_v52  ;;  %v2451_v15 = vrot.slane %v9832_v20, 1 }
 0x401   :  { %4364 = vst.msk [vmem:[#allocation5 + $0x148] sm:$0xff] %vm173_vm1, %v4300_v19  ;;  %v9016_v47 = vadd.f32 %v2459_v25, %v8933_v38  ;;  %v9019_v29 = vadd.f32 %v2597_v39, %v8937_v61  ;;  %4149 = vrot.lane.b32.xlu1 %v4040_v36, %s5336_s24  ;;  %v2452_v12 = vrot.slane %v2363_v14, 1  ;;  %v2462_v33 = vsel %vm2378_vm10, %v2460_v7, %v2461_v18  ;;  %v2365_v38 = vpop.permute.xlu1 %2364 }
 0x402   :  { %v2598_v58 = vsel %vm2378_vm10, %v2461_v18, %v2460_v7  ;;  %v497_v48 = vadd.f32 %v8512_v63, %v9833_v45  ;;  %v500_v54 = vadd.f32 %v8512_v63, %v9834_v30  ;;  %v9029_v2 = vadd.f32 %v2462_v33, %v521_v24  ;;  %v9840_v30 = vld [vmem:[#allocation65_spill] sm:$0xff] }
 0x403   :  { %v9031_v61 = vadd.f32 %v2598_v58, %v524_v44  ;;  %v2454_v50 = vrot.slane %v9835_v26, 1  ;;  %v2455_v1 = vrot.slane %v2365_v38, 1  ;;  %v2453_v36 = vsel %vm2378_vm10, %v2451_v15, %v2452_v12  ;;  %v9838_v58 = vld [vmem:[#allocation92_spill] sm:$0xff]  ;;  %v9842_v38 = vld [vmem:[#allocation71_spill] sm:$0xff] }
 0x404   :  { %v2595_v46 = vsel %vm2378_vm10, %v2452_v12, %v2451_v15  ;;  %v505_v42 = vadd.f32 %v9836_v53, %v8512_v63  ;;  %v508_v7 = vadd.f32 %v9837_v40, %v8512_v63  ;;  %v9040_v17 = vadd.f32 %v2453_v36, %v497_v48 }
 0x405   :  { %v9042_v51 = vadd.f32 %v2595_v46, %v500_v54  ;;  %v2456_v6 = vsel %vm2378_vm10, %v2454_v50, %v2455_v1  ;;  %v2596_v37 = vsel %vm2378_vm10, %v2455_v1, %v2454_v50  ;;  %v2469_v45 = vrot.slane %v9838_v58, 1  ;;  %v9843_v50 = vld [vmem:[#allocation96_spill] sm:$0xff] }
 0x406   :  { %v9046_v52 = vadd.f32 %v2456_v6, %v505_v42  ;;  %v9048_v19 = vadd.f32 %v2596_v37, %v508_v7  ;;  %v2472_v1 = vrot.slane %v9843_v50, 1  ;;  %v9844_v42 = vld [vmem:[#allocation68_spill] sm:$0xff]  ;;  %v9845_v7 = vld [vmem:[#allocation70_spill] sm:$0xff] }
 0x407   :  { %v553_v40 = vadd.f32 %v9844_v42, %v8512_v63  ;;  %v556_v6 = vadd.f32 %v9845_v7, %v8512_v63 }
 0x40e   :  { %v4839_v31 = vpop.f32.mrb[92].mxu1 }
 0x40f   :  { %v4061_v18 = vadd.f32 %v4839_v31, %v8457_v43  ;;  %v4052_v25 = vpop.f32.mrb[93].mxu1 }
 0x410   :  { %v4053_v39 = vadd.f32 %v8457_v43, %v4052_v25  ;;  %v4840_v49 = vpop.f32.mrb[94].mxu1  ;;  %v9846_v25 = vld [vmem:[#allocation95_spill] sm:$0xff] }
 0x411   :  { %v4064_v24 = vadd.f32 %v4840_v49, %v8457_v43  ;;  %v4055_v8 = vpop.f32.mrb[95].mxu1  ;;  %v4303_v44 = vadd.f32 %v8973_v0, %v4061_v18 }
 0x412   :  { %v4056_v14 = vadd.f32 %v8457_v43, %v4055_v8  ;;  %4155 = vrot.lane.b32.xlu0 %v4053_v39, %s5336_s24  ;;  %v4301_v20 = vadd.f32 %v4237_v27, %v4053_v39  ;;  %v9839_v43 = vld [vmem:[#allocation64_spill] sm:$0xff]  ;;  %v529_v27 = vadd.f32 %v8512_v63, %v9840_v30  ;;  %v2463_v39 = vrot.slane %v9846_v25, 1 }
 0x413   :  { %v4304_v15 = vadd.f32 %v8975_v62, %v4064_v24  ;;  %4367 = vst.msk [vmem:[#allocation5 + $0x160] sm:$0xff] %vm173_vm1, %v4303_v44  ;;  %v537_v48 = vadd.f32 %v9839_v43, %v8512_v63  ;;  %v9841_v62 = vld [vmem:[#allocation69_spill] sm:$0xff] }
 0x414   :  { %4157 = vrot.lane.b32.xlu1 %v4056_v14, %s5336_s24  ;;  %v4302_v12 = vadd.f32 %v4238_v55, %v4056_v14  ;;  %4365 = vst.msk [vmem:[#allocation5 + $0x150] sm:$0xff] %vm173_vm1, %v4301_v20  ;;  %v545_v54 = vadd.f32 %v8512_v63, %v9841_v62  ;;  %v548_v55 = vadd.f32 %v8512_v63, %v9842_v38  ;;  %v9847_v14 = vld [vmem:[#allocation66_spill] sm:$0xff] }
 0x415   :  { %4368 = vst.msk [vmem:[#allocation5 + $0x168] sm:$0xff] %vm173_vm1, %v4304_v15  ;;  %v540_v20 = vadd.f32 %v9847_v14, %v8512_v63  ;;  %v9848_v15 = vld [vmem:[#allocation67_spill] sm:$0xff] }
 0x416   :  { %4159 = vrot.lane.b32.xlu0 %v4061_v18, %s5336_s24  ;;  %4366 = vst.msk [vmem:[#allocation5 + $0x158] sm:$0xff] %vm173_vm1, %v4302_v12  ;;  %v532_v12 = vadd.f32 %v8512_v63, %v9848_v15 }
 0x418   :  { %v2375_v33 = vpop.permute.xlu0 %2374  ;;  %4161 = vrot.lane.b32.xlu1 %v4064_v24, %s5336_s24 }
 0x419   :  { %v2470_v0 = vrot.slane %v2375_v33, 1 }
 0x41a   :  { %v2377_v26 = vpop.permute.xlu1 %2376 }
 0x41b   :  { %v2473_v36 = vrot.slane %v2377_v26, 1  ;;  %v2471_v46 = vsel %vm2378_vm10, %v2469_v45, %v2470_v0  ;;  %v2601_v53 = vsel %vm2378_vm10, %v2470_v0, %v2469_v45  ;;  %v9849_v45 = vld [vmem:[#allocation94_spill] sm:$0xff] }
 0x41c   :  { %v2371_v37 = vpop.permute.xlu0 %2370  ;;  %v9080_v31 = vadd.f32 %v2471_v46, %v545_v54  ;;  %v9082_v18 = vadd.f32 %v2601_v53, %v548_v55  ;;  %v2466_v0 = vrot.slane %v9849_v45, 1 }
 0x41d   :  { %v2474_v49 = vsel %vm2378_vm10, %v2472_v1, %v2473_v36  ;;  %v2602_v8 = vsel %vm2378_vm10, %v2473_v36, %v2472_v1  ;;  %v2464_v44 = vrot.slane %v2371_v37, 1 }
 0x41e   :  { %v4257_v33 = vadd.f32 %v2474_v49, %v553_v40  ;;  %v4258_v24 = vadd.f32 %v2602_v8, %v556_v6  ;;  %v2373_v58 = vpop.permute.xlu1 %2372 }
 0x41f   :  { %v2467_v43 = vrot.slane %v2373_v58, 1  ;;  %v2465_v30 = vsel %vm2378_vm10, %v2463_v39, %v2464_v44  ;;  %v2599_v62 = vsel %vm2378_vm10, %v2464_v44, %v2463_v39 }
 0x420   :  { %v4321_v54 = vadd.f32 %v4257_v33, %v8714_v21  ;;  %v4322_v38 = vadd.f32 %v4258_v24, %v8725_v3  ;;  %v9096_v26 = vadd.f32 %v2465_v30, %v529_v27  ;;  %v9098_v50 = vadd.f32 %v2599_v62, %v532_v12 }
 0x421   :  { %v2468_v1 = vsel %vm2378_vm10, %v2466_v0, %v2467_v43  ;;  %v2600_v36 = vsel %vm2378_vm10, %v2467_v43, %v2466_v0 }
 0x422   :  { %4385 = vst.msk [vmem:[#allocation5 + $0x1f0] sm:$0xff] %vm173_vm1, %v4321_v54  ;;  %4386 = vst.msk [vmem:[#allocation5 + $0x1f8] sm:$0xff] %vm173_vm1, %v4322_v38  ;;  %v9105_v53 = vadd.f32 %v2468_v1, %v537_v48  ;;  %v9107_v21 = vadd.f32 %v2600_v36, %v540_v20 }
 0x423   :  { %v4104_v55 = vpop.permute.xlu0 %4103 }
 0x424   :  { %v4275_v63 = vadd.f32 %v8848_v5, %v4104_v55 }
 0x425   :  { %v4106_v46 = vpop.permute.xlu1 %4105 }
 0x426   :  { %4339 = vst.msk [vmem:[#allocation5 + $0x80] sm:$0xff] %vm173_vm1, %v4275_v63  ;;  %v4276_v3 = vadd.f32 %v8851_v56, %v4106_v46 }
 0x427   :  { %v4100_v27 = vpop.permute.xlu0 %4099 }
 0x428   :  { %4340 = vst.msk [vmem:[#allocation5 + $0x88] sm:$0xff] %vm173_vm1, %v4276_v3  ;;  %v4273_v5 = vadd.f32 %v8765_v11, %v4100_v27 }
 0x429   :  { %v4102_v42 = vpop.permute.xlu1 %4101 }
 0x42a   :  { %4337 = vst.msk [vmem:[#allocation5 + $0x70] sm:$0xff] %vm173_vm1, %v4273_v5  ;;  %v4274_v40 = vadd.f32 %v8768_v57, %v4102_v42 }
 0x42b   :  { %v4112_v7 = vpop.permute.xlu0 %4111 }
 0x42c   :  { %4338 = vst.msk [vmem:[#allocation5 + $0x78] sm:$0xff] %vm173_vm1, %v4274_v40  ;;  %v4279_v48 = vadd.f32 %v8810_v16, %v4112_v7 }
 0x42d   :  { %v4114_v6 = vpop.permute.xlu1 %4113 }
 0x42e   :  { %4343 = vst.msk [vmem:[#allocation5 + $0xa0] sm:$0xff] %vm173_vm1, %v4279_v48  ;;  %v4280_v56 = vadd.f32 %v8813_v9, %v4114_v6 }
 0x42f   :  { %v4108_v37 = vpop.permute.xlu0 %4107 }
 0x430   :  { %4344 = vst.msk [vmem:[#allocation5 + $0xa8] sm:$0xff] %vm173_vm1, %v4280_v56  ;;  %v4277_v11 = vadd.f32 %v8865_v41, %v4108_v37 }
 0x431   :  { %v4110_v25 = vpop.permute.xlu1 %4109 }
 0x432   :  { %4341 = vst.msk [vmem:[#allocation5 + $0x90] sm:$0xff] %vm173_vm1, %v4277_v11  ;;  %v4278_v57 = vadd.f32 %v8868_v4, %v4110_v25 }
 0x433   :  { %v4120_v39 = vpop.permute.xlu0 %4119 }
 0x434   :  { %4342 = vst.msk [vmem:[#allocation5 + $0x98] sm:$0xff] %vm173_vm1, %v4278_v57  ;;  %v4283_v16 = vadd.f32 %v8906_v22, %v4120_v39 }
 0x435   :  { %v4122_v49 = vpop.permute.xlu1 %4121 }
 0x436   :  { %4347 = vst.msk [vmem:[#allocation5 + $0xc0] sm:$0xff] %vm173_vm1, %v4283_v16  ;;  %v4284_v9 = vadd.f32 %v8909_v60, %v4122_v49 }
 0x437   :  { %v4116_v8 = vpop.permute.xlu0 %4115 }
 0x438   :  { %4348 = vst.msk [vmem:[#allocation5 + $0xc8] sm:$0xff] %vm173_vm1, %v4284_v9  ;;  %v4281_v41 = vadd.f32 %v8830_v35, %v4116_v8 }
 0x439   :  { %v4118_v44 = vpop.permute.xlu1 %4117 }
 0x43a   :  { %4345 = vst.msk [vmem:[#allocation5 + $0xb0] sm:$0xff] %vm173_vm1, %v4281_v41  ;;  %v4282_v4 = vadd.f32 %v8833_v10, %v4118_v44 }
 0x43b   :  { %v4128_v14 = vpop.permute.xlu0 %4127 }
 0x43c   :  { %4346 = vst.msk [vmem:[#allocation5 + $0xb8] sm:$0xff] %vm173_vm1, %v4282_v4  ;;  %v4287_v22 = vadd.f32 %v8882_v13, %v4128_v14 }
 0x43d   :  { %v4130_v20 = vpop.permute.xlu1 %4129 }
 0x43e   :  { %4351 = vst.msk [vmem:[#allocation5 + $0xe0] sm:$0xff] %vm173_vm1, %v4287_v22  ;;  %v4288_v60 = vadd.f32 %v8885_v28, %v4130_v20 }
 0x43f   :  { %v4124_v15 = vpop.permute.xlu0 %4123 }
 0x440   :  { %4352 = vst.msk [vmem:[#allocation5 + $0xe8] sm:$0xff] %vm173_vm1, %v4288_v60  ;;  %v4285_v35 = vadd.f32 %v8923_v32, %v4124_v15 }
 0x441   :  { %v4126_v12 = vpop.permute.xlu1 %4125 }
 0x442   :  { %4349 = vst.msk [vmem:[#allocation5 + $0xd0] sm:$0xff] %vm173_vm1, %v4285_v35  ;;  %v4286_v10 = vadd.f32 %v8926_v59, %v4126_v12 }
 0x443   :  { %v4136_v33 = vpop.permute.xlu0 %4135 }
 0x444   :  { %4350 = vst.msk [vmem:[#allocation5 + $0xd8] sm:$0xff] %vm173_vm1, %v4286_v10  ;;  %v4307_v13 = vadd.f32 %v9040_v17, %v4136_v33 }
 0x445   :  { %v4138_v24 = vpop.permute.xlu1 %4137 }
 0x446   :  { %4371 = vst.msk [vmem:[#allocation5 + $0x180] sm:$0xff] %vm173_vm1, %v4307_v13  ;;  %v4308_v28 = vadd.f32 %v9042_v51, %v4138_v24 }
 0x447   :  { %v4132_v58 = vpop.permute.xlu0 %4131 }
 0x448   :  { %4372 = vst.msk [vmem:[#allocation5 + $0x188] sm:$0xff] %vm173_vm1, %v4308_v28  ;;  %v4305_v32 = vadd.f32 %v8985_v34, %v4132_v58 }
 0x449   :  { %v4134_v45 = vpop.permute.xlu1 %4133 }
 0x44a   :  { %4369 = vst.msk [vmem:[#allocation5 + $0x170] sm:$0xff] %vm173_vm1, %v4305_v32  ;;  %v4306_v59 = vadd.f32 %v8988_v23, %v4134_v45 }
 0x44c   :  { %4370 = vst.msk [vmem:[#allocation5 + $0x178] sm:$0xff] %vm173_vm1, %v4306_v59 }
 0x44f   :  { %v4144_v0 = vpop.permute.xlu0 %4143 }
 0x450   :  { %v4311_v17 = vadd.f32 %v9016_v47, %v4144_v0 }
 0x451   :  { %v4146_v43 = vpop.permute.xlu1 %4145 }
 0x452   :  { %4375 = vst.msk [vmem:[#allocation5 + $0x1a0] sm:$0xff] %vm173_vm1, %v4311_v17  ;;  %v4312_v51 = vadd.f32 %v9019_v29, %v4146_v43 }
 0x453   :  { %v4140_v30 = vpop.permute.xlu0 %4139 }
 0x454   :  { %4376 = vst.msk [vmem:[#allocation5 + $0x1a8] sm:$0xff] %vm173_vm1, %v4312_v51  ;;  %v4309_v34 = vadd.f32 %v9046_v52, %v4140_v30 }
 0x455   :  { %v4142_v62 = vpop.permute.xlu1 %4141 }
 0x456   :  { %4373 = vst.msk [vmem:[#allocation5 + $0x190] sm:$0xff] %vm173_vm1, %v4309_v34  ;;  %v4310_v23 = vadd.f32 %v9048_v19, %v4142_v62 }
 0x458   :  { %4374 = vst.msk [vmem:[#allocation5 + $0x198] sm:$0xff] %vm173_vm1, %v4310_v23 }
 0x46d   :  { %v4152_v54 = vpop.permute.xlu0 %4151 }
 0x46e   :  { %v4315_v47 = vadd.f32 %v9096_v26, %v4152_v54 }
 0x46f   :  { %v4154_v38 = vpop.permute.xlu1 %4153 }
 0x470   :  { %4379 = vst.msk [vmem:[#allocation5 + $0x1c0] sm:$0xff] %vm173_vm1, %v4315_v47  ;;  %v4316_v29 = vadd.f32 %v9098_v50, %v4154_v38 }
 0x471   :  { %v4148_v55 = vpop.permute.xlu0 %4147 }
 0x472   :  { %4380 = vst.msk [vmem:[#allocation5 + $0x1c8] sm:$0xff] %vm173_vm1, %v4316_v29  ;;  %v4313_v52 = vadd.f32 %v9029_v2, %v4148_v55 }
 0x473   :  { %v4150_v63 = vpop.permute.xlu1 %4149 }
 0x474   :  { %4377 = vst.msk [vmem:[#allocation5 + $0x1b0] sm:$0xff] %vm173_vm1, %v4313_v52  ;;  %v4314_v19 = vadd.f32 %v9031_v61, %v4150_v63 }
 0x476   :  { %4378 = vst.msk [vmem:[#allocation5 + $0x1b8] sm:$0xff] %vm173_vm1, %v4314_v19 }
 0x484   :  { %v4156_v1 = vpop.permute.xlu0 %4155 }
 0x485   :  { %v4317_v26 = vadd.f32 %v9105_v53, %v4156_v1 }
 0x486   :  { %v4158_v36 = vpop.permute.xlu1 %4157 }
 0x487   :  { %4381 = vst.msk [vmem:[#allocation5 + $0x1d0] sm:$0xff] %vm173_vm1, %v4317_v26  ;;  %v4318_v50 = vadd.f32 %v9107_v21, %v4158_v36 }
 0x488   :  { %v4160_v46 = vpop.permute.xlu0 %4159 }
 0x489   :  { %4382 = vst.msk [vmem:[#allocation5 + $0x1d8] sm:$0xff] %vm173_vm1, %v4318_v50  ;;  %v4319_v2 = vadd.f32 %v9080_v31, %v4160_v46 }
 0x48a   :  { %v4162_v3 = vpop.permute.xlu1 %4161 }
 0x48b   :  { %4383 = vst.msk [vmem:[#allocation5 + $0x1e0] sm:$0xff] %vm173_vm1, %v4319_v2  ;;  %v4320_v61 = vadd.f32 %v9082_v18, %v4162_v3 }
 0x48d   :  { %4384 = vst.msk [vmem:[#allocation5 + $0x1e8] sm:$0xff] %vm173_vm1, %v4320_v61 }
 0x48e   :  { %5317 = shalt.err (!%p5314_p12)
}
 0x48f   :  { %s5318_s1 = scalar_lea.hbm %s9198_s11, 8192 }
 0x490   :  { %p5319_p13 = scmp.ne.s32.totalorder %s9198_s11, %s5318_s1  ;;  %p5322_p0 = scmp.lt.u32.totalorder %s5318_s1, %s9198_s11 }
 0x492   :  { %p5324_p1 = pnand %p5322_p0, %p5319_p13 }
 0x494   :  { %5327 = shalt.err (!%p5324_p1)
}
 0x495   :  { %4398 = dma.vmem_to_hbm [thread:$0]  %s4393_s29, 8192, %s9198_s11, [#allocation4], %s5333_s27, %s5333_s27, %s5334_s28  }
 0x496   :  { %5330 = dma.done.wait [#allocation4], 8192  }
 0x497   :  { %5331 = vsyncadd [#allocation4], 4294959104 }
 0x498   :  { %4402 = vsyncpa [#allocation3], 1 }
 0x499   :  { %4403 = vsyncpa [#allocation4], 1 }

</bundles_post_ra>
